<compile_context>
chip_gen: v6e
topology: v6e:2x2x1
jax: 0.10.0
libtpu: 0.0.40
codegen_flags: <defaults>
</compile_context>

<pallas_src>
import numpy as np
import jax
import jax.numpy as jnp
from jax.experimental import pallas as pl
from jax.experimental.pallas import tpu as pltpu

# ---------------- config (small shapes consistent with the module) ----------
C = 1                            # image channels
CHANNEL_DIM = 8                  # image side -> data_dim = 64
DATA_DIM = CHANNEL_DIM * CHANNEL_DIM
R_DIM = 32
Z_DIM = 32
HIDDEN_DIM = 32
NUM_HEADS = 4
HEAD_SIZE = R_DIM // NUM_HEADS             # 8
ATT_DK = 2                                 # attention q/k width in the module
QK_SCALE = 1.0 / np.sqrt(float(ATT_DK))

OUT_PAD = 256                              # packed output row, 2 full lane tiles
assert DATA_DIM == 2 * HIDDEN_DIM          # w_big row sharing (64 rows)
assert 2 * DATA_DIM == 128                 # first output store is one lane tile

# ---------------- packed-slab column offsets (static) ------------------------
# w_small [8, 128]
SM_W1, SM_WK, SM_WHEAD, SM_COLS = 0, 64, 72, 128
# w_mid [32, 384]
MD_WR, MD_WMV, MD_WV, MD_WO, MD_WS = 0, 32, 96, 128, 160
MD_WG1S, MD_WG1Z, MD_WG2, MD_WG3, MD_WG4, MD_COLS = 192, 224, 256, 288, 320, 384
# w_big [64, 256]
BG_W2, BG_W3, BG_QALL, BG_XG, BG_COLS = 0, 64, 128, 136, 256
# bias [1, 640]
BI_B1, BI_B2, BI_B3, BI_BR, BI_BMV = 0, 64, 128, 192, 224
BI_BK, BI_BV, BI_BO, BI_BS = 288, 296, 328, 360
BI_BG1, BI_BG2, BI_BG3, BI_BG4, BI_BHEAD, BI_COLS = 392, 424, 456, 488, 520, 640


def generate_grid(h, w):
    rows = jnp.linspace(0.0, 1.0, h)
    cols = jnp.linspace(0.0, 1.0, w)
    # torch: stack([cols.repeat(h,1).t().view(-1), rows.repeat(w)], dim=1)
    col_part = jnp.repeat(cols, h)
    row_part = jnp.tile(rows, w)
    grid = jnp.stack([col_part, row_part], axis=1)
    return grid[None].astype(jnp.float32)          # [1, h*w, 2]


X_GRID = generate_grid(CHANNEL_DIM, CHANNEL_DIM)   # [1, DATA_DIM, 2]


# ---------------- small in-kernel helpers -----------------------------------
def _relu(x):
    return jnp.maximum(x, 0.0)


def _sigmoid(x):
    # exact sigmoid (feeds var / z_sample; see correctness note in review)
    return 1.0 / (1.0 + jnp.exp(-x))


def _softplus(x):
    return jnp.maximum(x, 0.0) + jnp.log(1.0 + jnp.exp(-jnp.abs(x)))


def _dot(a, b):
    return jnp.dot(a, b, preferred_element_type=jnp.float32)


# ---------------- fused NP forward kernel (BB batch elements per step) -------
def np_fused_kernel(xy_ref, eps_ref, wsm_ref, wmd_ref, wbg_ref, bias_ref, out_ref):
    BB, n_ctx, _ = xy_ref.shape
    m = DATA_DIM
    H2 = 2 * HIDDEN_DIM

    # ---- static views into the packed weight slabs ----
    w1f = wsm_ref[0:4, SM_W1:SM_W1 + H2]                         # [4, 64]
    wk = wsm_ref[0:2, SM_WK:SM_WK + ATT_DK * NUM_HEADS]          # [2, 8]
    whd = wsm_ref[0:2, SM_WHEAD:SM_WHEAD + HIDDEN_DIM]           # [2, 32]

    w2f = wbg_ref[:, BG_W2:BG_W2 + H2]                           # [64, 64]
    w3f = wbg_ref[:, BG_W3:BG_W3 + H2]                           # [64, 64]
    q_all = wbg_ref[:, BG_QALL:BG_QALL + ATT_DK * NUM_HEADS]     # [m, 8]  x_grid@wq+bq
    xg = wbg_ref[:, BG_XG:BG_XG + HIDDEN_DIM]                    # [m, 32] x_grid@wg1x

    wr = wmd_ref[:, MD_WR:MD_WR + R_DIM]
    wmv = wmd_ref[:, MD_WMV:MD_WMV + 2 * Z_DIM]
    wv = wmd_ref[:, MD_WV:MD_WV + R_DIM]
    wo = wmd_ref[:, MD_WO:MD_WO + R_DIM]
    ws = wmd_ref[:, MD_WS:MD_WS + Z_DIM]
    wg1s = wmd_ref[:, MD_WG1S:MD_WG1S + HIDDEN_DIM]
    wg1z = wmd_ref[:, MD_WG1Z:MD_WG1Z + HIDDEN_DIM]
    wg2 = wmd_ref[:, MD_WG2:MD_WG2 + HIDDEN_DIM]
    wg3 = wmd_ref[:, MD_WG3:MD_WG3 + HIDDEN_DIM]
    wg4 = wmd_ref[:, MD_WG4:MD_WG4 + HIDDEN_DIM]

    b1f = bias_ref[:, BI_B1:BI_B1 + H2]
    b2f = bias_ref[:, BI_B2:BI_B2 + H2]
    b3f = bias_ref[:, BI_B3:BI_B3 + H2]
    br = bias_ref[:, BI_BR:BI_BR + R_DIM]
    bmv = bias_ref[:, BI_BMV:BI_BMV + 2 * Z_DIM]
    bk = bias_ref[:, BI_BK:BI_BK + ATT_DK * NUM_HEADS]
    bv = bias_ref[:, BI_BV:BI_BV + R_DIM]
    bo = bias_ref[:, BI_BO:BI_BO + R_DIM]                        # per-head biases pre-summed
    bs = bias_ref[:, BI_BS:BI_BS + Z_DIM]
    bg1 = bias_ref[:, BI_BG1:BI_BG1 + HIDDEN_DIM]
    bg2 = bias_ref[:, BI_BG2:BI_BG2 + HIDDEN_DIM]
    bg3 = bias_ref[:, BI_BG3:BI_BG3 + HIDDEN_DIM]
    bg4 = bias_ref[:, BI_BG4:BI_BG4 + HIDDEN_DIM]
    b_mean = bias_ref[:, BI_BHEAD:BI_BHEAD + 1]
    b_var = bias_ref[:, BI_BHEAD + 1:BI_BHEAD + 2]

    # ---- batch-folded, lane-fused encoders (latent | deterministic) ----
    xy = jnp.concatenate([xy_ref[e] for e in range(BB)], axis=0)       # [BB*n, 4]
    h = _relu(_dot(xy, w1f) + b1f)                                     # [BB*n, 64]
    h = _relu(_dot(h, w2f) + b2f)                                      # block-diag
    h = _relu(_dot(h, w3f) + b3f)
    ri = h[:, :R_DIM]                                                  # latent features
    rs = h[:, R_DIM:]                                                  # deterministic features

    # latent path: per-element mean over context points -> (mu, var) -> z
    r = jnp.concatenate(
        [jnp.mean(ri[e * n_ctx:(e + 1) * n_ctx], axis=0, keepdims=True)
         for e in range(BB)], axis=0)                                  # [BB, R]
    r = _relu(_dot(r, wr) + br)
    mv = _dot(r, wmv) + bmv                                            # [BB, 2Z] mu|logvar
    mu = mv[:, :Z_DIM]
    var = (0.1 + 0.9 * _sigmoid(mv[:, Z_DIM:])) * 0.1                  # [BB, Z]
    # torch Normal(mu, var): var is the SCALE (kept deliberately)
    z = mu + var * eps_ref[...][:, 0, :]                               # [BB, Z]

    # deterministic path: multihead cross-attention, output proj in registers
    k_all = _dot(xy[:, 0:2], wk) + bk                                  # [BB*n, 8]
    v_all = _dot(rs, wv) + bv                                          # [BB*n, R]

    s_parts = []
    for e in range(BB):
        k_e = k_all[e * n_ctx:(e + 1) * n_ctx]
        v_e = v_all[e * n_ctx:(e + 1) * n_ctx]
        rep = bo                                                       # [1, R]
        for hd in range(NUM_HEADS):
            qh = q_all[:, ATT_DK * hd:ATT_DK * (hd + 1)]               # [m, 2]
            kh = k_e[:, ATT_DK * hd:ATT_DK * (hd + 1)]                 # [n, 2]
            sc = jax.lax.dot_general(qh, kh, (((1,), (1,)), ((), ())),
                                     preferred_element_type=jnp.float32) * QK_SCALE
            sc = sc - jnp.max(sc, axis=-1, keepdims=True)
            pe = jnp.exp(sc)
            wgt = pe * pl.reciprocal(jnp.sum(pe, axis=-1, keepdims=True), approx=True)
            o_h = _dot(wgt, v_e[:, HEAD_SIZE * hd:HEAD_SIZE * (hd + 1)])          # [m, hs]
            rep = rep + _dot(o_h, wo[HEAD_SIZE * hd:HEAD_SIZE * (hd + 1), :])     # [m, R]
        s_parts.append(_dot(rep, ws) + bs)                             # [m, Z]
    s_all = jnp.concatenate(s_parts, axis=0)                           # [BB*m, Z]

    # decoder: g_1 split into s / z / x contributions (x-term precomputed)
    cz = jnp.concatenate(
        [xg + _dot(z[e:e + 1, :], wg1z) + bg1 for e in range(BB)], axis=0)   # [BB*m, H]
    g = _relu(_dot(s_all, wg1s) + cz)
    g = _relu(_dot(g, wg2) + bg2)
    g = _relu(_dot(g, wg3) + bg3)
    g = _relu(_dot(g, wg4) + bg4)                                      # [BB*m, H]

    # decoder heads in transposed (lane-dense) orientation: [2, BB*m]
    head = jax.lax.dot_general(whd, g, (((1,), (1,)), ((), ())),
                               preferred_element_type=jnp.float32)
    ymean_all = head[0:1, :] + b_mean
    sigma_all = 0.1 + 0.9 * _softplus(head[1:2, :] + b_var)

    # lane-dense packed output: two unmasked 128-lane stores per element
    pad64 = jnp.zeros((1, 2 * Z_DIM), jnp.float32)
    for e in range(BB):
        ym = ymean_all[:, e * m:(e + 1) * m]                           # [1, 64]
        sg = sigma_all[:, e * m:(e + 1) * m]                           # [1, 64]
        out_ref[e, :, 0:2 * DATA_DIM] = jnp.concatenate([ym, sg], axis=1)
        out_ref[e, :, 2 * DATA_DIM:OUT_PAD] = jnp.concatenate(
            [mu[e:e + 1, :], var[e:e + 1, :], pad64], axis=1)


# ---------------- wrapper ----------------------------------------------------
def _choose_bb(batch):
    """Batch elements per grid step: ~256 decoder rows, prefer an even grid."""
    target = max(1, 256 // DATA_DIM)
    for bb in range(min(batch, target), 0, -1):
        if batch % bb == 0 and (batch // bb) % 2 == 0:
            return bb
    for bb in range(min(batch, target), 0, -1):
        if batch % bb == 0:
            return bb
    return 1


def _cost_estimate(batch, n):
    m = DATA_DIM
    enc = 2 * batch * n * (4 * 64 + 64 * 64 + 64 * 64)
    att = 2 * batch * NUM_HEADS * (m * n * ATT_DK + m * n * HEAD_SIZE
                                   + m * HEAD_SIZE * R_DIM)
    lat = 2 * batch * (R_DIM * R_DIM + R_DIM * 2 * Z_DIM)
    s_lin = 2 * batch * m * R_DIM * Z_DIM
    dec = 2 * batch * m * (5 * Z_DIM * HIDDEN_DIM + 2 * HIDDEN_DIM)
    flops = enc + att + lat + s_lin + dec
    trans = batch * (NUM_HEADS * m * n + 2 * m + Z_DIM)
    w_bytes = 4 * (8 * SM_COLS + R_DIM * MD_COLS + 64 * BG_COLS + BI_COLS)
    bytes_accessed = w_bytes + 4 * batch * (n * 4 + Z_DIM + OUT_PAD)
    return pl.CostEstimate(flops=flops, transcendentals=trans,
                           bytes_accessed=bytes_accessed)


def np_fused(xy, eps, params):
    """xy: [B, n, 4] (x|y|pad) ; eps: [B, 1, Z] ; returns [B, 1, 256]."""
    B, n, _ = xy.shape
    w_small, w_mid, w_big, bias = params
    BB = _choose_bb(B)
    return pl.pallas_call(
        np_fused_kernel,
        grid=(B // BB,),
        in_specs=[
            pl.BlockSpec((BB, n, 4), lambda i: (i, 0, 0)),
            pl.BlockSpec((BB, 1, Z_DIM), lambda i: (i, 0, 0)),
            pl.BlockSpec(w_small.shape, lambda i: (0, 0)),
            pl.BlockSpec(w_mid.shape, lambda i: (0, 0)),
            pl.BlockSpec(w_big.shape, lambda i: (0, 0)),
            pl.BlockSpec(bias.shape, lambda i: (0, 0)),
        ],
        out_specs=pl.BlockSpec((BB, 1, OUT_PAD), lambda i: (i, 0, 0)),
        out_shape=jax.ShapeDtypeStruct((B, 1, OUT_PAD), jnp.float32),
        compiler_params=pltpu.CompilerParams(dimension_semantics=("parallel",)),
        cost_estimate=_cost_estimate(B, n),
    )(xy, eps, w_small, w_mid, w_big, bias)


@jax.jit
def np_forward(params, x_context, y_context, sample_key):
    B, n, _ = x_context.shape
    eps = jax.random.normal(sample_key, (B, 1, Z_DIM), jnp.float32)
    xy = jnp.concatenate(
        [x_context, y_context, jnp.zeros((B, n, 1), jnp.float32)], axis=2)   # [B, n, 4]
    packed = np_fused(xy, eps, params)                                       # [B, 1, 256]
    y_mean = packed[:, 0, 0:DATA_DIM][..., None]                             # [B, m, C]
    sigma = packed[:, 0, DATA_DIM:2 * DATA_DIM][..., None]
    mu = packed[:, 0, 2 * DATA_DIM:2 * DATA_DIM + Z_DIM]                     # [B, Z]
    var = packed[:, 0, 2 * DATA_DIM + Z_DIM:2 * DATA_DIM + 2 * Z_DIM]        # [B, Z]
    z_context = (mu, var)
    y_hat = (y_mean, (y_mean, sigma))       # (y_hat, Normal(y_mean, sigma) params)
    # eval mode: z_all = z_context, s_all = s_context (all computed in-kernel)
    return y_hat, z_context, z_context


# ---------------- parameters: raw weights + packed lane-dense slabs ----------
def _linear(key, in_dim, out_dim):
    kw, kb = jax.random.split(key)
    w = (1.0 / np.sqrt(in_dim)) * jax.random.normal(kw, (in_dim, out_dim), jnp.float32)
    b = 0.01 * jax.random.normal(kb, (1, out_dim), jnp.float32)
    return w, b


def init_params(key):
    it = iter(jax.random.split(key, 32))
    raw = {}
    raw['w1'], raw['b1'] = _linear(next(it), C + 2, HIDDEN_DIM)
    raw['w2'], raw['b2'] = _linear(next(it), HIDDEN_DIM, HIDDEN_DIM)
    raw['w3'], raw['b3'] = _linear(next(it), HIDDEN_DIM, R_DIM)
    raw['wr'], raw['br'] = _linear(next(it), R_DIM, R_DIM)
    raw['wmu'], raw['bmu'] = _linear(next(it), R_DIM, Z_DIM)
    raw['wlv'], raw['blv'] = _linear(next(it), R_DIM, Z_DIM)
    raw['w4'], raw['b4'] = _linear(next(it), C + 2, HIDDEN_DIM)
    raw['w5'], raw['b5'] = _linear(next(it), HIDDEN_DIM, HIDDEN_DIM)
    raw['w6'], raw['b6'] = _linear(next(it), HIDDEN_DIM, R_DIM)
    # multihead attention: per-head 1x1 conv == linear; scales follow torch init
    raw['wq'] = (2.0 ** -0.5) * jax.random.normal(next(it), (NUM_HEADS, ATT_DK, ATT_DK), jnp.float32)
    raw['wk'] = (2.0 ** -0.5) * jax.random.normal(next(it), (NUM_HEADS, ATT_DK, ATT_DK), jnp.float32)
    raw['wv'] = (2.0 ** -0.5) * jax.random.normal(next(it), (NUM_HEADS, R_DIM, HEAD_SIZE), jnp.float32)
    raw['wo'] = (R_DIM ** -0.5) * jax.random.normal(next(it), (NUM_HEADS, HEAD_SIZE, R_DIM), jnp.float32)
    raw['bq'] = 0.01 * jax.random.normal(next(it), (NUM_HEADS, 1, ATT_DK), jnp.float32)
    raw['bk'] = 0.01 * jax.random.normal(next(it), (NUM_HEADS, 1, ATT_DK), jnp.float32)
    raw['bv'] = 0.01 * jax.random.normal(next(it), (NUM_HEADS, 1, HEAD_SIZE), jnp.float32)
    raw['bo'] = 0.01 * jax.random.normal(next(it), (NUM_HEADS, 1, R_DIM), jnp.float32)
    raw['ws'], raw['bs'] = _linear(next(it), R_DIM, Z_DIM)
    raw['wg1'], raw['bg1'] = _linear(next(it), 2 * Z_DIM + 2, HIDDEN_DIM)
    raw['wg2'], raw['bg2'] = _linear(next(it), HIDDEN_DIM, HIDDEN_DIM)
    raw['wg3'], raw['bg3'] = _linear(next(it), HIDDEN_DIM, HIDDEN_DIM)
    raw['wg4'], raw['bg4'] = _linear(next(it), HIDDEN_DIM, HIDDEN_DIM)
    raw['wm'], raw['bm'] = _linear(next(it), HIDDEN_DIM, C)
    raw['wvh'], raw['bvh'] = _linear(next(it), HIDDEN_DIM, C)
    return pack_params(raw), raw


def pack_params(raw):
    H2 = 2 * HIDDEN_DIM
    # --- w_small [8, 128]: first-layer fused weights, key proj, decoder heads
    w_small = jnp.zeros((8, SM_COLS), jnp.float32)
    w_small = w_small.at[0:3, SM_W1:SM_W1 + HIDDEN_DIM].set(raw['w1'])
    w_small = w_small.at[0:3, SM_W1 + HIDDEN_DIM:SM_W1 + H2].set(raw['w4'])
    wk_cat = jnp.concatenate([raw['wk'][h] for h in range(NUM_HEADS)], axis=1)
    w_small = w_small.at[0:2, SM_WK:SM_WK + ATT_DK * NUM_HEADS].set(wk_cat)
    whead = jnp.concatenate([raw['wm'], raw['wvh']], axis=1).T            # [2, 32]
    w_small = w_small.at[0:2, SM_WHEAD:SM_WHEAD + HIDDEN_DIM].set(whead)

    # --- w_mid [32, 384]: all 32-row matrices
    w_mid = jnp.zeros((R_DIM, MD_COLS), jnp.float32)
    w_mid = w_mid.at[:, MD_WR:MD_WR + R_DIM].set(raw['wr'])
    w_mid = w_mid.at[:, MD_WMV:MD_WMV + Z_DIM].set(raw['wmu'])
    w_mid = w_mid.at[:, MD_WMV + Z_DIM:MD_WMV + 2 * Z_DIM].set(raw['wlv'])
    wv_cat = jnp.concatenate([raw['wv'][h] for h in range(NUM_HEADS)], axis=1)
    w_mid = w_mid.at[:, MD_WV:MD_WV + R_DIM].set(wv_cat)
    wo_cat = jnp.concatenate([raw['wo'][h] for h in range(NUM_HEADS)], axis=0)
    w_mid = w_mid.at[:, MD_WO:MD_WO + R_DIM].set(wo_cat)
    w_mid = w_mid.at[:, MD_WS:MD_WS + Z_DIM].set(raw['ws'])
    w_mid = w_mid.at[:, MD_WG1S:MD_WG1S + HIDDEN_DIM].set(raw['wg1'][0:Z_DIM])
    w_mid = w_mid.at[:, MD_WG1Z:MD_WG1Z + HIDDEN_DIM].set(raw['wg1'][Z_DIM:2 * Z_DIM])
    w_mid = w_mid.at[:, MD_WG2:MD_WG2 + HIDDEN_DIM].set(raw['wg2'])
    w_mid = w_mid.at[:, MD_WG3:MD_WG3 + HIDDEN_DIM].set(raw['wg3'])
    w_mid = w_mid.at[:, MD_WG4:MD_WG4 + HIDDEN_DIM].set(raw['wg4'])

    # --- w_big [64, 256]: block-diag fused layers 2/3 + precomputed grid terms
    w_big = jnp.zeros((H2, BG_COLS), jnp.float32)
    w_big = w_big.at[0:HIDDEN_DIM, BG_W2:BG_W2 + HIDDEN_DIM].set(raw['w2'])
    w_big = w_big.at[HIDDEN_DIM:H2, BG_W2 + HIDDEN_DIM:BG_W2 + H2].set(raw['w5'])
    w_big = w_big.at[0:HIDDEN_DIM, BG_W3:BG_W3 + HIDDEN_DIM].set(raw['w3'])
    w_big = w_big.at[HIDDEN_DIM:H2, BG_W3 + HIDDEN_DIM:BG_W3 + H2].set(raw['w6'])
    grid0 = X_GRID[0]                                                     # [m, 2]
    wq_cat = jnp.concatenate([raw['wq'][h] for h in range(NUM_HEADS)], axis=1)
    bq_cat = jnp.concatenate([raw['bq'][h] for h in range(NUM_HEADS)], axis=1)
    q_all = grid0 @ wq_cat + bq_cat                                       # [m, 8]
    w_big = w_big.at[:, BG_QALL:BG_QALL + ATT_DK * NUM_HEADS].set(q_all)
    xg = grid0 @ raw['wg1'][2 * Z_DIM:]                                   # [m, 32]
    w_big = w_big.at[:, BG_XG:BG_XG + HIDDEN_DIM].set(xg)

    # --- bias [1, 640]: all bias rows
    bias = jnp.zeros((1, BI_COLS), jnp.float32)
    bias = bias.at[:, BI_B1:BI_B1 + HIDDEN_DIM].set(raw['b1'])
    bias = bias.at[:, BI_B1 + HIDDEN_DIM:BI_B1 + H2].set(raw['b4'])
    bias = bias.at[:, BI_B2:BI_B2 + HIDDEN_DIM].set(raw['b2'])
    bias = bias.at[:, BI_B2 + HIDDEN_DIM:BI_B2 + H2].set(raw['b5'])
    bias = bias.at[:, BI_B3:BI_B3 + HIDDEN_DIM].set(raw['b3'])
    bias = bias.at[:, BI_B3 + HIDDEN_DIM:BI_B3 + H2].set(raw['b6'])
    bias = bias.at[:, BI_BR:BI_BR + R_DIM].set(raw['br'])
    bias = bias.at[:, BI_BMV:BI_BMV + Z_DIM].set(raw['bmu'])
    bias = bias.at[:, BI_BMV + Z_DIM:BI_BMV + 2 * Z_DIM].set(raw['blv'])
    bk_cat = jnp.concatenate([raw['bk'][h] for h in range(NUM_HEADS)], axis=1)
    bias = bias.at[:, BI_BK:BI_BK + ATT_DK * NUM_HEADS].set(bk_cat)
    bv_cat = jnp.concatenate([raw['bv'][h] for h in range(NUM_HEADS)], axis=1)
    bias = bias.at[:, BI_BV:BI_BV + R_DIM].set(bv_cat)
    bias = bias.at[:, BI_BO:BI_BO + R_DIM].set(jnp.sum(raw['bo'], axis=0))
    bias = bias.at[:, BI_BS:BI_BS + Z_DIM].set(raw['bs'])
    bias = bias.at[:, BI_BG1:BI_BG1 + HIDDEN_DIM].set(raw['bg1'])
    bias = bias.at[:, BI_BG2:BI_BG2 + HIDDEN_DIM].set(raw['bg2'])
    bias = bias.at[:, BI_BG3:BI_BG3 + HIDDEN_DIM].set(raw['bg3'])
    bias = bias.at[:, BI_BG4:BI_BG4 + HIDDEN_DIM].set(raw['bg4'])
    bhead = jnp.concatenate([raw['bm'], raw['bvh']], axis=1)              # [1, 2]
    bias = bias.at[:, BI_BHEAD:BI_BHEAD + 2].set(bhead)
    return (w_small, w_mid, w_big, bias)


# ---------------- pure-JAX reference (for correctness check) -----------------
def np_forward_ref(raw, x_context, y_context, eps):
    B = x_context.shape[0]
    xt = jnp.broadcast_to(X_GRID, (B, DATA_DIM, 2))
    lin = lambda x, w, b: x @ w + b
    xy = jnp.concatenate([x_context, y_context], axis=-1)
    # latent path
    h = jax.nn.relu(lin(xy, raw['w1'], raw['b1']))
    h = jax.nn.relu(lin(h, raw['w2'], raw['b2']))
    ri = jax.nn.relu(lin(h, raw['w3'], raw['b3']))
    r = jnp.mean(ri, axis=1)
    r = jax.nn.relu(lin(r, raw['wr'], raw['br']))
    mu = lin(r, raw['wmu'], raw['bmu'])
    logvar = lin(r, raw['wlv'], raw['blv'])
    var = (0.1 + 0.9 * jax.nn.sigmoid(logvar)) * 0.1
    # deterministic path
    hs = jax.nn.relu(lin(xy, raw['w4'], raw['b4']))
    hs = jax.nn.relu(lin(hs, raw['w5'], raw['b5']))
    rs = jax.nn.relu(lin(hs, raw['w6'], raw['b6']))
    rep = 0.0
    for hd in range(NUM_HEADS):
        q = lin(xt, raw['wq'][hd], raw['bq'][hd])
        k = lin(x_context, raw['wk'][hd], raw['bk'][hd])
        v = lin(rs, raw['wv'][hd], raw['bv'][hd])
        logits = jnp.einsum('bmd,bnd->bmn', q, k) * QK_SCALE
        w = jax.nn.softmax(logits, axis=-1)
        o = jnp.einsum('bmn,bnd->bmd', w, v)
        rep = rep + lin(o, raw['wo'][hd], raw['bo'][hd])
    s_all = lin(rep, raw['ws'], raw['bs'])
    # reparameterise (torch Normal(mu, var): var used as scale)
    z = mu + var * eps[:, 0, :]
    zs = jnp.broadcast_to(z[:, None, :], (B, DATA_DIM, Z_DIM))
    zx = jnp.concatenate([s_all, zs, xt], axis=-1)
    g = jax.nn.relu(lin(zx, raw['wg1'], raw['bg1']))
    g = jax.nn.relu(lin(g, raw['wg2'], raw['bg2']))
    g = jax.nn.relu(lin(g, raw['wg3'], raw['bg3']))
    g = jax.nn.relu(lin(g, raw['wg4'], raw['bg4']))
    y_mean = lin(g, raw['wm'], raw['bm'])
    sigma = 0.1 + 0.9 * jax.nn.softplus(lin(g, raw['wvh'], raw['bvh']))
    return y_mean, sigma, mu, var


# ---------------- main --------------------------------------------------------
if __name__ == "__main__":
    key = jax.random.PRNGKey(0)
    kp, kx, ky, ks = jax.random.split(key, 4)

    params, raw = init_params(kp)

    B, N_CTX = 4, 16
    x_context = jax.random.uniform(kx, (B, N_CTX, 2), jnp.float32)     # coords in [0,1]^2
    y_context = jax.random.uniform(ky, (B, N_CTX, C), jnp.float32)     # intensities

    out = np_forward(params, x_context, y_context, ks)
    jax.block_until_ready(out)
    (y_mean, (_, sigma)), (mu_all, var_all), (mu_ctx, var_ctx) = out

    # correctness check against a pure-JAX reference (same eps: same key/shape)
    eps = jax.random.normal(ks, (B, 1, Z_DIM), jnp.float32)
    ym_ref, sg_ref, mu_ref, var_ref = np_forward_ref(raw, x_context, y_context, eps)
    err = max(float(jnp.max(jnp.abs(y_mean - ym_ref))),
              float(jnp.max(jnp.abs(sigma - sg_ref))),
              float(jnp.max(jnp.abs(mu_all - mu_ref))),
              float(jnp.max(jnp.abs(var_all - var_ref))))
    assert err < 2e-2, f"kernel/reference mismatch: max abs err = {err}"

    assert y_mean.shape == (B, DATA_DIM, C) and sigma.shape == (B, DATA_DIM, C)
    assert mu_all.shape == (B, Z_DIM) and var_all.shape == (B, Z_DIM)
    assert bool(jnp.all(jnp.isfinite(y_mean))) and bool(jnp.all(sigma > 0.0))
    assert bool(jnp.all(var_ctx > 0.0))
    print("KERNEL_OK")
</pallas_src>

<mosaic_0001>
module attributes {stable_mosaic.version = 11 : i64} {
  func.func @np_fused_kernel(%arg0: i32, %arg1: memref<2x16x4xf32, #tpu.memory_space<vmem>>, %arg2: memref<2x1x32xf32, #tpu.memory_space<vmem>>, %arg3: memref<8x128xf32, #tpu.memory_space<vmem>>, %arg4: memref<32x384xf32, #tpu.memory_space<vmem>>, %arg5: memref<64x256xf32, #tpu.memory_space<vmem>>, %arg6: memref<1x640xf32, #tpu.memory_space<vmem>>, %arg7: memref<2x1x256xf32, #tpu.memory_space<vmem>>) attributes {dimension_semantics = [#tpu.dimension_semantics<parallel>], iteration_bounds = array<i64: 2>, scalar_prefetch = 0 : i64, scratch_operands = 0 : i64, tpu.core_type = #tpu.core_type<tc>, window_params = [{transform_indices = @transform_0, window_bounds = array<i64: 2, 16, 4>}, {transform_indices = @transform_1, window_bounds = array<i64: 2, 1, 32>}, {pipeline_mode = #tpu.pipeline_mode<synchronous>, transform_indices = @transform_2, window_bounds = array<i64: 8, 128>}, {pipeline_mode = #tpu.pipeline_mode<synchronous>, transform_indices = @transform_3, window_bounds = array<i64: 32, 384>}, {pipeline_mode = #tpu.pipeline_mode<synchronous>, transform_indices = @transform_4, window_bounds = array<i64: 64, 256>}, {pipeline_mode = #tpu.pipeline_mode<synchronous>, transform_indices = @transform_5, window_bounds = array<i64: 1, 640>}, {transform_indices = @transform_6, window_bounds = array<i64: 2, 1, 256>}]} {
    %c0 = arith.constant 0 : index
    %c0_0 = arith.constant 0 : index
    %0 = vector.load %arg3[%c0, %c0_0] : memref<8x128xf32, #tpu.memory_space<vmem>>, vector<4x64xf32>
    %c0_1 = arith.constant 0 : index
    %c64 = arith.constant 64 : index
    %1 = vector.load %arg3[%c0_1, %c64] : memref<8x128xf32, #tpu.memory_space<vmem>>, vector<2x8xf32>
    %c0_2 = arith.constant 0 : index
    %c72 = arith.constant 72 : index
    %2 = vector.load %arg3[%c0_2, %c72] : memref<8x128xf32, #tpu.memory_space<vmem>>, vector<2x32xf32>
    %c0_3 = arith.constant 0 : index
    %c0_4 = arith.constant 0 : index
    %3 = vector.load %arg5[%c0_3, %c0_4] : memref<64x256xf32, #tpu.memory_space<vmem>>, vector<64x64xf32>
    %c0_5 = arith.constant 0 : index
    %c64_6 = arith.constant 64 : index
    %4 = vector.load %arg5[%c0_5, %c64_6] : memref<64x256xf32, #tpu.memory_space<vmem>>, vector<64x64xf32>
    %c0_7 = arith.constant 0 : index
    %c128 = arith.constant 128 : index
    %5 = vector.load %arg5[%c0_7, %c128] : memref<64x256xf32, #tpu.memory_space<vmem>>, vector<64x8xf32>
    %c0_8 = arith.constant 0 : index
    %c136 = arith.constant 136 : index
    %6 = vector.load %arg5[%c0_8, %c136] : memref<64x256xf32, #tpu.memory_space<vmem>>, vector<64x32xf32>
    %c0_9 = arith.constant 0 : index
    %c0_10 = arith.constant 0 : index
    %7 = vector.load %arg4[%c0_9, %c0_10] : memref<32x384xf32, #tpu.memory_space<vmem>>, vector<32x32xf32>
    %c0_11 = arith.constant 0 : index
    %c32 = arith.constant 32 : index
    %8 = vector.load %arg4[%c0_11, %c32] : memref<32x384xf32, #tpu.memory_space<vmem>>, vector<32x64xf32>
    %c0_12 = arith.constant 0 : index
    %c96 = arith.constant 96 : index
    %9 = vector.load %arg4[%c0_12, %c96] : memref<32x384xf32, #tpu.memory_space<vmem>>, vector<32x32xf32>
    %c0_13 = arith.constant 0 : index
    %c128_14 = arith.constant 128 : index
    %10 = vector.load %arg4[%c0_13, %c128_14] : memref<32x384xf32, #tpu.memory_space<vmem>>, vector<32x32xf32>
    %c0_15 = arith.constant 0 : index
    %c160 = arith.constant 160 : index
    %11 = vector.load %arg4[%c0_15, %c160] : memref<32x384xf32, #tpu.memory_space<vmem>>, vector<32x32xf32>
    %c0_16 = arith.constant 0 : index
    %c192 = arith.constant 192 : index
    %12 = vector.load %arg4[%c0_16, %c192] : memref<32x384xf32, #tpu.memory_space<vmem>>, vector<32x32xf32>
    %c0_17 = arith.constant 0 : index
    %c224 = arith.constant 224 : index
    %13 = vector.load %arg4[%c0_17, %c224] : memref<32x384xf32, #tpu.memory_space<vmem>>, vector<32x32xf32>
    %c0_18 = arith.constant 0 : index
    %c256 = arith.constant 256 : index
    %14 = vector.load %arg4[%c0_18, %c256] : memref<32x384xf32, #tpu.memory_space<vmem>>, vector<32x32xf32>
    %c0_19 = arith.constant 0 : index
    %c288 = arith.constant 288 : index
    %15 = vector.load %arg4[%c0_19, %c288] : memref<32x384xf32, #tpu.memory_space<vmem>>, vector<32x32xf32>
    %c0_20 = arith.constant 0 : index
    %c320 = arith.constant 320 : index
    %16 = vector.load %arg4[%c0_20, %c320] : memref<32x384xf32, #tpu.memory_space<vmem>>, vector<32x32xf32>
    %c0_21 = arith.constant 0 : index
    %c0_22 = arith.constant 0 : index
    %17 = vector.load %arg6[%c0_21, %c0_22] : memref<1x640xf32, #tpu.memory_space<vmem>>, vector<1x64xf32>
    %c0_23 = arith.constant 0 : index
    %c64_24 = arith.constant 64 : index
    %18 = vector.load %arg6[%c0_23, %c64_24] : memref<1x640xf32, #tpu.memory_space<vmem>>, vector<1x64xf32>
    %c0_25 = arith.constant 0 : index
    %c128_26 = arith.constant 128 : index
    %19 = vector.load %arg6[%c0_25, %c128_26] : memref<1x640xf32, #tpu.memory_space<vmem>>, vector<1x64xf32>
    %c0_27 = arith.constant 0 : index
    %c192_28 = arith.constant 192 : index
    %20 = vector.load %arg6[%c0_27, %c192_28] : memref<1x640xf32, #tpu.memory_space<vmem>>, vector<1x32xf32>
    %c0_29 = arith.constant 0 : index
    %c224_30 = arith.constant 224 : index
    %21 = vector.load %arg6[%c0_29, %c224_30] : memref<1x640xf32, #tpu.memory_space<vmem>>, vector<1x64xf32>
    %c0_31 = arith.constant 0 : index
    %c288_32 = arith.constant 288 : index
    %22 = vector.load %arg6[%c0_31, %c288_32] : memref<1x640xf32, #tpu.memory_space<vmem>>, vector<1x8xf32>
    %c0_33 = arith.constant 0 : index
    %c296 = arith.constant 296 : index
    %23 = vector.load %arg6[%c0_33, %c296] : memref<1x640xf32, #tpu.memory_space<vmem>>, vector<1x32xf32>
    %c0_34 = arith.constant 0 : index
    %c328 = arith.constant 328 : index
    %24 = vector.load %arg6[%c0_34, %c328] : memref<1x640xf32, #tpu.memory_space<vmem>>, vector<1x32xf32>
    %c0_35 = arith.constant 0 : index
    %c360 = arith.constant 360 : index
    %25 = vector.load %arg6[%c0_35, %c360] : memref<1x640xf32, #tpu.memory_space<vmem>>, vector<1x32xf32>
    %c0_36 = arith.constant 0 : index
    %c392 = arith.constant 392 : index
    %26 = vector.load %arg6[%c0_36, %c392] : memref<1x640xf32, #tpu.memory_space<vmem>>, vector<1x32xf32>
    %c0_37 = arith.constant 0 : index
    %c424 = arith.constant 424 : index
    %27 = vector.load %arg6[%c0_37, %c424] : memref<1x640xf32, #tpu.memory_space<vmem>>, vector<1x32xf32>
    %c0_38 = arith.constant 0 : index
    %c456 = arith.constant 456 : index
    %28 = vector.load %arg6[%c0_38, %c456] : memref<1x640xf32, #tpu.memory_space<vmem>>, vector<1x32xf32>
    %c0_39 = arith.constant 0 : index
    %c488 = arith.constant 488 : index
    %29 = vector.load %arg6[%c0_39, %c488] : memref<1x640xf32, #tpu.memory_space<vmem>>, vector<1x32xf32>
    %c0_40 = arith.constant 0 : index
    %c520 = arith.constant 520 : index
    %30 = vector.load %arg6[%c0_40, %c520] : memref<1x640xf32, #tpu.memory_space<vmem>>, vector<1x1xf32>
    %c0_41 = arith.constant 0 : index
    %c521 = arith.constant 521 : index
    %31 = vector.load %arg6[%c0_41, %c521] : memref<1x640xf32, #tpu.memory_space<vmem>>, vector<1x1xf32>
    %c0_42 = arith.constant 0 : index
    %c0_43 = arith.constant 0 : index
    %c0_44 = arith.constant 0 : index
    %32 = vector.load %arg1[%c0_42, %c0_43, %c0_44] : memref<2x16x4xf32, #tpu.memory_space<vmem>>, vector<1x16x4xf32>
    %33 = vector.shape_cast %32 : vector<1x16x4xf32> to vector<16x4xf32>
    %c1 = arith.constant 1 : index
    %c0_45 = arith.constant 0 : index
    %c0_46 = arith.constant 0 : index
    %34 = vector.load %arg1[%c1, %c0_45, %c0_46] : memref<2x16x4xf32, #tpu.memory_space<vmem>>, vector<1x16x4xf32>
    %35 = vector.shape_cast %34 : vector<1x16x4xf32> to vector<16x4xf32>
    %36 = tpu.concatenate %33, %35 in 0 : vector<16x4xf32>, vector<16x4xf32> -> vector<32x4xf32>
    %cst = arith.constant dense<0.000000e+00> : vector<32x64xf32>
    %37 = tpu.matmul %36, %0, %cst {dimension_numbers = #tpu.dot_dimension_numbers<[1], [0], [0], [1], [0, 0, 1, 1], [], []>} : vector<32x4xf32>, vector<4x64xf32>, vector<32x64xf32> -> vector<32x64xf32>
    %38 = vector.broadcast %17 : vector<1x64xf32> to vector<32x64xf32>
    %39 = arith.addf %37, %38 : vector<32x64xf32>
    %cst_47 = arith.constant 0.000000e+00 : f32
    %40 = vector.broadcast %cst_47 : f32 to vector<32x64xf32>
    %41 = arith.maximumf %39, %40 : vector<32x64xf32>
    %cst_48 = arith.constant dense<0.000000e+00> : vector<32x64xf32>
    %42 = tpu.matmul %41, %3, %cst_48 {dimension_numbers = #tpu.dot_dimension_numbers<[1], [0], [0], [1], [0, 0, 1, 1], [], []>} : vector<32x64xf32>, vector<64x64xf32>, vector<32x64xf32> -> vector<32x64xf32>
    %43 = vector.broadcast %18 : vector<1x64xf32> to vector<32x64xf32>
    %44 = arith.addf %42, %43 : vector<32x64xf32>
    %cst_49 = arith.constant 0.000000e+00 : f32
    %45 = vector.broadcast %cst_49 : f32 to vector<32x64xf32>
    %46 = arith.maximumf %44, %45 : vector<32x64xf32>
    %cst_50 = arith.constant dense<0.000000e+00> : vector<32x64xf32>
    %47 = tpu.matmul %46, %4, %cst_50 {dimension_numbers = #tpu.dot_dimension_numbers<[1], [0], [0], [1], [0, 0, 1, 1], [], []>} : vector<32x64xf32>, vector<64x64xf32>, vector<32x64xf32> -> vector<32x64xf32>
    %48 = vector.broadcast %19 : vector<1x64xf32> to vector<32x64xf32>
    %49 = arith.addf %47, %48 : vector<32x64xf32>
    %cst_51 = arith.constant 0.000000e+00 : f32
    %50 = vector.broadcast %cst_51 : f32 to vector<32x64xf32>
    %51 = arith.maximumf %49, %50 : vector<32x64xf32>
    %52 = vector.extract_strided_slice %51 {offsets = [0, 0], sizes = [32, 32], strides = [1, 1]} : vector<32x64xf32> to vector<32x32xf32>
    %53 = vector.extract_strided_slice %51 {offsets = [0, 32], sizes = [32, 32], strides = [1, 1]} : vector<32x64xf32> to vector<32x32xf32>
    %54 = vector.extract_strided_slice %52 {offsets = [0, 0], sizes = [16, 32], strides = [1, 1]} : vector<32x32xf32> to vector<16x32xf32>
    %cst_52 = arith.constant dense<0.000000e+00> : vector<32xf32>
    %55 = vector.multi_reduction <add>, %54, %cst_52 [0] : vector<16x32xf32> to vector<32xf32>
    %56 = vector.shape_cast %55 : vector<32xf32> to vector<1x32xf32>
    %cst_53 = arith.constant 1.600000e+01 : f32
    %57 = vector.broadcast %cst_53 : f32 to vector<1x32xf32>
    %58 = arith.divf %56, %57 : vector<1x32xf32>
    %59 = vector.extract_strided_slice %52 {offsets = [16, 0], sizes = [16, 32], strides = [1, 1]} : vector<32x32xf32> to vector<16x32xf32>
    %cst_54 = arith.constant dense<0.000000e+00> : vector<32xf32>
    %60 = vector.multi_reduction <add>, %59, %cst_54 [0] : vector<16x32xf32> to vector<32xf32>
    %61 = vector.shape_cast %60 : vector<32xf32> to vector<1x32xf32>
    %cst_55 = arith.constant 1.600000e+01 : f32
    %62 = vector.broadcast %cst_55 : f32 to vector<1x32xf32>
    %63 = arith.divf %61, %62 : vector<1x32xf32>
    %64 = tpu.concatenate %58, %63 in 0 : vector<1x32xf32>, vector<1x32xf32> -> vector<2x32xf32>
    %cst_56 = arith.constant dense<0.000000e+00> : vector<2x32xf32>
    %65 = tpu.matmul %64, %7, %cst_56 {dimension_numbers = #tpu.dot_dimension_numbers<[1], [0], [0], [1], [0, 0, 1, 1], [], []>} : vector<2x32xf32>, vector<32x32xf32>, vector<2x32xf32> -> vector<2x32xf32>
    %66 = vector.broadcast %20 : vector<1x32xf32> to vector<2x32xf32>
    %67 = arith.addf %65, %66 : vector<2x32xf32>
    %cst_57 = arith.constant 0.000000e+00 : f32
    %68 = vector.broadcast %cst_57 : f32 to vector<2x32xf32>
    %69 = arith.maximumf %67, %68 : vector<2x32xf32>
    %cst_58 = arith.constant dense<0.000000e+00> : vector<2x64xf32>
    %70 = tpu.matmul %69, %8, %cst_58 {dimension_numbers = #tpu.dot_dimension_numbers<[1], [0], [0], [1], [0, 0, 1, 1], [], []>} : vector<2x32xf32>, vector<32x64xf32>, vector<2x64xf32> -> vector<2x64xf32>
    %71 = vector.broadcast %21 : vector<1x64xf32> to vector<2x64xf32>
    %72 = arith.addf %70, %71 : vector<2x64xf32>
    %73 = vector.extract_strided_slice %72 {offsets = [0, 0], sizes = [2, 32], strides = [1, 1]} : vector<2x64xf32> to vector<2x32xf32>
    %74 = vector.extract_strided_slice %72 {offsets = [0, 32], sizes = [2, 32], strides = [1, 1]} : vector<2x64xf32> to vector<2x32xf32>
    %cst_59 = arith.constant 0.000000e+00 : f32
    %75 = vector.broadcast %cst_59 : f32 to vector<2x32xf32>
    %76 = arith.subf %75, %74 : vector<2x32xf32>
    %77 = math.exp %76 : vector<2x32xf32>
    %cst_60 = arith.constant 1.000000e+00 : f32
    %78 = vector.broadcast %cst_60 : f32 to vector<2x32xf32>
    %79 = arith.addf %78, %77 : vector<2x32xf32>
    %cst_61 = arith.constant 1.000000e+00 : f32
    %80 = vector.broadcast %cst_61 : f32 to vector<2x32xf32>
    %81 = arith.divf %80, %79 : vector<2x32xf32>
    %cst_62 = arith.constant 0.899999976 : f32
    %82 = vector.broadcast %cst_62 : f32 to vector<2x32xf32>
    %83 = arith.mulf %82, %81 : vector<2x32xf32>
    %cst_63 = arith.constant 1.000000e-01 : f32
    %84 = vector.broadcast %cst_63 : f32 to vector<2x32xf32>
    %85 = arith.addf %84, %83 : vector<2x32xf32>
    %cst_64 = arith.constant 1.000000e-01 : f32
    %86 = vector.broadcast %cst_64 : f32 to vector<2x32xf32>
    %87 = arith.mulf %85, %86 : vector<2x32xf32>
    %c0_65 = arith.constant 0 : index
    %c0_66 = arith.constant 0 : index
    %c0_67 = arith.constant 0 : index
    %88 = vector.load %arg2[%c0_65, %c0_66, %c0_67] : memref<2x1x32xf32, #tpu.memory_space<vmem>>, vector<2x1x32xf32>
    %89 = vector.shape_cast %88 : vector<2x1x32xf32> to vector<2x32xf32>
    %90 = arith.mulf %87, %89 : vector<2x32xf32>
    %91 = arith.addf %73, %90 : vector<2x32xf32>
    %92 = vector.extract_strided_slice %36 {offsets = [0, 0], sizes = [32, 2], strides = [1, 1]} : vector<32x4xf32> to vector<32x2xf32>
    %cst_68 = arith.constant dense<0.000000e+00> : vector<32x8xf32>
    %93 = tpu.matmul %92, %1, %cst_68 {dimension_numbers = #tpu.dot_dimension_numbers<[1], [0], [0], [1], [0, 0, 1, 1], [], []>} : vector<32x2xf32>, vector<2x8xf32>, vector<32x8xf32> -> vector<32x8xf32>
    %94 = vector.broadcast %22 : vector<1x8xf32> to vector<32x8xf32>
    %95 = arith.addf %93, %94 : vector<32x8xf32>
    %cst_69 = arith.constant dense<0.000000e+00> : vector<32x32xf32>
    %96 = tpu.matmul %53, %9, %cst_69 {dimension_numbers = #tpu.dot_dimension_numbers<[1], [0], [0], [1], [0, 0, 1, 1], [], []>} : vector<32x32xf32>, vector<32x32xf32>, vector<32x32xf32> -> vector<32x32xf32>
    %97 = vector.broadcast %23 : vector<1x32xf32> to vector<32x32xf32>
    %98 = arith.addf %96, %97 : vector<32x32xf32>
    %99 = vector.extract_strided_slice %95 {offsets = [0, 0], sizes = [16, 8], strides = [1, 1]} : vector<32x8xf32> to vector<16x8xf32>
    %100 = vector.extract_strided_slice %98 {offsets = [0, 0], sizes = [16, 32], strides = [1, 1]} : vector<32x32xf32> to vector<16x32xf32>
    %101 = vector.extract_strided_slice %5 {offsets = [0, 0], sizes = [64, 2], strides = [1, 1]} : vector<64x8xf32> to vector<64x2xf32>
    %102 = vector.extract_strided_slice %99 {offsets = [0, 0], sizes = [16, 2], strides = [1, 1]} : vector<16x8xf32> to vector<16x2xf32>
    %cst_70 = arith.constant dense<0.000000e+00> : vector<64x16xf32>
    %103 = tpu.matmul %101, %102, %cst_70 {dimension_numbers = #tpu.dot_dimension_numbers<[1], [1], [0], [0], [0, 0, 1, 0], [], []>} : vector<64x2xf32>, vector<16x2xf32>, vector<64x16xf32> -> vector<64x16xf32>
    %cst_71 = arith.constant 0.707106769 : f32
    %104 = vector.broadcast %cst_71 : f32 to vector<64x16xf32>
    %105 = arith.mulf %103, %104 : vector<64x16xf32>
    %cst_72 = arith.constant dense<0xFF800000> : vector<64xf32>
    %106 = vector.multi_reduction <maximumf>, %105, %cst_72 [1] : vector<64x16xf32> to vector<64xf32>
    %107 = vector.shape_cast %106 : vector<64xf32> to vector<64x1xf32>
    %108 = vector.broadcast %107 : vector<64x1xf32> to vector<64x16xf32>
    %109 = arith.subf %105, %108 : vector<64x16xf32>
    %110 = math.exp %109 : vector<64x16xf32>
    %cst_73 = arith.constant dense<0.000000e+00> : vector<64xf32>
    %111 = vector.multi_reduction <add>, %110, %cst_73 [1] : vector<64x16xf32> to vector<64xf32>
    %112 = vector.shape_cast %111 : vector<64xf32> to vector<64x1xf32>
    %113 = tpu.reciprocal %112 {approx = true} : vector<64x1xf32> -> vector<64x1xf32>
    %114 = vector.broadcast %113 : vector<64x1xf32> to vector<64x16xf32>
    %115 = arith.mulf %110, %114 : vector<64x16xf32>
    %116 = vector.extract_strided_slice %100 {offsets = [0, 0], sizes = [16, 8], strides = [1, 1]} : vector<16x32xf32> to vector<16x8xf32>
    %cst_74 = arith.constant dense<0.000000e+00> : vector<64x8xf32>
    %117 = tpu.matmul %115, %116, %cst_74 {dimension_numbers = #tpu.dot_dimension_numbers<[1], [0], [0], [1], [0, 0, 1, 1], [], []>} : vector<64x16xf32>, vector<16x8xf32>, vector<64x8xf32> -> vector<64x8xf32>
    %118 = vector.extract_strided_slice %10 {offsets = [0, 0], sizes = [8, 32], strides = [1, 1]} : vector<32x32xf32> to vector<8x32xf32>
    %cst_75 = arith.constant dense<0.000000e+00> : vector<64x32xf32>
    %119 = tpu.matmul %117, %118, %cst_75 {dimension_numbers = #tpu.dot_dimension_numbers<[1], [0], [0], [1], [0, 0, 1, 1], [], []>} : vector<64x8xf32>, vector<8x32xf32>, vector<64x32xf32> -> vector<64x32xf32>
    %120 = vector.broadcast %24 : vector<1x32xf32> to vector<64x32xf32>
    %121 = arith.addf %120, %119 : vector<64x32xf32>
    %122 = vector.extract_strided_slice %5 {offsets = [0, 2], sizes = [64, 2], strides = [1, 1]} : vector<64x8xf32> to vector<64x2xf32>
    %123 = vector.extract_strided_slice %99 {offsets = [0, 2], sizes = [16, 2], strides = [1, 1]} : vector<16x8xf32> to vector<16x2xf32>
    %cst_76 = arith.constant dense<0.000000e+00> : vector<64x16xf32>
    %124 = tpu.matmul %122, %123, %cst_76 {dimension_numbers = #tpu.dot_dimension_numbers<[1], [1], [0], [0], [0, 0, 1, 0], [], []>} : vector<64x2xf32>, vector<16x2xf32>, vector<64x16xf32> -> vector<64x16xf32>
    %cst_77 = arith.constant 0.707106769 : f32
    %125 = vector.broadcast %cst_77 : f32 to vector<64x16xf32>
    %126 = arith.mulf %124, %125 : vector<64x16xf32>
    %cst_78 = arith.constant dense<0xFF800000> : vector<64xf32>
    %127 = vector.multi_reduction <maximumf>, %126, %cst_78 [1] : vector<64x16xf32> to vector<64xf32>
    %128 = vector.shape_cast %127 : vector<64xf32> to vector<64x1xf32>
    %129 = vector.broadcast %128 : vector<64x1xf32> to vector<64x16xf32>
    %130 = arith.subf %126, %129 : vector<64x16xf32>
    %131 = math.exp %130 : vector<64x16xf32>
    %cst_79 = arith.constant dense<0.000000e+00> : vector<64xf32>
    %132 = vector.multi_reduction <add>, %131, %cst_79 [1] : vector<64x16xf32> to vector<64xf32>
    %133 = vector.shape_cast %132 : vector<64xf32> to vector<64x1xf32>
    %134 = tpu.reciprocal %133 {approx = true} : vector<64x1xf32> -> vector<64x1xf32>
    %135 = vector.broadcast %134 : vector<64x1xf32> to vector<64x16xf32>
    %136 = arith.mulf %131, %135 : vector<64x16xf32>
    %137 = vector.extract_strided_slice %100 {offsets = [0, 8], sizes = [16, 8], strides = [1, 1]} : vector<16x32xf32> to vector<16x8xf32>
    %cst_80 = arith.constant dense<0.000000e+00> : vector<64x8xf32>
    %138 = tpu.matmul %136, %137, %cst_80 {dimension_numbers = #tpu.dot_dimension_numbers<[1], [0], [0], [1], [0, 0, 1, 1], [], []>} : vector<64x16xf32>, vector<16x8xf32>, vector<64x8xf32> -> vector<64x8xf32>
    %139 = vector.extract_strided_slice %10 {offsets = [8, 0], sizes = [8, 32], strides = [1, 1]} : vector<32x32xf32> to vector<8x32xf32>
    %cst_81 = arith.constant dense<0.000000e+00> : vector<64x32xf32>
    %140 = tpu.matmul %138, %139, %cst_81 {dimension_numbers = #tpu.dot_dimension_numbers<[1], [0], [0], [1], [0, 0, 1, 1], [], []>} : vector<64x8xf32>, vector<8x32xf32>, vector<64x32xf32> -> vector<64x32xf32>
    %141 = arith.addf %121, %140 : vector<64x32xf32>
    %142 = vector.extract_strided_slice %5 {offsets = [0, 4], sizes = [64, 2], strides = [1, 1]} : vector<64x8xf32> to vector<64x2xf32>
    %143 = vector.extract_strided_slice %99 {offsets = [0, 4], sizes = [16, 2], strides = [1, 1]} : vector<16x8xf32> to vector<16x2xf32>
    %cst_82 = arith.constant dense<0.000000e+00> : vector<64x16xf32>
    %144 = tpu.matmul %142, %143, %cst_82 {dimension_numbers = #tpu.dot_dimension_numbers<[1], [1], [0], [0], [0, 0, 1, 0], [], []>} : vector<64x2xf32>, vector<16x2xf32>, vector<64x16xf32> -> vector<64x16xf32>
    %cst_83 = arith.constant 0.707106769 : f32
    %145 = vector.broadcast %cst_83 : f32 to vector<64x16xf32>
    %146 = arith.mulf %144, %145 : vector<64x16xf32>
    %cst_84 = arith.constant dense<0xFF800000> : vector<64xf32>
    %147 = vector.multi_reduction <maximumf>, %146, %cst_84 [1] : vector<64x16xf32> to vector<64xf32>
    %148 = vector.shape_cast %147 : vector<64xf32> to vector<64x1xf32>
    %149 = vector.broadcast %148 : vector<64x1xf32> to vector<64x16xf32>
    %150 = arith.subf %146, %149 : vector<64x16xf32>
    %151 = math.exp %150 : vector<64x16xf32>
    %cst_85 = arith.constant dense<0.000000e+00> : vector<64xf32>
    %152 = vector.multi_reduction <add>, %151, %cst_85 [1] : vector<64x16xf32> to vector<64xf32>
    %153 = vector.shape_cast %152 : vector<64xf32> to vector<64x1xf32>
    %154 = tpu.reciprocal %153 {approx = true} : vector<64x1xf32> -> vector<64x1xf32>
    %155 = vector.broadcast %154 : vector<64x1xf32> to vector<64x16xf32>
    %156 = arith.mulf %151, %155 : vector<64x16xf32>
    %157 = vector.extract_strided_slice %100 {offsets = [0, 16], sizes = [16, 8], strides = [1, 1]} : vector<16x32xf32> to vector<16x8xf32>
    %cst_86 = arith.constant dense<0.000000e+00> : vector<64x8xf32>
    %158 = tpu.matmul %156, %157, %cst_86 {dimension_numbers = #tpu.dot_dimension_numbers<[1], [0], [0], [1], [0, 0, 1, 1], [], []>} : vector<64x16xf32>, vector<16x8xf32>, vector<64x8xf32> -> vector<64x8xf32>
    %159 = vector.extract_strided_slice %10 {offsets = [16, 0], sizes = [8, 32], strides = [1, 1]} : vector<32x32xf32> to vector<8x32xf32>
    %cst_87 = arith.constant dense<0.000000e+00> : vector<64x32xf32>
    %160 = tpu.matmul %158, %159, %cst_87 {dimension_numbers = #tpu.dot_dimension_numbers<[1], [0], [0], [1], [0, 0, 1, 1], [], []>} : vector<64x8xf32>, vector<8x32xf32>, vector<64x32xf32> -> vector<64x32xf32>
    %161 = arith.addf %141, %160 : vector<64x32xf32>
    %162 = vector.extract_strided_slice %5 {offsets = [0, 6], sizes = [64, 2], strides = [1, 1]} : vector<64x8xf32> to vector<64x2xf32>
    %163 = vector.extract_strided_slice %99 {offsets = [0, 6], sizes = [16, 2], strides = [1, 1]} : vector<16x8xf32> to vector<16x2xf32>
    %cst_88 = arith.constant dense<0.000000e+00> : vector<64x16xf32>
    %164 = tpu.matmul %162, %163, %cst_88 {dimension_numbers = #tpu.dot_dimension_numbers<[1], [1], [0], [0], [0, 0, 1, 0], [], []>} : vector<64x2xf32>, vector<16x2xf32>, vector<64x16xf32> -> vector<64x16xf32>
    %cst_89 = arith.constant 0.707106769 : f32
    %165 = vector.broadcast %cst_89 : f32 to vector<64x16xf32>
    %166 = arith.mulf %164, %165 : vector<64x16xf32>
    %cst_90 = arith.constant dense<0xFF800000> : vector<64xf32>
    %167 = vector.multi_reduction <maximumf>, %166, %cst_90 [1] : vector<64x16xf32> to vector<64xf32>
    %168 = vector.shape_cast %167 : vector<64xf32> to vector<64x1xf32>
    %169 = vector.broadcast %168 : vector<64x1xf32> to vector<64x16xf32>
    %170 = arith.subf %166, %169 : vector<64x16xf32>
    %171 = math.exp %170 : vector<64x16xf32>
    %cst_91 = arith.constant dense<0.000000e+00> : vector<64xf32>
    %172 = vector.multi_reduction <add>, %171, %cst_91 [1] : vector<64x16xf32> to vector<64xf32>
    %173 = vector.shape_cast %172 : vector<64xf32> to vector<64x1xf32>
    %174 = tpu.reciprocal %173 {approx = true} : vector<64x1xf32> -> vector<64x1xf32>
    %175 = vector.broadcast %174 : vector<64x1xf32> to vector<64x16xf32>
    %176 = arith.mulf %171, %175 : vector<64x16xf32>
    %177 = vector.extract_strided_slice %100 {offsets = [0, 24], sizes = [16, 8], strides = [1, 1]} : vector<16x32xf32> to vector<16x8xf32>
    %cst_92 = arith.constant dense<0.000000e+00> : vector<64x8xf32>
    %178 = tpu.matmul %176, %177, %cst_92 {dimension_numbers = #tpu.dot_dimension_numbers<[1], [0], [0], [1], [0, 0, 1, 1], [], []>} : vector<64x16xf32>, vector<16x8xf32>, vector<64x8xf32> -> vector<64x8xf32>
    %179 = vector.extract_strided_slice %10 {offsets = [24, 0], sizes = [8, 32], strides = [1, 1]} : vector<32x32xf32> to vector<8x32xf32>
    %cst_93 = arith.constant dense<0.000000e+00> : vector<64x32xf32>
    %180 = tpu.matmul %178, %179, %cst_93 {dimension_numbers = #tpu.dot_dimension_numbers<[1], [0], [0], [1], [0, 0, 1, 1], [], []>} : vector<64x8xf32>, vector<8x32xf32>, vector<64x32xf32> -> vector<64x32xf32>
    %181 = arith.addf %161, %180 : vector<64x32xf32>
    %cst_94 = arith.constant dense<0.000000e+00> : vector<64x32xf32>
    %182 = tpu.matmul %181, %11, %cst_94 {dimension_numbers = #tpu.dot_dimension_numbers<[1], [0], [0], [1], [0, 0, 1, 1], [], []>} : vector<64x32xf32>, vector<32x32xf32>, vector<64x32xf32> -> vector<64x32xf32>
    %183 = vector.broadcast %25 : vector<1x32xf32> to vector<64x32xf32>
    %184 = arith.addf %182, %183 : vector<64x32xf32>
    %185 = vector.extract_strided_slice %95 {offsets = [16, 0], sizes = [16, 8], strides = [1, 1]} : vector<32x8xf32> to vector<16x8xf32>
    %186 = vector.extract_strided_slice %98 {offsets = [16, 0], sizes = [16, 32], strides = [1, 1]} : vector<32x32xf32> to vector<16x32xf32>
    %187 = vector.extract_strided_slice %5 {offsets = [0, 0], sizes = [64, 2], strides = [1, 1]} : vector<64x8xf32> to vector<64x2xf32>
    %188 = vector.extract_strided_slice %185 {offsets = [0, 0], sizes = [16, 2], strides = [1, 1]} : vector<16x8xf32> to vector<16x2xf32>
    %cst_95 = arith.constant dense<0.000000e+00> : vector<64x16xf32>
    %189 = tpu.matmul %187, %188, %cst_95 {dimension_numbers = #tpu.dot_dimension_numbers<[1], [1], [0], [0], [0, 0, 1, 0], [], []>} : vector<64x2xf32>, vector<16x2xf32>, vector<64x16xf32> -> vector<64x16xf32>
    %cst_96 = arith.constant 0.707106769 : f32
    %190 = vector.broadcast %cst_96 : f32 to vector<64x16xf32>
    %191 = arith.mulf %189, %190 : vector<64x16xf32>
    %cst_97 = arith.constant dense<0xFF800000> : vector<64xf32>
    %192 = vector.multi_reduction <maximumf>, %191, %cst_97 [1] : vector<64x16xf32> to vector<64xf32>
    %193 = vector.shape_cast %192 : vector<64xf32> to vector<64x1xf32>
    %194 = vector.broadcast %193 : vector<64x1xf32> to vector<64x16xf32>
    %195 = arith.subf %191, %194 : vector<64x16xf32>
    %196 = math.exp %195 : vector<64x16xf32>
    %cst_98 = arith.constant dense<0.000000e+00> : vector<64xf32>
    %197 = vector.multi_reduction <add>, %196, %cst_98 [1] : vector<64x16xf32> to vector<64xf32>
    %198 = vector.shape_cast %197 : vector<64xf32> to vector<64x1xf32>
    %199 = tpu.reciprocal %198 {approx = true} : vector<64x1xf32> -> vector<64x1xf32>
    %200 = vector.broadcast %199 : vector<64x1xf32> to vector<64x16xf32>
    %201 = arith.mulf %196, %200 : vector<64x16xf32>
    %202 = vector.extract_strided_slice %186 {offsets = [0, 0], sizes = [16, 8], strides = [1, 1]} : vector<16x32xf32> to vector<16x8xf32>
    %cst_99 = arith.constant dense<0.000000e+00> : vector<64x8xf32>
    %203 = tpu.matmul %201, %202, %cst_99 {dimension_numbers = #tpu.dot_dimension_numbers<[1], [0], [0], [1], [0, 0, 1, 1], [], []>} : vector<64x16xf32>, vector<16x8xf32>, vector<64x8xf32> -> vector<64x8xf32>
    %204 = vector.extract_strided_slice %10 {offsets = [0, 0], sizes = [8, 32], strides = [1, 1]} : vector<32x32xf32> to vector<8x32xf32>
    %cst_100 = arith.constant dense<0.000000e+00> : vector<64x32xf32>
    %205 = tpu.matmul %203, %204, %cst_100 {dimension_numbers = #tpu.dot_dimension_numbers<[1], [0], [0], [1], [0, 0, 1, 1], [], []>} : vector<64x8xf32>, vector<8x32xf32>, vector<64x32xf32> -> vector<64x32xf32>
    %206 = vector.broadcast %24 : vector<1x32xf32> to vector<64x32xf32>
    %207 = arith.addf %206, %205 : vector<64x32xf32>
    %208 = vector.extract_strided_slice %5 {offsets = [0, 2], sizes = [64, 2], strides = [1, 1]} : vector<64x8xf32> to vector<64x2xf32>
    %209 = vector.extract_strided_slice %185 {offsets = [0, 2], sizes = [16, 2], strides = [1, 1]} : vector<16x8xf32> to vector<16x2xf32>
    %cst_101 = arith.constant dense<0.000000e+00> : vector<64x16xf32>
    %210 = tpu.matmul %208, %209, %cst_101 {dimension_numbers = #tpu.dot_dimension_numbers<[1], [1], [0], [0], [0, 0, 1, 0], [], []>} : vector<64x2xf32>, vector<16x2xf32>, vector<64x16xf32> -> vector<64x16xf32>
    %cst_102 = arith.constant 0.707106769 : f32
    %211 = vector.broadcast %cst_102 : f32 to vector<64x16xf32>
    %212 = arith.mulf %210, %211 : vector<64x16xf32>
    %cst_103 = arith.constant dense<0xFF800000> : vector<64xf32>
    %213 = vector.multi_reduction <maximumf>, %212, %cst_103 [1] : vector<64x16xf32> to vector<64xf32>
    %214 = vector.shape_cast %213 : vector<64xf32> to vector<64x1xf32>
    %215 = vector.broadcast %214 : vector<64x1xf32> to vector<64x16xf32>
    %216 = arith.subf %212, %215 : vector<64x16xf32>
    %217 = math.exp %216 : vector<64x16xf32>
    %cst_104 = arith.constant dense<0.000000e+00> : vector<64xf32>
    %218 = vector.multi_reduction <add>, %217, %cst_104 [1] : vector<64x16xf32> to vector<64xf32>
    %219 = vector.shape_cast %218 : vector<64xf32> to vector<64x1xf32>
    %220 = tpu.reciprocal %219 {approx = true} : vector<64x1xf32> -> vector<64x1xf32>
    %221 = vector.broadcast %220 : vector<64x1xf32> to vector<64x16xf32>
    %222 = arith.mulf %217, %221 : vector<64x16xf32>
    %223 = vector.extract_strided_slice %186 {offsets = [0, 8], sizes = [16, 8], strides = [1, 1]} : vector<16x32xf32> to vector<16x8xf32>
    %cst_105 = arith.constant dense<0.000000e+00> : vector<64x8xf32>
    %224 = tpu.matmul %222, %223, %cst_105 {dimension_numbers = #tpu.dot_dimension_numbers<[1], [0], [0], [1], [0, 0, 1, 1], [], []>} : vector<64x16xf32>, vector<16x8xf32>, vector<64x8xf32> -> vector<64x8xf32>
    %225 = vector.extract_strided_slice %10 {offsets = [8, 0], sizes = [8, 32], strides = [1, 1]} : vector<32x32xf32> to vector<8x32xf32>
    %cst_106 = arith.constant dense<0.000000e+00> : vector<64x32xf32>
    %226 = tpu.matmul %224, %225, %cst_106 {dimension_numbers = #tpu.dot_dimension_numbers<[1], [0], [0], [1], [0, 0, 1, 1], [], []>} : vector<64x8xf32>, vector<8x32xf32>, vector<64x32xf32> -> vector<64x32xf32>
    %227 = arith.addf %207, %226 : vector<64x32xf32>
    %228 = vector.extract_strided_slice %5 {offsets = [0, 4], sizes = [64, 2], strides = [1, 1]} : vector<64x8xf32> to vector<64x2xf32>
    %229 = vector.extract_strided_slice %185 {offsets = [0, 4], sizes = [16, 2], strides = [1, 1]} : vector<16x8xf32> to vector<16x2xf32>
    %cst_107 = arith.constant dense<0.000000e+00> : vector<64x16xf32>
    %230 = tpu.matmul %228, %229, %cst_107 {dimension_numbers = #tpu.dot_dimension_numbers<[1], [1], [0], [0], [0, 0, 1, 0], [], []>} : vector<64x2xf32>, vector<16x2xf32>, vector<64x16xf32> -> vector<64x16xf32>
    %cst_108 = arith.constant 0.707106769 : f32
    %231 = vector.broadcast %cst_108 : f32 to vector<64x16xf32>
    %232 = arith.mulf %230, %231 : vector<64x16xf32>
    %cst_109 = arith.constant dense<0xFF800000> : vector<64xf32>
    %233 = vector.multi_reduction <maximumf>, %232, %cst_109 [1] : vector<64x16xf32> to vector<64xf32>
    %234 = vector.shape_cast %233 : vector<64xf32> to vector<64x1xf32>
    %235 = vector.broadcast %234 : vector<64x1xf32> to vector<64x16xf32>
    %236 = arith.subf %232, %235 : vector<64x16xf32>
    %237 = math.exp %236 : vector<64x16xf32>
    %cst_110 = arith.constant dense<0.000000e+00> : vector<64xf32>
    %238 = vector.multi_reduction <add>, %237, %cst_110 [1] : vector<64x16xf32> to vector<64xf32>
    %239 = vector.shape_cast %238 : vector<64xf32> to vector<64x1xf32>
    %240 = tpu.reciprocal %239 {approx = true} : vector<64x1xf32> -> vector<64x1xf32>
    %241 = vector.broadcast %240 : vector<64x1xf32> to vector<64x16xf32>
    %242 = arith.mulf %237, %241 : vector<64x16xf32>
    %243 = vector.extract_strided_slice %186 {offsets = [0, 16], sizes = [16, 8], strides = [1, 1]} : vector<16x32xf32> to vector<16x8xf32>
    %cst_111 = arith.constant dense<0.000000e+00> : vector<64x8xf32>
    %244 = tpu.matmul %242, %243, %cst_111 {dimension_numbers = #tpu.dot_dimension_numbers<[1], [0], [0], [1], [0, 0, 1, 1], [], []>} : vector<64x16xf32>, vector<16x8xf32>, vector<64x8xf32> -> vector<64x8xf32>
    %245 = vector.extract_strided_slice %10 {offsets = [16, 0], sizes = [8, 32], strides = [1, 1]} : vector<32x32xf32> to vector<8x32xf32>
    %cst_112 = arith.constant dense<0.000000e+00> : vector<64x32xf32>
    %246 = tpu.matmul %244, %245, %cst_112 {dimension_numbers = #tpu.dot_dimension_numbers<[1], [0], [0], [1], [0, 0, 1, 1], [], []>} : vector<64x8xf32>, vector<8x32xf32>, vector<64x32xf32> -> vector<64x32xf32>
    %247 = arith.addf %227, %246 : vector<64x32xf32>
    %248 = vector.extract_strided_slice %5 {offsets = [0, 6], sizes = [64, 2], strides = [1, 1]} : vector<64x8xf32> to vector<64x2xf32>
    %249 = vector.extract_strided_slice %185 {offsets = [0, 6], sizes = [16, 2], strides = [1, 1]} : vector<16x8xf32> to vector<16x2xf32>
    %cst_113 = arith.constant dense<0.000000e+00> : vector<64x16xf32>
    %250 = tpu.matmul %248, %249, %cst_113 {dimension_numbers = #tpu.dot_dimension_numbers<[1], [1], [0], [0], [0, 0, 1, 0], [], []>} : vector<64x2xf32>, vector<16x2xf32>, vector<64x16xf32> -> vector<64x16xf32>
    %cst_114 = arith.constant 0.707106769 : f32
    %251 = vector.broadcast %cst_114 : f32 to vector<64x16xf32>
    %252 = arith.mulf %250, %251 : vector<64x16xf32>
    %cst_115 = arith.constant dense<0xFF800000> : vector<64xf32>
    %253 = vector.multi_reduction <maximumf>, %252, %cst_115 [1] : vector<64x16xf32> to vector<64xf32>
    %254 = vector.shape_cast %253 : vector<64xf32> to vector<64x1xf32>
    %255 = vector.broadcast %254 : vector<64x1xf32> to vector<64x16xf32>
    %256 = arith.subf %252, %255 : vector<64x16xf32>
    %257 = math.exp %256 : vector<64x16xf32>
    %cst_116 = arith.constant dense<0.000000e+00> : vector<64xf32>
    %258 = vector.multi_reduction <add>, %257, %cst_116 [1] : vector<64x16xf32> to vector<64xf32>
    %259 = vector.shape_cast %258 : vector<64xf32> to vector<64x1xf32>
    %260 = tpu.reciprocal %259 {approx = true} : vector<64x1xf32> -> vector<64x1xf32>
    %261 = vector.broadcast %260 : vector<64x1xf32> to vector<64x16xf32>
    %262 = arith.mulf %257, %261 : vector<64x16xf32>
    %263 = vector.extract_strided_slice %186 {offsets = [0, 24], sizes = [16, 8], strides = [1, 1]} : vector<16x32xf32> to vector<16x8xf32>
    %cst_117 = arith.constant dense<0.000000e+00> : vector<64x8xf32>
    %264 = tpu.matmul %262, %263, %cst_117 {dimension_numbers = #tpu.dot_dimension_numbers<[1], [0], [0], [1], [0, 0, 1, 1], [], []>} : vector<64x16xf32>, vector<16x8xf32>, vector<64x8xf32> -> vector<64x8xf32>
    %265 = vector.extract_strided_slice %10 {offsets = [24, 0], sizes = [8, 32], strides = [1, 1]} : vector<32x32xf32> to vector<8x32xf32>
    %cst_118 = arith.constant dense<0.000000e+00> : vector<64x32xf32>
    %266 = tpu.matmul %264, %265, %cst_118 {dimension_numbers = #tpu.dot_dimension_numbers<[1], [0], [0], [1], [0, 0, 1, 1], [], []>} : vector<64x8xf32>, vector<8x32xf32>, vector<64x32xf32> -> vector<64x32xf32>
    %267 = arith.addf %247, %266 : vector<64x32xf32>
    %cst_119 = arith.constant dense<0.000000e+00> : vector<64x32xf32>
    %268 = tpu.matmul %267, %11, %cst_119 {dimension_numbers = #tpu.dot_dimension_numbers<[1], [0], [0], [1], [0, 0, 1, 1], [], []>} : vector<64x32xf32>, vector<32x32xf32>, vector<64x32xf32> -> vector<64x32xf32>
    %269 = vector.broadcast %25 : vector<1x32xf32> to vector<64x32xf32>
    %270 = arith.addf %268, %269 : vector<64x32xf32>
    %271 = tpu.concatenate %184, %270 in 0 : vector<64x32xf32>, vector<64x32xf32> -> vector<128x32xf32>
    %272 = vector.extract_strided_slice %91 {offsets = [0, 0], sizes = [1, 32], strides = [1, 1]} : vector<2x32xf32> to vector<1x32xf32>
    %cst_120 = arith.constant dense<0.000000e+00> : vector<1x32xf32>
    %273 = tpu.matmul %272, %13, %cst_120 {dimension_numbers = #tpu.dot_dimension_numbers<[1], [0], [0], [1], [0, 0, 1, 1], [], []>} : vector<1x32xf32>, vector<32x32xf32>, vector<1x32xf32> -> vector<1x32xf32>
    %274 = vector.broadcast %273 : vector<1x32xf32> to vector<64x32xf32>
    %275 = arith.addf %6, %274 : vector<64x32xf32>
    %276 = vector.broadcast %26 : vector<1x32xf32> to vector<64x32xf32>
    %277 = arith.addf %275, %276 : vector<64x32xf32>
    %278 = vector.extract_strided_slice %91 {offsets = [1, 0], sizes = [1, 32], strides = [1, 1]} : vector<2x32xf32> to vector<1x32xf32>
    %cst_121 = arith.constant dense<0.000000e+00> : vector<1x32xf32>
    %279 = tpu.matmul %278, %13, %cst_121 {dimension_numbers = #tpu.dot_dimension_numbers<[1], [0], [0], [1], [0, 0, 1, 1], [], []>} : vector<1x32xf32>, vector<32x32xf32>, vector<1x32xf32> -> vector<1x32xf32>
    %280 = vector.broadcast %279 : vector<1x32xf32> to vector<64x32xf32>
    %281 = arith.addf %6, %280 : vector<64x32xf32>
    %282 = vector.broadcast %26 : vector<1x32xf32> to vector<64x32xf32>
    %283 = arith.addf %281, %282 : vector<64x32xf32>
    %284 = tpu.concatenate %277, %283 in 0 : vector<64x32xf32>, vector<64x32xf32> -> vector<128x32xf32>
    %cst_122 = arith.constant dense<0.000000e+00> : vector<128x32xf32>
    %285 = tpu.matmul %271, %12, %cst_122 {dimension_numbers = #tpu.dot_dimension_numbers<[1], [0], [0], [1], [0, 0, 1, 1], [], []>} : vector<128x32xf32>, vector<32x32xf32>, vector<128x32xf32> -> vector<128x32xf32>
    %286 = arith.addf %285, %284 : vector<128x32xf32>
    %cst_123 = arith.constant 0.000000e+00 : f32
    %287 = vector.broadcast %cst_123 : f32 to vector<128x32xf32>
    %288 = arith.maximumf %286, %287 : vector<128x32xf32>
    %cst_124 = arith.constant dense<0.000000e+00> : vector<128x32xf32>
    %289 = tpu.matmul %288, %14, %cst_124 {dimension_numbers = #tpu.dot_dimension_numbers<[1], [0], [0], [1], [0, 0, 1, 1], [], []>} : vector<128x32xf32>, vector<32x32xf32>, vector<128x32xf32> -> vector<128x32xf32>
    %290 = vector.broadcast %27 : vector<1x32xf32> to vector<128x32xf32>
    %291 = arith.addf %289, %290 : vector<128x32xf32>
    %cst_125 = arith.constant 0.000000e+00 : f32
    %292 = vector.broadcast %cst_125 : f32 to vector<128x32xf32>
    %293 = arith.maximumf %291, %292 : vector<128x32xf32>
    %cst_126 = arith.constant dense<0.000000e+00> : vector<128x32xf32>
    %294 = tpu.matmul %293, %15, %cst_126 {dimension_numbers = #tpu.dot_dimension_numbers<[1], [0], [0], [1], [0, 0, 1, 1], [], []>} : vector<128x32xf32>, vector<32x32xf32>, vector<128x32xf32> -> vector<128x32xf32>
    %295 = vector.broadcast %28 : vector<1x32xf32> to vector<128x32xf32>
    %296 = arith.addf %294, %295 : vector<128x32xf32>
    %cst_127 = arith.constant 0.000000e+00 : f32
    %297 = vector.broadcast %cst_127 : f32 to vector<128x32xf32>
    %298 = arith.maximumf %296, %297 : vector<128x32xf32>
    %cst_128 = arith.constant dense<0.000000e+00> : vector<128x32xf32>
    %299 = tpu.matmul %298, %16, %cst_128 {dimension_numbers = #tpu.dot_dimension_numbers<[1], [0], [0], [1], [0, 0, 1, 1], [], []>} : vector<128x32xf32>, vector<32x32xf32>, vector<128x32xf32> -> vector<128x32xf32>
    %300 = vector.broadcast %29 : vector<1x32xf32> to vector<128x32xf32>
    %301 = arith.addf %299, %300 : vector<128x32xf32>
    %cst_129 = arith.constant 0.000000e+00 : f32
    %302 = vector.broadcast %cst_129 : f32 to vector<128x32xf32>
    %303 = arith.maximumf %301, %302 : vector<128x32xf32>
    %cst_130 = arith.constant dense<0.000000e+00> : vector<2x128xf32>
    %304 = tpu.matmul %2, %303, %cst_130 {dimension_numbers = #tpu.dot_dimension_numbers<[1], [1], [0], [0], [0, 0, 1, 0], [], []>} : vector<2x32xf32>, vector<128x32xf32>, vector<2x128xf32> -> vector<2x128xf32>
    %305 = vector.extract_strided_slice %304 {offsets = [0, 0], sizes = [1, 128], strides = [1, 1]} : vector<2x128xf32> to vector<1x128xf32>
    %306 = vector.broadcast %30 : vector<1x1xf32> to vector<1x128xf32>
    %307 = arith.addf %305, %306 : vector<1x128xf32>
    %308 = vector.extract_strided_slice %304 {offsets = [1, 0], sizes = [1, 128], strides = [1, 1]} : vector<2x128xf32> to vector<1x128xf32>
    %309 = vector.broadcast %31 : vector<1x1xf32> to vector<1x128xf32>
    %310 = arith.addf %308, %309 : vector<1x128xf32>
    %cst_131 = arith.constant 0.000000e+00 : f32
    %311 = vector.broadcast %cst_131 : f32 to vector<1x128xf32>
    %312 = arith.maximumf %310, %311 : vector<1x128xf32>
    %313 = math.absf %310 : vector<1x128xf32>
    %cst_132 = arith.constant 0.000000e+00 : f32
    %314 = vector.broadcast %cst_132 : f32 to vector<1x128xf32>
    %315 = arith.subf %314, %313 : vector<1x128xf32>
    %316 = math.exp %315 : vector<1x128xf32>
    %cst_133 = arith.constant 1.000000e+00 : f32
    %317 = vector.broadcast %cst_133 : f32 to vector<1x128xf32>
    %318 = arith.addf %317, %316 : vector<1x128xf32>
    %319 = math.log %318 : vector<1x128xf32>
    %320 = arith.addf %312, %319 : vector<1x128xf32>
    %cst_134 = arith.constant 0.899999976 : f32
    %321 = vector.broadcast %cst_134 : f32 to vector<1x128xf32>
    %322 = arith.mulf %321, %320 : vector<1x128xf32>
    %cst_135 = arith.constant 1.000000e-01 : f32
    %323 = vector.broadcast %cst_135 : f32 to vector<1x128xf32>
    %324 = arith.addf %323, %322 : vector<1x128xf32>
    %cst_136 = arith.constant 0.000000e+00 : f32
    %325 = vector.broadcast %cst_136 : f32 to vector<1x64xf32>
    %326 = vector.extract_strided_slice %307 {offsets = [0, 0], sizes = [1, 64], strides = [1, 1]} : vector<1x128xf32> to vector<1x64xf32>
    %327 = vector.extract_strided_slice %324 {offsets = [0, 0], sizes = [1, 64], strides = [1, 1]} : vector<1x128xf32> to vector<1x64xf32>
    %328 = tpu.concatenate %326, %327 in 1 : vector<1x64xf32>, vector<1x64xf32> -> vector<1x128xf32>
    %c0_137 = arith.constant 0 : index
    %c0_138 = arith.constant 0 : index
    %c0_139 = arith.constant 0 : index
    %329 = vector.load %arg7[%c0_137, %c0_138, %c0_139] : memref<2x1x256xf32, #tpu.memory_space<vmem>>, vector<1x1x128xf32>
    %330 = vector.shape_cast %329 : vector<1x1x128xf32> to vector<1x128xf32>
    %331 = vector.shape_cast %328 : vector<1x128xf32> to vector<1x1x128xf32>
    tpu.vector_store %arg7[%c0_137, %c0_138, %c0_139], %331 {strides = array<i32>} : memref<2x1x256xf32, #tpu.memory_space<vmem>>, vector<1x1x128xf32>,
    %332 = vector.extract_strided_slice %73 {offsets = [0, 0], sizes = [1, 32], strides = [1, 1]} : vector<2x32xf32> to vector<1x32xf32>
    %333 = vector.extract_strided_slice %87 {offsets = [0, 0], sizes = [1, 32], strides = [1, 1]} : vector<2x32xf32> to vector<1x32xf32>
    %334 = tpu.concatenate %332, %333, %325 in 1 : vector<1x32xf32>, vector<1x32xf32>, vector<1x64xf32> -> vector<1x128xf32>
    %c0_140 = arith.constant 0 : index
    %c0_141 = arith.constant 0 : index
    %c128_142 = arith.constant 128 : index
    %335 = vector.load %arg7[%c0_140, %c0_141, %c128_142] : memref<2x1x256xf32, #tpu.memory_space<vmem>>, vector<1x1x128xf32>
    %336 = vector.shape_cast %335 : vector<1x1x128xf32> to vector<1x128xf32>
    %337 = vector.shape_cast %334 : vector<1x128xf32> to vector<1x1x128xf32>
    tpu.vector_store %arg7[%c0_140, %c0_141, %c128_142], %337 {strides = array<i32>} : memref<2x1x256xf32, #tpu.memory_space<vmem>>, vector<1x1x128xf32>,
    %338 = vector.extract_strided_slice %307 {offsets = [0, 64], sizes = [1, 64], strides = [1, 1]} : vector<1x128xf32> to vector<1x64xf32>
    %339 = vector.extract_strided_slice %324 {offsets = [0, 64], sizes = [1, 64], strides = [1, 1]} : vector<1x128xf32> to vector<1x64xf32>
    %340 = tpu.concatenate %338, %339 in 1 : vector<1x64xf32>, vector<1x64xf32> -> vector<1x128xf32>
    %c1_143 = arith.constant 1 : index
    %c0_144 = arith.constant 0 : index
    %c0_145 = arith.constant 0 : index
    %341 = vector.load %arg7[%c1_143, %c0_144, %c0_145] : memref<2x1x256xf32, #tpu.memory_space<vmem>>, vector<1x1x128xf32>
    %342 = vector.shape_cast %341 : vector<1x1x128xf32> to vector<1x128xf32>
    %343 = vector.shape_cast %340 : vector<1x128xf32> to vector<1x1x128xf32>
    tpu.vector_store %arg7[%c1_143, %c0_144, %c0_145], %343 {strides = array<i32>} : memref<2x1x256xf32, #tpu.memory_space<vmem>>, vector<1x1x128xf32>,
    %344 = vector.extract_strided_slice %73 {offsets = [1, 0], sizes = [1, 32], strides = [1, 1]} : vector<2x32xf32> to vector<1x32xf32>
    %345 = vector.extract_strided_slice %87 {offsets = [1, 0], sizes = [1, 32], strides = [1, 1]} : vector<2x32xf32> to vector<1x32xf32>
    %346 = tpu.concatenate %344, %345, %325 in 1 : vector<1x32xf32>, vector<1x32xf32>, vector<1x64xf32> -> vector<1x128xf32>
    %c1_146 = arith.constant 1 : index
    %c0_147 = arith.constant 0 : index
    %c128_148 = arith.constant 128 : index
    %347 = vector.load %arg7[%c1_146, %c0_147, %c128_148] : memref<2x1x256xf32, #tpu.memory_space<vmem>>, vector<1x1x128xf32>
    %348 = vector.shape_cast %347 : vector<1x1x128xf32> to vector<1x128xf32>
    %349 = vector.shape_cast %346 : vector<1x128xf32> to vector<1x1x128xf32>
    tpu.vector_store %arg7[%c1_146, %c0_147, %c128_148], %349 {strides = array<i32>} : memref<2x1x256xf32, #tpu.memory_space<vmem>>, vector<1x1x128xf32>,
    return
  }
  func.func @transform_0(%arg0: i32) -> (i32, i32, i32) {
    %c0_i32 = arith.constant 0 : i32
    %c0_i32_0 = arith.constant 0 : i32
    %c0_i32_1 = arith.constant 0 : i32
    return %arg0, %c0_i32, %c0_i32_0 : i32, i32, i32
  }
  func.func @transform_1(%arg0: i32) -> (i32, i32, i32) {
    %c0_i32 = arith.constant 0 : i32
    %c0_i32_0 = arith.constant 0 : i32
    %c0_i32_1 = arith.constant 0 : i32
    return %arg0, %c0_i32, %c0_i32_0 : i32, i32, i32
  }
  func.func @transform_2(%arg0: i32) -> (i32, i32) {
    %c0_i32 = arith.constant 0 : i32
    %c0_i32_0 = arith.constant 0 : i32
    %c0_i32_1 = arith.constant 0 : i32
    return %c0_i32, %c0_i32_0 : i32, i32
  }
  func.func @transform_3(%arg0: i32) -> (i32, i32) {
    %c0_i32 = arith.constant 0 : i32
    %c0_i32_0 = arith.constant 0 : i32
    %c0_i32_1 = arith.constant 0 : i32
    return %c0_i32, %c0_i32_0 : i32, i32
  }
  func.func @transform_4(%arg0: i32) -> (i32, i32) {
    %c0_i32 = arith.constant 0 : i32
    %c0_i32_0 = arith.constant 0 : i32
    %c0_i32_1 = arith.constant 0 : i32
    return %c0_i32, %c0_i32_0 : i32, i32
  }
  func.func @transform_5(%arg0: i32) -> (i32, i32) {
    %c0_i32 = arith.constant 0 : i32
    %c0_i32_0 = arith.constant 0 : i32
    %c0_i32_1 = arith.constant 0 : i32
    return %c0_i32, %c0_i32_0 : i32, i32
  }
  func.func @transform_6(%arg0: i32) -> (i32, i32, i32) {
    %c0_i32 = arith.constant 0 : i32
    %c0_i32_0 = arith.constant 0 : i32
    %c0_i32_1 = arith.constant 0 : i32
    return %arg0, %c0_i32, %c0_i32_0 : i32, i32, i32
  }
}

</mosaic_0001>

<bundles_post_ra>
// kernel: np_forward.1
= control target key start
LH: loop header
LB: loop body
LE: loop exit
PB: predicated region body
PF: predicated region fallthrough
CT: control target
= control target key end

     0   :  { %11 = vsyncpa [#allocation3], 0  ;;  %s9026_s21 = smov 0   ;;  %s10704_s0 = inlined_call_operand.vmem [shape: f32[4,16,4], index: 0, kind: input, shape index: {}]   ;;  %s10705_s1 = inlined_call_operand.vmem [shape: f32[4,1,32], index: 1, kind: input, shape index: {}]   ;;  %s10706_s2 = inlined_call_operand.vmem [shape: f32[8,128], index: 2, kind: input, shape index: {}]   ;;  %s10707_s3 = inlined_call_operand.hbm [shape: f32[32,384], index: 3, kind: input, shape index: {}]   ;;  %s10708_s4 = inlined_call_operand.vmem [shape: f32[64,256], index: 4, kind: input, shape index: {}]   ;;  %s10709_s5 = inlined_call_operand.vmem [shape: f32[1,640], index: 5, kind: input, shape index: {}]   ;;  %s10710_s6 = inlined_call_operand.vmem [shape: f32[4,1,256], index: 6, kind: output, shape index: {}]  }
   0x1 LB: > { %s7140_s22 = sadd.s32 4294967295, %s8967_s21   ;;  %p7142_p0 = scmp.ge.s32.totalorder %s8967_s21, 1  ;;  %s8967_s21 = sphi %s9026_s21, %s17_s21  }
   0x2   : > { %p184_p1 = scmp.lt.s32.totalorder %s8967_s21, 3  ;;  %s8969_s23 = smov [#allocation2]  }
   0x3   : > { %s199_s24 = sshll.u32 %s8969_s23, 4  ;;  %p9038_p3 = scmp.eq.s32.totalorder %s7140_s22, 0  ;;  %s200_s24 = int_to_ptr.vmem [resolvable:$true] %s199_s24 }
   0x4   : > { %p9034_p2 = pnand %p7142_p0, %p184_p1  ;;  %s8942_s27 = scalar_lea.vmem %s200_s24, 1536 }
   0x5   : > { %p8943_p7 = scmp.ne.s32.totalorder %s200_s24, %s8942_s27  ;;  %p8950_p10 = scmp.lt.s32.totalorder %s200_s24, %s200_s24 }
   0x6   : > { %p8603_p4 = pneg %p9034_p2  ;;  %p8951_p11 = scmp.lt.s32.totalorder %s8942_s27, %s8942_s27 }
   0x8   : > { %p8604_p5 = pnand %p9038_p3, %p8603_p4  ;;  %p8952_p12 = por %p8951_p11, %p8950_p10 }
   0xa   : > { %p8933_p6 = pneg %p8604_p5 }
   0xc   : > { %p8945_p8 = pnand %p8943_p7, %p8933_p6 }
   0xe   : > { %p8946_p9 = pneg %p8945_p8 }
  0x10   : > { %p8953_p13 = pnand %p8952_p12, %p8946_p9 }
  0x12   : > { %8956 = shalt.err (!%p8953_p13)
}
  0x13   : > { %s8970_s28 = smov 384   ;;  %s8971_s29 = smov 24  }
  0x14   : > { %8606 = dma.hbm_to_vmem [thread:$0]  (!%p8604_p5), %s10707_s3, 1536, %s200_s24, [#allocation3], %s8970_s28, %s8970_s28, %s8971_s29  }
  0x15   : > { %239 = sbr.rel (%p9034_p2) target bundleno = 7560 (0x1d88), region = 44 }
  0x1a   : > { %8962 = dma.done.wait (%p9038_p3), [#allocation3], 1536  }
  0x1b   : > { %8964 = vsyncadd (%p9038_p3), [#allocation3], 4294965760  ;;  %s7147_s8 = sshll.u32 %s7140_s22, 1  ;;  %vm354_vm0 = vcmask 1043456   ;;  %vm341_vm1 = vcmask 31744   ;;  %v301_v4 = vld [vmem:[%s10708_s4 + $0x70] sm:$0xff] }
  0x1c   : > { %p275_p0 = scmp.lt.s32.totalorder %s7147_s8, 3  ;;  %v292_v0 = vld [vmem:[%s10706_s2] sm:$0xf]  ;;  %v299_v7 = vld [vmem:[%s10708_s4 + $0x50] sm:$0xff]  ;;  %vm450_vm2 = vcmask 523264   ;;  %s8973_s16 = smov 96  }
  0x1d   : > { %7910 = vmatprep.subr.msk.mxu0 %vm354_vm0, %v292_v0  ;;  %v300_v5 = vld [vmem:[%s10708_s4 + $0x60] sm:$0xff]  ;;  %v297_v9 = vld [vmem:[%s10708_s4 + $0x30] sm:$0xff]  ;;  %v313_v37 = vld [vmem:[#allocation2 + $0x48] sm:$0xff]  ;;  %s8974_s19 = smov 32   ;;  %v10711_v54 = vmov 0.0   ;;  %vm8976_vm3 = vmmov 0  }
  0x1e   : > { %s10781_s8 = smov (!%p275_p0, %s7147_s8), 3  ;;  %7911 = vmatpush3.msk.msra.mxu0 %vm354_vm0, %v292_v0  ;;  %v298_v8 = vld [vmem:[%s10708_s4 + $0x40] sm:$0xff]  ;;  %v295_v11 = vld [vmem:[%s10708_s4 + $0x10] sm:$0xff]  ;;  %v311_v40 = vld [vmem:[#allocation2 + $0x18] sm:$0xff]  ;;  %7962 = vmatprep.subr.mxu1 %v10711_v54  ;;  %vm953_vm4 = vcmask 1041408   ;;  %vm691_vm5 = vcmask 261120  }
  0x1f   : > { %s7494_s9 = sshll.u32 %s10781_s8, 4  ;;  %7918 = vmatprep.subr.mxu0 %v301_v4  ;;  %v296_v10 = vld [vmem:[%s10708_s4 + $0x20] sm:$0xff]  ;;  %v312_v38 = vld [vmem:[#allocation2 + $0x30] sm:$0xff]  ;;  %7970 = vmatprep.mubr.msk.f32.mxu1 %vm8976_vm3, %v10711_v54  ;;  %vm713_vm6 = vcmask 1040384   ;;  %vm944_vm7 = vcmask 15360   ;;  %vm1304_vm8 = vcmask 130048   ;;  %s284_s10 = scalar_lea.vmem %s10705_s1, %s10781_s8 }
  0x20   : > { %s279_s12 = scalar_lea.vmem %s10704_s0, %s7494_s9  ;;  %v294_v12 = vld [vmem:[%s10708_s4] sm:$0xff]  ;;  %s8972_s9 = smov 64   ;;  %7963 = vmatpush3.msra.mxu1 %v313_v37  ;;  %vm1522_vm9 = vcmask 64512   ;;  %vm3383_vm11 = vcmask 195584  }
  0x21   : > { %v9064_v1 = vld [vmem:[%s279_s12] sm:$0xff]  ;;  %v9066_v2 = vld [vmem:[%s279_s12 + $0x8] sm:$0xff]  ;;  %v9070_v3 = vld [vmem:[%s279_s12 + $0x10] sm:$0xff]  ;;  %580 = vrot.lane.b32.xlu0 %v301_v4, %s8972_s9  ;;  %7964 = vmatprep.subr.mxu1 %v10711_v54  ;;  %s8977_s15 = smov 88   ;;  %s8978_s17 = smov 126  }
  0x22   : > { %7912 = vmatprep.mubr.msk.f32.mxu0 %vm341_vm1, %v9064_v1  ;;  %v9082_v6 = vld [vmem:[%s279_s12 + $0x18] sm:$0xff]  ;;  %576 = vrot.lane.b32.xlu1 %v299_v7, %s8972_s9  ;;  %v7155_v13 = vld [vmem:[%s10709_s5] ss:$0 sm:$0xff]  ;;  %v9126_v36 = vld [vmem:[%s10709_s5 + $0x2] ss:$0 sm:$0xff]  ;;  %s8979_s18 = smov 120  }
  0x23   : > { %7913 = vmatmul.mubr.msk.f32.vlgmr.msra.gmra.mxu0 %vm341_vm1, %v9066_v2  ;;  %v293_v35 = vld [vmem:[%s10706_s2] sm:$0x3]  ;;  %7965 = vmatpush3.msra.mxu1 %v312_v38  ;;  %s8980_s20 = smov 124   ;;  %s8981_s22 = smov 112  }
  0x24   : > { %7915 = vmatprep.mubr.msk.f32.mxu0 %vm341_vm1, %v9070_v3  ;;  %7919 = vmatpush3.msra.mxu0 %v301_v4  ;;  %v9136_v39 = vld [vmem:[%s10709_s5 + $0x1] ss:$0 sm:$0xff]  ;;  %s8982_s23 = smov 122   ;;  %s8983_s27 = smov 104  }
  0x25   : > { %7920 = vmatprep.subr.mxu0 %v300_v5  ;;  %578 = vrot.lane.b32.xlu0 %v300_v5, %s8972_s9  ;;  %v310_v41 = vld [vmem:[#allocation2] sm:$0xff]  ;;  %s8984_s28 = smov 72   ;;  %s8985_s7 = smov 56  }
  0x26   : > { %7921 = vmatpush3.msra.mxu0 %v300_v5  ;;  %574 = vrot.lane.b32.xlu1 %v298_v8, %s8972_s9  ;;  %s8987_s24 = smov 24  }
  0x27   : > { %7916 = vmatmul.mubr.msk.f32.gmra.mxu0 %vm341_vm1, %v9082_v6  ;;  %7922 = vmatprep.subr.mxu0 %v299_v7 }
  0x28   : > { %7923 = vmatpush3.msra.mxu0 %v299_v7  ;;  %7966 = vmatprep.subr.mxu1 %v10711_v54 }
  0x29   : > { %7924 = vmatprep.subr.mxu0 %v298_v8  ;;  %572 = vrot.lane.b32.xlu0 %v297_v9, %s8972_s9 }
  0x2a   : > { %7925 = vmatpush3.msra.mxu0 %v298_v8  ;;  %570 = vrot.lane.b32.xlu1 %v296_v10, %s8972_s9 }
  0x2b   : > { %7926 = vmatprep.subr.mxu0 %v297_v9  ;;  %7967 = vmatpush3.msra.mxu1 %v311_v40 }
  0x2c   : > { %7927 = vmatpush3.msra.mxu0 %v297_v9  ;;  %7968 = vmatprep.subr.mxu1 %v10711_v54 }
  0x2d   : > { %7928 = vmatprep.subr.mxu0 %v296_v10  ;;  %447 = vrot.lane.b32.xlu0 %v7155_v13, %s8972_s9 }
  0x2e   : > { %7929 = vmatpush3.msra.mxu0 %v296_v10  ;;  %568 = vrot.lane.b32.xlu1 %v295_v11, %s8972_s9 }
  0x2f   : > { %7930 = vmatprep.subr.mxu0 %v295_v11  ;;  %7969 = vmatpush3.msra.mxu1 %v310_v41 }
  0x30   : > { %7931 = vmatpush3.msra.mxu0 %v295_v11 }
  0x31   : > { %7932 = vmatprep.subr.mxu0 %v294_v12  ;;  %566 = vrot.lane.b32.xlu0 %v294_v12, %s8972_s9 }
  0x32   : > { %7933 = vmatpush3.msra.mxu0 %v294_v12  ;;  %939 = vrot.lane.b32.xlu1 %v293_v35, %s8972_s9 }
  0x35   : > { %941 = vrot.lane.b32.xlu0 %v9126_v36, %s8973_s16 }
  0x36   : > { %811 = vrot.lane.b32.xlu1 %v313_v37, %s8973_s16 }
  0x39   : > { %809 = vrot.lane.b32.xlu0 %v312_v38, %s8973_s16 }
  0x3a   : > { %715 = vrot.lane.b32.xlu1 %v9136_v39, %s8972_s9 }
  0x3d   : > { %807 = vrot.lane.b32.xlu0 %v311_v40, %s8973_s16 }
  0x3e   : > { %805 = vrot.lane.b32.xlu1 %v310_v41, %s8973_s16 }
  0x41   : > { %1059 = vrot.lane.b32.xlu0 %v313_v37, %s8974_s19  ;;  %v9198_v37 = vld [vmem:[%s10708_s4 + $0x8] sm:$0xff] }
  0x42   : > { %1057 = vrot.lane.b32.xlu1 %v312_v38, %s8974_s19 }
  0x45   : > { %1055 = vrot.lane.b32.xlu0 %v311_v40, %s8974_s19 }
  0x46   : > { %1053 = vrot.lane.b32.xlu1 %v310_v41, %s8974_s19 }
  0x93   : > { %v581_v14 = vpop.permute.xlu0 %580 }
  0x94   : > { %7940 = vmatprep.subr.mxu0 %v581_v14  ;;  %v577_v19 = vpop.permute.xlu1 %576 }
  0x97   : > { %v579_v26 = vpop.permute.xlu0 %578 }
  0x98   : > { %v575_v28 = vpop.permute.xlu1 %574 }
  0x9b   : > { %v573_v30 = vpop.permute.xlu0 %572 }
  0x9c   : > { %v571_v31 = vpop.permute.xlu1 %570 }
  0x9f   : > { %v448_v32 = vpop.permute.xlu0 %447 }
  0xa0   : > { %v569_v33 = vpop.permute.xlu1 %568 }
  0xa3   : > { %v567_v34 = vpop.permute.xlu0 %566 }
  0xa4   : > { %v940_v55 = vpop.permute.xlu1 %939 }
  0xa5   : > { %7984 = vmatprep.subr.msk.mxu1 %vm953_vm4, %v940_v55 }
  0xa7   : > { %v9160_v57 = vpop.permute.xlu0 %941 }
  0xa8   : > { %v812_v56 = vpop.permute.xlu1 %811 }
  0xab   : > { %v810_v59 = vpop.permute.xlu0 %809 }
  0xac   : > { %v716_v58 = vpop.permute.xlu1 %715 }
  0xaf   : > { %v808_v60 = vpop.permute.xlu0 %807 }
  0xb0   : > { %v806_v61 = vpop.permute.xlu1 %805 }
  0xb3   : > { %v1060_v62 = vpop.permute.xlu0 %1059 }
  0xb7   : > { %v1056_v38 = vpop.permute.xlu0 %1055 }
  0xe3   : > { %v7914_v15 = vpop.f32.mrf.mxu0 }
  0xe4   : > { %v430_v16 = vadd.f32 %v7914_v15, %v7155_v13 }
  0xe5   : > { %v424_v17 = vpop.f32.mrf.mxu0 }
  0xe6   : > { %v425_v18 = vadd.f32 %v7155_v13, %v424_v17  ;;  %v444_v22 = vmax.f32 %v430_v16, 0.0 }
  0xe7   : > { %v7917_v20 = vpop.f32.mrf.mxu0 }
  0xe8   : > { %v443_v21 = vmax.f32 %v425_v18, 0.0  ;;  %v440_v23 = vadd.f32 %v7917_v20, %v7155_v13 }
  0xe9   : > { %v434_v24 = vpop.f32.mrf.mxu0 }
  0xea   : > { %v435_v25 = vadd.f32 %v7155_v13, %v434_v24  ;;  %7934 = vmatprep.mubr.msk.f32.mxu0 %vm450_vm2, %v443_v21  ;;  %v446_v29 = vmax.f32 %v440_v23, 0.0 }
  0xeb   : > { %7935 = vmatmul.mubr.msk.f32.vlgmr.msra.gmra.mxu0 %vm450_vm2, %v444_v22 }
  0xec   : > { %v445_v27 = vmax.f32 %v435_v25, 0.0  ;;  %7941 = vmatpush3.msra.mxu0 %v581_v14 }
  0xed   : > { %7942 = vmatprep.subr.mxu0 %v579_v26 }
  0xee   : > { %7937 = vmatprep.mubr.msk.f32.mxu0 %vm450_vm2, %v445_v27  ;;  %7943 = vmatpush3.msra.mxu0 %v579_v26 }
  0xef   : > { %7938 = vmatmul.mubr.msk.f32.gmra.mxu0 %vm450_vm2, %v446_v29  ;;  %7944 = vmatprep.subr.mxu0 %v577_v19 }
  0xf0   : > { %7945 = vmatpush3.msra.mxu0 %v577_v19 }
  0xf1   : > { %7946 = vmatprep.subr.mxu0 %v575_v28 }
  0xf2   : > { %7947 = vmatpush3.msra.mxu0 %v575_v28 }
  0xf3   : > { %7948 = vmatprep.subr.mxu0 %v573_v30 }
  0xf4   : > { %7949 = vmatpush3.msra.mxu0 %v573_v30 }
  0xf5   : > { %7950 = vmatprep.subr.mxu0 %v571_v31 }
  0xf6   : > { %7951 = vmatpush3.msra.mxu0 %v571_v31 }
  0xf7   : > { %7952 = vmatprep.subr.mxu0 %v569_v33 }
  0xf8   : > { %7953 = vmatpush3.msra.mxu0 %v569_v33 }
  0xf9   : > { %7954 = vmatprep.subr.mxu0 %v567_v34 }
  0xfa   : > { %7955 = vmatpush3.msra.mxu0 %v567_v34 }
  0xfb   : > { %7973 = vmatprep.subr.mxu0 %v10711_v54 }
 0x1ab   : > { %v7936_v42 = vpop.f32.mrf.mxu0 }
 0x1ac   : > { %v535_v43 = vadd.f32 %v7936_v42, %v448_v32 }
 0x1ad   : > { %v529_v44 = vpop.f32.mrf.mxu0 }
 0x1ae   : > { %v530_v45 = vadd.f32 %v529_v44, %v448_v32  ;;  %v549_v48 = vmax.f32 %v535_v43, 0.0 }
 0x1af   : > { %v7939_v46 = vpop.f32.mrf.mxu0 }
 0x1b0   : > { %v548_v47 = vmax.f32 %v530_v45, 0.0  ;;  %v545_v49 = vadd.f32 %v7939_v46, %v448_v32 }
 0x1b1   : > { %v539_v50 = vpop.f32.mrf.mxu0 }
 0x1b2   : > { %v540_v51 = vadd.f32 %v539_v50, %v448_v32  ;;  %7956 = vmatprep.mubr.msk.f32.mxu0 %vm450_vm2, %v548_v47  ;;  %v551_v53 = vmax.f32 %v545_v49, 0.0  ;;  %v9221_v47 = vld [vmem:[%s10708_s4 + $0x18] sm:$0xff]  ;;  %v9241_v50 = vld [vmem:[%s10708_s4 + $0x48] sm:$0xff] }
 0x1b3   : > { %7957 = vmatmul.mubr.msk.f32.vlgmr.msra.gmra.mxu0 %vm450_vm2, %v549_v48  ;;  %v9227_v48 = vld [vmem:[%s10708_s4 + $0x28] sm:$0xff]  ;;  %v9236_v49 = vld [vmem:[%s10708_s4 + $0x38] sm:$0xff] }
 0x1b4   : > { %v550_v52 = vmax.f32 %v540_v51, 0.0  ;;  %7974 = vmatpush3.msra.mxu0 %v812_v56  ;;  %v9250_v51 = vld [vmem:[%s10708_s4 + $0x58] sm:$0xff] }
 0x1b5   : > { %7975 = vmatprep.subr.mxu0 %v10711_v54 }
 0x1b6   : > { %7959 = vmatprep.mubr.msk.f32.mxu0 %vm450_vm2, %v550_v52  ;;  %7976 = vmatpush3.msra.mxu0 %v810_v59  ;;  %v9255_v52 = vld [vmem:[%s10708_s4 + $0x68] sm:$0xff] }
 0x1b7   : > { %7960 = vmatmul.mubr.msk.f32.gmra.mxu0 %vm450_vm2, %v551_v53  ;;  %7977 = vmatprep.subr.mxu0 %v10711_v54  ;;  %v9264_v53 = vld [vmem:[%s10708_s4 + $0x78] sm:$0xff] }
 0x1b8   : > { %7981 = vmatprep.mubr.msk.f32.mxu0 %vm8976_vm3, %v10711_v54  ;;  %7978 = vmatpush3.msra.mxu0 %v808_v60 }
 0x1b9   : > { %7979 = vmatprep.subr.mxu0 %v10711_v54 }
 0x1ba   : > { %7980 = vmatpush3.msra.mxu0 %v806_v61 }
 0x1bb   : > { %7992 = vmatprep.subr.mxu0 %v1060_v62 }
 0x273   : > { %v7958_v63 = vpop.f32.mrf.mxu0 }
 0x274   : > { %v674_v0 = vadd.f32 %v7958_v63, %v9136_v39 }
 0x275   : > { %v668_v4 = vpop.f32.mrf.mxu0 }
 0x276   : > { %v688_v5 = vmax.f32 %v674_v0, 0.0  ;;  %v669_v7 = vadd.f32 %v9136_v39, %v668_v4 }
 0x277   : > { %v7961_v8 = vpop.f32.mrf.mxu0 }
 0x278   : > { %v687_v9 = vmax.f32 %v669_v7, 0.0  ;;  %v9168_v10 = vadd.f32 %v7961_v8, %v9136_v39  ;;  %1047 = vrot.lane.b32.xlu1 %v688_v5, %s8973_s16  ;;  %v693_v12 = vsel %vm691_vm5, %v688_v5, 0.0 }
 0x279   : > { %v678_v11 = vpop.f32.mrf.mxu0 }
 0x27a   : > { %v692_v13 = vsel %vm691_vm5, %v687_v9, 0.0  ;;  %v690_v14 = vmax.f32 %v9168_v10, 0.0  ;;  %v9175_v15 = vadd.f32 %v9136_v39, %v678_v11  ;;  %1045 = vrot.lane.b32.xlu0 %v687_v9, %s8973_s16  ;;  %v1058_v39 = vpop.permute.xlu1 %1057 }
 0x27b   : > { %v694_v16 = vadd.f32 %v693_v12, %v692_v13 }
 0x27c   : > { %v689_v17 = vmax.f32 %v9175_v15, 0.0  ;;  %v704_v19 = vsel %vm691_vm5, %v690_v14, 0.0 }
 0x27d   : > { %v695_v18 = vrot.slane %v694_v16, 4 }
 0x27e   : > { %v703_v20 = vsel %vm691_vm5, %v689_v17, 0.0 }
 0x27f   : > { %v696_v21 = vadd.f32 %v695_v18, %v694_v16  ;;  %v705_v22 = vadd.f32 %v704_v19, %v703_v20 }
 0x281   : > { %v697_v23 = vrot.slane %v696_v21, 2  ;;  %v706_v24 = vrot.slane %v705_v22, 4 }
 0x283   : > { %v698_v25 = vadd.f32 %v697_v23, %v696_v21  ;;  %v707_v26 = vadd.f32 %v706_v24, %v705_v22 }
 0x285   : > { %v708_v27 = vrot.slane %v707_v26, 2  ;;  %v699_v28 = vrot.slane %v698_v25, 1 }
 0x287   : > { %v709_v29 = vadd.f32 %v708_v27, %v707_v26  ;;  %v700_v30 = vadd.f32 %v699_v28, %v698_v25 }
 0x289   : > { %v710_v31 = vrot.slane %v709_v29, 1  ;;  %v702_v33 = vmul.f32 0.0625, %v700_v30 }
 0x28b   : > { %v711_v32 = vadd.f32 %v710_v31, %v709_v29 }
 0x28d   : > { %v712_v34 = vmul.f32 0.0625, %v711_v32 }
 0x28f   : > { %v714_v35 = vsel %vm713_vm6, %v702_v33, %v712_v34 }
 0x290   : > { %7971 = vmatmul.mubr.msk.f32.vlgmr.msra.gmra.mxu1 %vm691_vm5, %v714_v35 }
 0x291   : > { %7985 = vmatpush3.msk.msra.mxu1 %vm953_vm4, %v940_v55  ;;  %7986 = vmatprep.mubr.msk.f32.mxu1 %vm944_vm7, %v9064_v1 }
 0x294   : > { %7987 = vmatmul.mubr.msk.f32.vlgmr.msra.gmra.mxu1 %vm944_vm7, %v9066_v2 }
 0x295   : > { %7989 = vmatprep.mubr.msk.f32.mxu1 %vm944_vm7, %v9070_v3 }
 0x298   : > { %7990 = vmatmul.mubr.msk.f32.gmra.mxu1 %vm944_vm7, %v9082_v6  ;;  %v1054_v6 = vpop.permute.xlu1 %1053 }
 0x299   : > { %8010 = vmatprep.mubr.msk.f32.mxu1 %vm944_vm7, %v9198_v37 }
 0x2ea   : > { %v1048_v46 = vpop.permute.xlu1 %1047 }
 0x2ec   : > { %v1046_v43 = vpop.permute.xlu0 %1045 }
 0x350   : > { %v787_v1 = vpop.f32.mrf.mxu1 }
 0x351   : > { %v788_v40 = vadd.f32 %v787_v1, %v716_v58 }
 0x352   : > { %v7972_v41 = vpop.f32.mrf.mxu1 }
 0x353   : > { %v791_v2 = vmax.f32 %v788_v40, 0.0 }
 0x354   : > { %v7988_v42 = vpop.f32.mrf.mxu1 }
 0x355   : > { %v9203_v3 = vadd.f32 %v7988_v42, %v9160_v57  ;;  %7982 = vmatmul.mubr.msk.f32.vlgmr.msra.gmra.mxu0 %vm691_vm5, %v791_v2 }
 0x356   : > { %7993 = vmatpush3.msra.mxu0 %v1060_v62  ;;  %v1022_v44 = vpop.f32.mrf.mxu1  ;;  %8000 = vmatprep.mubr.msk.f32.mxu0 %vm691_vm5, %v1046_v43 }
 0x357   : > { %v9208_v45 = vadd.f32 %v1022_v44, %v9160_v57  ;;  %7994 = vmatprep.subr.mxu0 %v1058_v39  ;;  %8006 = vmatprep.subr.msk.mxu1 %vm944_vm7, %v9203_v3 }
 0x358   : > { %7995 = vmatpush3.msra.mxu0 %v1058_v39  ;;  %8007 = vmatpush3.xpose.msk.msra.mxu1 %vm944_vm7, %v9203_v3  ;;  %v9270_v58 = vpop.f32.mrf.mxu1 }
 0x359   : > { %7996 = vmatprep.subr.mxu0 %v1056_v38  ;;  %8008 = vmatprep.subr.msk.mxu1 %vm944_vm7, %v9208_v45 }
 0x35a   : > { %7997 = vmatpush3.msra.mxu0 %v1056_v38  ;;  %v9272_v59 = vpop.f32.mrf.mxu1 }
 0x35b   : > { %7998 = vmatprep.subr.mxu0 %v1054_v6 }
 0x35c   : > { %7999 = vmatpush3.msra.mxu0 %v1054_v6  ;;  %8009 = vmatpush3.xpose.msk.msra.mxu1 %vm944_vm7, %v9208_v45 }
 0x35d   : > { %8001 = vmatmul.mubr.msk.f32.vlgmr.msra.gmra.mxu0 %vm691_vm5, %v1048_v46 }
 0x35f   : > { %8011 = vmatmul.mubr.msk.f32.vlgmr.msra.gmra.mxu1 %vm944_vm7, %v9221_v47 }
 0x360   : > { %8013 = vmatprep.mubr.msk.f32.mxu1 %vm944_vm7, %v9227_v48 }
 0x363   : > { %8014 = vmatmul.mubr.msk.f32.gmra.mxu1 %vm944_vm7, %v9236_v49 }
 0x364   : > { %8016 = vmatprep.mubr.msk.f32.mxu1 %vm944_vm7, %v9241_v50 }
 0x367   : > { %8017 = vmatmul.mubr.msk.f32.gmra.mxu1 %vm944_vm7, %v9250_v51 }
 0x368   : > { %8019 = vmatprep.mubr.msk.f32.mxu1 %vm944_vm7, %v9255_v52 }
 0x36b   : > { %8020 = vmatmul.mubr.msk.f32.gmra.mxu1 %vm944_vm7, %v9264_v53 }
 0x415   : > { %v9268_v55 = vpop.f32.mrf.mxu0 }
 0x416   : > { %10735 = vst [vmem:[#allocation5_spill] sm:$0xff] %v9268_v55 }
 0x417   : > { %v7983_v56 = vpop.f32.mrf.mxu0 }
 0x41d   : > { %v8002_v38 = vpop.f32.mrf.mxu0 }
 0x41f   : > { %v8012_v60 = vpop.f32.mrf.mxu1  ;;  %v1142_v43 = vpop.f32.mrf.mxu0 }
 0x420   : > { %v1297_v61 = vmul.f32 0.70710677, %v8012_v60 }
 0x421   : > { %v1257_v62 = vpop.f32.mrf.mxu1 }
 0x422   : > { %v1296_v63 = vmul.f32 0.70710677, %v1257_v62  ;;  %v1308_v0 = vsel %vm1304_vm8, %v1297_v61, -inf }
 0x423   : > { %1309 = vmax.xlane.f32.xlu1 %v1308_v0  ;;  %v8015_v4 = vpop.f32.mrf.mxu1 }
 0x424   : > { %v1305_v5 = vsel %vm1304_vm8, %v1296_v63, -inf  ;;  %v1299_v11 = vmul.f32 0.70710677, %v8015_v4 }
 0x425   : > { %1306 = vmax.xlane.f32.xlu0 %v1305_v5  ;;  %v1267_v7 = vpop.f32.mrf.mxu1 }
 0x426   : > { %v1298_v8 = vmul.f32 0.70710677, %v1267_v7  ;;  %v1314_v20 = vsel %vm1304_vm8, %v1299_v11, -inf }
 0x427   : > { %v8018_v9 = vpop.f32.mrf.mxu1 }
 0x428   : > { %v1311_v12 = vsel %vm1304_vm8, %v1298_v8, -inf  ;;  %v1301_v19 = vmul.f32 0.70710677, %v8018_v9 }
 0x429   : > { %1312 = vmax.xlane.f32.xlu0 %v1311_v12  ;;  %v1277_v13 = vpop.f32.mrf.mxu1 }
 0x42a   : > { %v1300_v16 = vmul.f32 0.70710677, %v1277_v13  ;;  %v1320_v23 = vsel %vm1304_vm8, %v1301_v19, -inf }
 0x42b   : > { %v8021_v18 = vpop.f32.mrf.mxu1 }
 0x42c   : > { %v1317_v21 = vsel %vm1304_vm8, %v1300_v16, -inf  ;;  %v1303_v22 = vmul.f32 0.70710677, %v8021_v18 }
 0x42d   : > { %1315 = vmax.xlane.f32.xlu0 %v1314_v20  ;;  %1318 = vmax.xlane.f32.xlu1 %v1317_v21  ;;  %v1287_v25 = vpop.f32.mrf.mxu1 }
 0x42e   : > { %v1326_v24 = vsel %vm1304_vm8, %v1303_v22, -inf  ;;  %v9289_v26 = vmul.f32 0.70710677, %v1287_v25 }
 0x430   : > { %v1323_v27 = vsel %vm1304_vm8, %v9289_v26, -inf }
 0x431   : > { %1321 = vmax.xlane.f32.xlu0 %v1320_v23 }
 0x435   : > { %1327 = vmax.xlane.f32.xlu0 %v1326_v24 }
 0x43e   : > { %1065 = vrot.lane.b32.xlu1 %v9126_v36, %s8977_s15 }
 0x442   : > { %1051 = vrot.lane.b32.xlu1 %v690_v14, %s8973_s16 }
 0x44b   : > { %1049 = vrot.lane.b32.xlu0 %v689_v17, %s8973_s16 }
 0x466   : > { %1324 = vmax.xlane.f32.xlu1 %v1323_v27 }
 0x477   : > { %1711 = vrot.lane.b32.xlu1 %v9203_v3, %s8978_s17 }
 0x4ac   : > { %v1310_v36 = vpop.xlane.xlu1 %1309 }
 0x4ad   : > { %v1330_v28 = vsub.f32 %v1297_v61, %v1310_v36 }
 0x4ae   : > { %v1307_v29 = vpop.xlane.xlu0 %1306 }
 0x4af   : > { %v1339_v10 = vmul.f32 1.442695, %v1330_v28  ;;  %v1329_v14 = vsub.f32 %v1296_v63, %v1307_v29 }
 0x4b1   : > { %8641 = vpow2.f32 %v1339_v10  ;;  %v1337_v30 = vmul.f32 1.442695, %v1329_v14 }
 0x4b2   : > { %v1313_v15 = vpop.xlane.xlu0 %1312 }
 0x4b3   : > { %8643 = vpow2.f32 %v1337_v30  ;;  %v1331_v17 = vsub.f32 %v1298_v8, %v1313_v15 }
 0x4b5   : > { %v1341_v31 = vmul.f32 1.442695, %v1331_v17 }
 0x4b6   : > { %v1316_v32 = vpop.xlane.xlu0 %1315  ;;  %v1319_v33 = vpop.xlane.xlu1 %1318 }
 0x4b7   : > { %8645 = vpow2.f32 %v1341_v31  ;;  %v1332_v34 = vsub.f32 %v1299_v11, %v1316_v32  ;;  %v1333_v35 = vsub.f32 %v1300_v16, %v1319_v33 }
 0x4b9   : > { %v1343_v39 = vmul.f32 1.442695, %v1332_v34  ;;  %v1345_v1 = vmul.f32 1.442695, %v1333_v35 }
 0x4ba   : > { %v1322_v40 = vpop.xlane.xlu0 %1321  ;;  %v9295_v41 = vpop.permute.xlu1 %1065 }
 0x4bb   : > { %8647 = vpow2.f32 %v1343_v39  ;;  %v1334_v2 = vsub.f32 %v1301_v19, %v1322_v40  ;;  %v9298_v42 = vadd.f32 %v8002_v38, %v9295_v41  ;;  %v9301_v44 = vadd.f32 %v1142_v43, %v9295_v41 }
 0x4bc   : > { %8649 = vpow2.f32 %v1345_v1 }
 0x4bd   : > { %v1347_v6 = vmul.f32 1.442695, %v1334_v2  ;;  %8022 = vmatprep.subr.mxu0 %v9298_v42 }
 0x4be   : > { %v9304_v46 = vpop.eup %8641  ;;  %8023 = vmatpush3.msra.mxu0 %v9298_v42  ;;  %v1328_v56 = vpop.xlane.xlu0 %1327 }
 0x4bf   : > { %8651 = vpow2.f32 %v1347_v6  ;;  %v1336_v60 = vsub.f32 %v1303_v22, %v1328_v56  ;;  %8024 = vmatprep.subr.mxu0 %v9301_v44  ;;  %v1356_v61 = vsel %vm1304_vm8, %v9304_v46, 0.0  ;;  %v1052_v5 = vpop.permute.xlu1 %1051 }
 0x4c0   : > { %v8644_v62 = vpop.eup %8643  ;;  %8025 = vmatpush3.msra.mxu0 %v9301_v44  ;;  %1357 = vadd.xlane.f32.xlu0 %v1356_v61 }
 0x4c1   : > { %v1351_v63 = vmul.f32 1.442695, %v1336_v60  ;;  %v1353_v0 = vsel %vm1304_vm8, %v8644_v62, 0.0 }
 0x4c2   : > { %v1050_v4 = vpop.permute.xlu0 %1049  ;;  %1354 = vadd.xlane.f32.xlu1 %v1353_v0 }
 0x4c3   : > { %8653 = vpow2.f32 %v1351_v63  ;;  %8003 = vmatprep.mubr.msk.f32.mxu0 %vm691_vm5, %v1050_v4 }
 0x4c4   : > { %v8646_v7 = vpop.eup %8645  ;;  %8004 = vmatmul.mubr.msk.f32.gmra.mxu0 %vm691_vm5, %v1052_v5  ;;  %v314_v5 = vld [vmem:[#allocation2 + $0x8] sm:$0xff] }
 0x4c5   : > { %v1359_v8 = vsel %vm1304_vm8, %v8646_v7, 0.0  ;;  %8038 = vmatprep.subr.mxu1 %v314_v5 }
 0x4c6   : > { %1360 = vadd.xlane.f32.xlu1 %v1359_v8  ;;  %8039 = vmatpush3.msra.mxu1 %v314_v5 }
 0x4c8   : > { %v8648_v9 = vpop.eup %8647 }
 0x4c9   : > { %v8650_v11 = vpop.eup %8649  ;;  %v1362_v12 = vsel %vm1304_vm8, %v8648_v9, 0.0 }
 0x4ca   : > { %1363 = vadd.xlane.f32.xlu0 %v1362_v12  ;;  %v1365_v13 = vsel %vm1304_vm8, %v8650_v11, 0.0 }
 0x4cb   : > { %1366 = vadd.xlane.f32.xlu1 %v1365_v13 }
 0x4cc   : > { %v8652_v16 = vpop.eup %8651 }
 0x4cd   : > { %v1368_v18 = vsel %vm1304_vm8, %v8652_v16, 0.0 }
 0x4ce   : > { %1369 = vadd.xlane.f32.xlu0 %v1368_v18 }
 0x4d0   : > { %v9318_v19 = vpop.eup %8653 }
 0x4d1   : > { %v1374_v20 = vsel %vm1304_vm8, %v9318_v19, 0.0 }
 0x4d2   : > { %1375 = vadd.xlane.f32.xlu0 %v1374_v20 }
 0x4dc   : > { %1693 = vrot.lane.b32.xlu1 %v9198_v37, %s8978_s17 }
 0x4e8   : > { %1709 = vrot.lane.b32.xlu0 %v9208_v45, %s8978_s17 }
 0x4ec   : > { %1695 = vrot.lane.b32.xlu0 %v9221_v47, %s8978_s17 }
 0x4ef   : > { %v1325_v21 = vpop.xlane.xlu1 %1324 }
 0x4f0   : > { %v1335_v22 = vsub.f32 %v9289_v26, %v1325_v21  ;;  %1699 = vrot.lane.b32.xlu0 %v9236_v49, %s8978_s17 }
 0x4f2   : > { %v1349_v23 = vmul.f32 1.442695, %v1335_v22 }
 0x4f3   : > { %v1712_v24 = vpop.permute.xlu1 %1711 }
 0x4f4   : > { %8655 = vpow2.f32 %v1349_v23  ;;  %8052 = vmatprep.subr.msk.mxu0 %vm944_vm7, %v1712_v24  ;;  %1703 = vrot.lane.b32.xlu0 %v9250_v51, %s8978_s17 }
 0x4f8   : > { %1707 = vrot.lane.b32.xlu0 %v9264_v53, %s8978_s17 }
 0x501   : > { %v8656_v25 = vpop.eup %8655 }
 0x502   : > { %v1371_v27 = vsel %vm1304_vm8, %v8656_v25, 0.0 }
 0x503   : > { %1372 = vadd.xlane.f32.xlu1 %v1371_v27 }
 0x514   : > { %1697 = vrot.lane.b32.xlu1 %v9227_v48, %s8978_s17 }
 0x518   : > { %1701 = vrot.lane.b32.xlu1 %v9241_v50, %s8978_s17 }
 0x51c   : > { %1705 = vrot.lane.b32.xlu1 %v9255_v52, %s8978_s17 }
 0x549   : > { %v1358_v26 = vpop.xlane.xlu0 %1357 }
 0x54a   : > { %8657 = vrcp.f32 %v1358_v26 }
 0x54b   : > { %v1355_v36 = vpop.xlane.xlu1 %1354 }
 0x54c   : > { %8659 = vrcp.f32 %v1355_v36 }
 0x54f   : > { %v1361_v28 = vpop.xlane.xlu1 %1360 }
 0x550   : > { %8661 = vrcp.f32 %v1361_v28 }
 0x553   : > { %v1364_v29 = vpop.xlane.xlu0 %1363 }
 0x554   : > { %8663 = vrcp.f32 %v1364_v29  ;;  %v1367_v10 = vpop.xlane.xlu1 %1366 }
 0x555   : > { %8665 = vrcp.f32 %v1367_v10 }
 0x557   : > { %v1370_v14 = vpop.xlane.xlu0 %1369  ;;  %v8658_v30 = vpop.eup %8657 }
 0x558   : > { %8667 = vrcp.f32 %v1370_v14  ;;  %v1386_v31 = vmul.f32 %v8658_v30, %v9304_v46  ;;  %v9353_v6 = vpop.permute.xlu1 %1693 }
 0x559   : > { %v8660_v15 = vpop.eup %8659 }
 0x55a   : > { %v1385_v17 = vmul.f32 %v8660_v15, %v8644_v62 }
 0x55b   : > { %v1376_v32 = vpop.xlane.xlu0 %1375 }
 0x55c   : > { %8026 = vmatprep.mubr.msk.f32.mxu0 %vm1304_vm8, %v1385_v17  ;;  %8669 = vrcp.f32 %v1376_v32 }
 0x55d   : > { %v8662_v33 = vpop.eup %8661  ;;  %8027 = vmatmul.mubr.msk.f32.vlgmr.msra.gmra.mxu0 %vm1304_vm8, %v1386_v31 }
 0x55e   : > { %8053 = vmatpush3.xpose.msk.msra.mxu0 %vm944_vm7, %v1712_v24  ;;  %v1387_v34 = vmul.f32 %v8662_v33, %v8646_v7 }
 0x55f   : > { %v1710_v35 = vpop.permute.xlu0 %1709 }
 0x560   : > { %8029 = vmatprep.mubr.msk.f32.mxu0 %vm1304_vm8, %v1387_v34  ;;  %8054 = vmatprep.subr.msk.mxu0 %vm944_vm7, %v1710_v35 }
 0x561   : > { %v8664_v38 = vpop.eup %8663 }
 0x562   : > { %v8666_v39 = vpop.eup %8665  ;;  %8055 = vmatpush3.xpose.msk.msra.mxu0 %vm944_vm7, %v1710_v35  ;;  %v1388_v1 = vmul.f32 %v8664_v38, %v8648_v9 }
 0x563   : > { %v1389_v40 = vmul.f32 %v8666_v39, %v8650_v11  ;;  %v9355_v60 = vpop.permute.xlu0 %1695 }
 0x564   : > { %8030 = vmatmul.mubr.msk.f32.gmra.mxu0 %vm1304_vm8, %v1388_v1 }
 0x565   : > { %v8668_v2 = vpop.eup %8667  ;;  %8032 = vmatprep.mubr.msk.f32.mxu0 %vm1304_vm8, %v1389_v40 }
 0x566   : > { %v1390_v43 = vmul.f32 %v8668_v2, %v8652_v16 }
 0x567   : > { %v9364_v4 = vpop.permute.xlu0 %1699 }
 0x568   : > { %8033 = vmatmul.mubr.msk.f32.gmra.mxu0 %vm1304_vm8, %v1390_v43 }
 0x569   : > { %v8670_v56 = vpop.eup %8669 }
 0x56a   : > { %v1392_v63 = vmul.f32 %v8670_v56, %v9318_v19 }
 0x56b   : > { %v9372_v8 = vpop.permute.xlu0 %1703 }
 0x56c   : > { %10737 = vst [vmem:[#allocation7_spill] sm:$0xff] %v9372_v8 }
 0x56f   : > { %v9382_v11 = vpop.permute.xlu0 %1707 }
 0x570   : > { %10739 = vst [vmem:[#allocation9_spill] sm:$0xff] %v9382_v11 }
 0x584   : > { %v9388_v12 = vpop.f32.mrf.mxu0 }
 0x586   : > { %v9390_v13 = vpop.f32.mrf.mxu0 }
 0x58c   : > { %v1373_v46 = vpop.xlane.xlu1 %1372 }
 0x58d   : > { %8671 = vrcp.f32 %v1373_v46 }
 0x590   : > { %v9358_v0 = vpop.permute.xlu1 %1697 }
 0x594   : > { %v9368_v7 = vpop.permute.xlu1 %1701 }
 0x595   : > { %10736 = vst [vmem:[#allocation6_spill] sm:$0xff] %v9368_v7 }
 0x598   : > { %v9378_v9 = vpop.permute.xlu1 %1705 }
 0x599   : > { %10738 = vst [vmem:[#allocation8_spill] sm:$0xff] %v9378_v9 }
 0x59a   : > { %v8672_v61 = vpop.eup %8671 }
 0x59b   : > { %v1391_v62 = vmul.f32 %v8672_v61, %v8656_v25 }
 0x59d   : > { %8035 = vmatprep.mubr.msk.f32.mxu0 %vm1304_vm8, %v1391_v62 }
 0x59e   : > { %8036 = vmatmul.mubr.msk.f32.gmra.mxu0 %vm1304_vm8, %v1392_v63 }
 0x59f   : > { %8056 = vmatprep.mubr.msk.f32.mxu0 %vm944_vm7, %v9353_v6 }
 0x5a2   : > { %8057 = vmatmul.mubr.msk.f32.vlgmr.msra.gmra.mxu0 %vm944_vm7, %v9355_v60 }
 0x5a3   : > { %8059 = vmatprep.mubr.msk.f32.mxu0 %vm944_vm7, %v9358_v0 }
 0x5a6   : > { %8060 = vmatmul.mubr.msk.f32.gmra.mxu0 %vm944_vm7, %v9364_v4 }
 0x5a7   : > { %8062 = vmatprep.mubr.msk.f32.mxu0 %vm944_vm7, %v9368_v7 }
 0x5aa   : > { %8063 = vmatmul.mubr.msk.f32.gmra.mxu0 %vm944_vm7, %v9372_v8 }
 0x5ab   : > { %8065 = vmatprep.mubr.msk.f32.mxu0 %vm944_vm7, %v9378_v9 }
 0x5ae   : > { %8066 = vmatmul.mubr.msk.f32.gmra.mxu0 %vm944_vm7, %v9382_v11 }
 0x61d   : > { %v8028_v16 = vpop.f32.mrf.mxu0 }
 0x61f   : > { %v1483_v18 = vpop.f32.mrf.mxu0 }
 0x620   : > { %8040 = vmatprep.mubr.msk.f32.mxu1 %vm1522_vm9, %v1483_v18 }
 0x621   : > { %8041 = vmatmul.mubr.msk.f32.vlgmr.msra.gmra.mxu1 %vm1522_vm9, %v8028_v16 }
 0x624   : > { %v8031_v19 = vpop.f32.mrf.mxu0 }
 0x626   : > { %v1493_v20 = vpop.f32.mrf.mxu0 }
 0x627   : > { %8043 = vmatprep.mubr.msk.f32.mxu1 %vm1522_vm9, %v1493_v20 }
 0x628   : > { %v8034_v21 = vpop.f32.mrf.mxu0  ;;  %8044 = vmatmul.mubr.msk.f32.gmra.mxu1 %vm1522_vm9, %v8031_v19 }
 0x62a   : > { %v1503_v22 = vpop.f32.mrf.mxu0 }
 0x62b   : > { %8046 = vmatprep.mubr.msk.f32.mxu1 %vm1522_vm9, %v1503_v22 }
 0x62c   : > { %8047 = vmatmul.mubr.msk.f32.gmra.mxu1 %vm1522_vm9, %v8034_v21 }
 0x65e   : > { %v8037_v23 = vpop.f32.mrf.mxu0 }
 0x660   : > { %v1513_v24 = vpop.f32.mrf.mxu0 }
 0x661   : > { %8049 = vmatprep.mubr.msk.f32.mxu1 %vm1522_vm9, %v1513_v24 }
 0x662   : > { %8050 = vmatmul.mubr.msk.f32.gmra.mxu1 %vm1522_vm9, %v8037_v23  ;;  %v8058_v25 = vpop.f32.mrf.mxu0 }
 0x663   : > { %v1839_v27 = vmul.f32 0.70710677, %v8058_v25 }
 0x664   : > { %v1799_v26 = vpop.f32.mrf.mxu0 }
 0x665   : > { %v1838_v36 = vmul.f32 0.70710677, %v1799_v26  ;;  %v1849_v28 = vsel %vm1304_vm8, %v1839_v27, -inf }
 0x666   : > { %1850 = vmax.xlane.f32.xlu0 %v1849_v28  ;;  %v8061_v29 = vpop.f32.mrf.mxu0 }
 0x667   : > { %v1841_v10 = vmul.f32 0.70710677, %v8061_v29  ;;  %v1846_v14 = vsel %vm1304_vm8, %v1838_v36, -inf }
 0x668   : > { %1847 = vmax.xlane.f32.xlu1 %v1846_v14  ;;  %v1809_v30 = vpop.f32.mrf.mxu0 }
 0x669   : > { %v1840_v15 = vmul.f32 0.70710677, %v1809_v30  ;;  %v1855_v32 = vsel %vm1304_vm8, %v1841_v10, -inf }
 0x66a   : > { %v8064_v17 = vpop.f32.mrf.mxu0 }
 0x66b   : > { %v1843_v31 = vmul.f32 0.70710677, %v8064_v17  ;;  %v1852_v33 = vsel %vm1304_vm8, %v1840_v15, -inf }
 0x66c   : > { %1856 = vmax.xlane.f32.xlu1 %v1855_v32  ;;  %1853 = vmax.xlane.f32.xlu0 %v1852_v33  ;;  %v1819_v34 = vpop.f32.mrf.mxu0 }
 0x66d   : > { %v1842_v35 = vmul.f32 0.70710677, %v1819_v34  ;;  %v1861_v1 = vsel %vm1304_vm8, %v1843_v31, -inf }
 0x66e   : > { %v8067_v38 = vpop.f32.mrf.mxu0 }
 0x66f   : > { %v1845_v39 = vmul.f32 0.70710677, %v8067_v38  ;;  %v1858_v40 = vsel %vm1304_vm8, %v1842_v35, -inf }
 0x670   : > { %1862 = vmax.xlane.f32.xlu1 %v1861_v1  ;;  %1859 = vmax.xlane.f32.xlu0 %v1858_v40  ;;  %v1829_v2 = vpop.f32.mrf.mxu0 }
 0x671   : > { %v1844_v43 = vmul.f32 0.70710677, %v1829_v2  ;;  %v1867_v46 = vsel %vm1304_vm8, %v1845_v39, -inf }
 0x673   : > { %v1864_v56 = vsel %vm1304_vm8, %v1844_v43, -inf }
 0x674   : > { %1868 = vmax.xlane.f32.xlu1 %v1867_v46  ;;  %1865 = vmax.xlane.f32.xlu0 %v1864_v56 }
 0x685   : > { %1936 = vrot.lane.b32.xlu1 %v9301_v44, %s8979_s18 }
 0x689   : > { %2258 = vrot.lane.b32.xlu1 %v9203_v3, %s8980_s20 }
 0x68a   : > { %1938 = vrot.lane.b32.xlu0 %v9298_v42, %s8979_s18 }
 0x6ef   : > { %v1851_v61 = vpop.xlane.xlu0 %1850 }
 0x6f0   : > { %v1871_v62 = vsub.f32 %v1839_v27, %v1851_v61 }
 0x6f1   : > { %v1848_v63 = vpop.xlane.xlu1 %1847 }
 0x6f2   : > { %v1880_v5 = vmul.f32 1.442695, %v1871_v62  ;;  %v1870_v16 = vsub.f32 %v1838_v36, %v1848_v63 }
 0x6f4   : > { %8673 = vpow2.f32 %v1880_v5  ;;  %v1878_v18 = vmul.f32 1.442695, %v1870_v16 }
 0x6f5   : > { %v1854_v19 = vpop.xlane.xlu0 %1853  ;;  %v1857_v20 = vpop.xlane.xlu1 %1856 }
 0x6f6   : > { %8675 = vpow2.f32 %v1878_v18  ;;  %v1872_v21 = vsub.f32 %v1840_v15, %v1854_v19  ;;  %v1873_v22 = vsub.f32 %v1841_v10, %v1857_v20 }
 0x6f8   : > { %v1882_v23 = vmul.f32 1.442695, %v1872_v21  ;;  %v1884_v24 = vmul.f32 1.442695, %v1873_v22 }
 0x6f9   : > { %v1860_v25 = vpop.xlane.xlu0 %1859  ;;  %v1863_v26 = vpop.xlane.xlu1 %1862 }
 0x6fa   : > { %8677 = vpow2.f32 %v1882_v23  ;;  %v1874_v28 = vsub.f32 %v1842_v35, %v1860_v25  ;;  %v1875_v29 = vsub.f32 %v1843_v31, %v1863_v26 }
 0x6fb   : > { %8679 = vpow2.f32 %v1884_v24 }
 0x6fc   : > { %v1886_v14 = vmul.f32 1.442695, %v1874_v28  ;;  %v1888_v27 = vmul.f32 1.442695, %v1875_v29 }
 0x6fd   : > { %v1866_v30 = vpop.xlane.xlu0 %1865  ;;  %v1869_v17 = vpop.xlane.xlu1 %1868 }
 0x6fe   : > { %8681 = vpow2.f32 %v1886_v14  ;;  %v1876_v36 = vsub.f32 %v1844_v43, %v1866_v30  ;;  %v1877_v32 = vsub.f32 %v1845_v39, %v1869_v17 }
 0x6ff   : > { %8683 = vpow2.f32 %v1888_v27 }
 0x700   : > { %v1890_v33 = vmul.f32 1.442695, %v1876_v36  ;;  %v1892_v34 = vmul.f32 1.442695, %v1877_v32 }
 0x701   : > { %v8674_v15 = vpop.eup %8673  ;;  %v1939_v10 = vpop.permute.xlu0 %1938 }
 0x702   : > { %v1937_v38 = vpop.permute.xlu1 %1936  ;;  %8685 = vpow2.f32 %v1890_v33  ;;  %8068 = vmatprep.subr.mxu1 %v1939_v10  ;;  %v1897_v1 = vsel %vm1304_vm8, %v8674_v15, 0.0 }
 0x703   : > { %v8676_v35 = vpop.eup %8675  ;;  %8687 = vpow2.f32 %v1892_v34  ;;  %1898 = vadd.xlane.f32.xlu1 %v1897_v1  ;;  %8069 = vmatpush3.msra.mxu1 %v1939_v10 }
 0x704   : > { %8070 = vmatprep.subr.mxu1 %v1937_v38  ;;  %v1894_v31 = vsel %vm1304_vm8, %v8676_v35, 0.0 }
 0x705   : > { %1895 = vadd.xlane.f32.xlu0 %v1894_v31  ;;  %8071 = vmatpush3.msra.mxu1 %v1937_v38 }
 0x706   : > { %v2259_v39 = vpop.permute.xlu1 %2258 }
 0x707   : > { %8098 = vmatprep.subr.msk.mxu1 %vm944_vm7, %v2259_v39  ;;  %v8678_v40 = vpop.eup %8677 }
 0x708   : > { %v8680_v2 = vpop.eup %8679  ;;  %v1900_v43 = vsel %vm1304_vm8, %v8678_v40, 0.0 }
 0x709   : > { %1901 = vadd.xlane.f32.xlu0 %v1900_v43  ;;  %v1903_v46 = vsel %vm1304_vm8, %v8680_v2, 0.0  ;;  %v9488_v43 = vpop.f32.mrf.mxu1 }
 0x70a   : > { %1904 = vadd.xlane.f32.xlu1 %v1903_v46 }
 0x70b   : > { %v8682_v56 = vpop.eup %8681  ;;  %v9490_v46 = vpop.f32.mrf.mxu1 }
 0x70c   : > { %v8684_v61 = vpop.eup %8683  ;;  %v1906_v62 = vsel %vm1304_vm8, %v8682_v56, 0.0 }
 0x70d   : > { %1907 = vadd.xlane.f32.xlu0 %v1906_v62  ;;  %v1909_v63 = vsel %vm1304_vm8, %v8684_v61, 0.0 }
 0x70e   : > { %1910 = vadd.xlane.f32.xlu1 %v1909_v63 }
 0x70f   : > { %v8686_v5 = vpop.eup %8685 }
 0x710   : > { %v8688_v16 = vpop.eup %8687  ;;  %v1912_v18 = vsel %vm1304_vm8, %v8686_v5, 0.0 }
 0x711   : > { %1913 = vadd.xlane.f32.xlu0 %v1912_v18  ;;  %v1915_v19 = vsel %vm1304_vm8, %v8688_v16, 0.0 }
 0x712   : > { %1916 = vadd.xlane.f32.xlu1 %v1915_v19 }
 0x723   : > { %2240 = vrot.lane.b32.xlu1 %v9198_v37, %s8980_s20 }
 0x727   : > { %2256 = vrot.lane.b32.xlu0 %v9208_v45, %s8980_s20  ;;  %2244 = vrot.lane.b32.xlu1 %v9227_v48, %s8980_s20 }
 0x72b   : > { %2242 = vrot.lane.b32.xlu0 %v9221_v47, %s8980_s20  ;;  %2248 = vrot.lane.b32.xlu1 %v9241_v50, %s8980_s20 }
 0x72f   : > { %2246 = vrot.lane.b32.xlu0 %v9236_v49, %s8980_s20  ;;  %2252 = vrot.lane.b32.xlu1 %v9255_v52, %s8980_s20 }
 0x733   : > { %2250 = vrot.lane.b32.xlu0 %v9250_v51, %s8980_s20 }
 0x737   : > { %2254 = vrot.lane.b32.xlu0 %v9264_v53, %s8980_s20 }
 0x78c   : > { %v1899_v37 = vpop.xlane.xlu1 %1898 }
 0x78d   : > { %8689 = vrcp.f32 %v1899_v37 }
 0x78e   : > { %v1896_v48 = vpop.xlane.xlu0 %1895 }
 0x78f   : > { %8691 = vrcp.f32 %v1896_v48 }
 0x792   : > { %v1902_v47 = vpop.xlane.xlu0 %1901 }
 0x793   : > { %8693 = vrcp.f32 %v1902_v47  ;;  %v1905_v20 = vpop.xlane.xlu1 %1904 }
 0x794   : > { %8695 = vrcp.f32 %v1905_v20 }
 0x796   : > { %v1908_v50 = vpop.xlane.xlu0 %1907 }
 0x797   : > { %8697 = vrcp.f32 %v1908_v50  ;;  %v1911_v49 = vpop.xlane.xlu1 %1910 }
 0x798   : > { %8699 = vrcp.f32 %v1911_v49 }
 0x79a   : > { %v1914_v21 = vpop.xlane.xlu0 %1913  ;;  %v8690_v52 = vpop.eup %8689 }
 0x79b   : > { %8701 = vrcp.f32 %v1914_v21  ;;  %v1917_v22 = vpop.xlane.xlu1 %1916  ;;  %v1927_v53 = vmul.f32 %v8690_v52, %v8674_v15 }
 0x79c   : > { %v8692_v51 = vpop.eup %8691  ;;  %8703 = vrcp.f32 %v1917_v22 }
 0x79d   : > { %v1926_v23 = vmul.f32 %v8692_v51, %v8676_v35 }
 0x79e   : > { %v2257_v26 = vpop.permute.xlu0 %2256 }
 0x79f   : > { %8072 = vmatprep.mubr.msk.f32.mxu1 %vm1304_vm8, %v1926_v23  ;;  %v9447_v27 = vpop.permute.xlu1 %2240 }
 0x7a0   : > { %v8694_v24 = vpop.eup %8693  ;;  %8073 = vmatmul.mubr.msk.f32.vlgmr.msra.gmra.mxu1 %vm1304_vm8, %v1927_v53  ;;  %10740 = vst [vmem:[#allocation10_spill] sm:$0xff] %v9447_v27 }
 0x7a1   : > { %v8696_v25 = vpop.eup %8695  ;;  %8099 = vmatpush3.xpose.msk.msra.mxu1 %vm944_vm7, %v2259_v39  ;;  %v1928_v28 = vmul.f32 %v8694_v24, %v8678_v40 }
 0x7a2   : > { %8100 = vmatprep.subr.msk.mxu1 %vm944_vm7, %v2257_v26  ;;  %v1929_v29 = vmul.f32 %v8696_v25, %v8680_v2  ;;  %v9451_v32 = vpop.permute.xlu0 %2242  ;;  %v9484_v2 = vld [vmem:[#allocation2 + $0x20] sm:$0xff] }
 0x7a3   : > { %8075 = vmatprep.mubr.msk.f32.mxu1 %vm1304_vm8, %v1928_v28  ;;  %10741 = vst [vmem:[#allocation11_spill] sm:$0xff] %v9451_v32  ;;  %v9454_v38 = vpop.permute.xlu1 %2244  ;;  %8084 = vmatprep.subr.mxu0 %v9484_v2 }
 0x7a4   : > { %v8698_v14 = vpop.eup %8697  ;;  %8076 = vmatmul.mubr.msk.f32.gmra.mxu1 %vm1304_vm8, %v1929_v29  ;;  %10742 = vst [vmem:[#allocation12_spill] sm:$0xff] %v9454_v38  ;;  %8085 = vmatpush3.msra.mxu0 %v9484_v2 }
 0x7a5   : > { %v8700_v30 = vpop.eup %8699  ;;  %8101 = vmatpush3.xpose.msk.msra.mxu1 %vm944_vm7, %v2257_v26  ;;  %v1930_v17 = vmul.f32 %v8698_v14, %v8682_v56  ;;  %v9492_v56 = vpop.f32.mrf.mxu1 }
 0x7a6   : > { %v1931_v36 = vmul.f32 %v8700_v30, %v8684_v61  ;;  %v9460_v1 = vpop.permute.xlu0 %2246 }
 0x7a7   : > { %8078 = vmatprep.mubr.msk.f32.mxu1 %vm1304_vm8, %v1930_v17  ;;  %10743 = vst [vmem:[#allocation13_spill] sm:$0xff] %v9460_v1  ;;  %v9464_v35 = vpop.permute.xlu1 %2248  ;;  %v9494_v61 = vpop.f32.mrf.mxu1 }
 0x7a8   : > { %v8702_v33 = vpop.eup %8701  ;;  %8079 = vmatmul.mubr.msk.f32.gmra.mxu1 %vm1304_vm8, %v1931_v36  ;;  %10744 = vst [vmem:[#allocation14_spill] sm:$0xff] %v9464_v35 }
 0x7a9   : > { %v8704_v34 = vpop.eup %8703  ;;  %v1932_v15 = vmul.f32 %v8702_v33, %v8686_v5  ;;  %v9496_v62 = vpop.f32.mrf.mxu1 }
 0x7aa   : > { %v1933_v10 = vmul.f32 %v8704_v34, %v8688_v16  ;;  %v9468_v31 = vpop.permute.xlu0 %2250 }
 0x7ab   : > { %8081 = vmatprep.mubr.msk.f32.mxu1 %vm1304_vm8, %v1932_v15  ;;  %10745 = vst [vmem:[#allocation15_spill] sm:$0xff] %v9468_v31  ;;  %v9474_v39 = vpop.permute.xlu1 %2252  ;;  %v9498_v63 = vpop.f32.mrf.mxu1 }
 0x7ac   : > { %8082 = vmatmul.mubr.msk.f32.gmra.mxu1 %vm1304_vm8, %v1933_v10  ;;  %10746 = vst [vmem:[#allocation16_spill] sm:$0xff] %v9474_v39 }
 0x7ad   : > { %8102 = vmatprep.mubr.msk.f32.mxu1 %vm944_vm7, %v9447_v27  ;;  %v9500_v5 = vpop.f32.mrf.mxu1 }
 0x7ae   : > { %v9478_v40 = vpop.permute.xlu0 %2254 }
 0x7af   : > { %10747 = vst [vmem:[#allocation17_spill] sm:$0xff] %v9478_v40  ;;  %v9502_v16 = vpop.f32.mrf.mxu1 }
 0x7b0   : > { %8103 = vmatmul.mubr.msk.f32.vlgmr.msra.gmra.mxu1 %vm944_vm7, %v9451_v32 }
 0x7b1   : > { %8105 = vmatprep.mubr.msk.f32.mxu1 %vm944_vm7, %v9454_v38 }
 0x7b4   : > { %8106 = vmatmul.mubr.msk.f32.gmra.mxu1 %vm944_vm7, %v9460_v1 }
 0x7b5   : > { %8108 = vmatprep.mubr.msk.f32.mxu1 %vm944_vm7, %v9464_v35 }
 0x7b8   : > { %8109 = vmatmul.mubr.msk.f32.gmra.mxu1 %vm944_vm7, %v9468_v31 }
 0x7b9   : > { %8111 = vmatprep.mubr.msk.f32.mxu1 %vm944_vm7, %v9474_v39 }
 0x7bc   : > { %8112 = vmatmul.mubr.msk.f32.gmra.mxu1 %vm944_vm7, %v9478_v40 }
 0x860   : > { %v8074_v18 = vpop.f32.mrf.mxu1 }
 0x862   : > { %v2032_v19 = vpop.f32.mrf.mxu1 }
 0x863   : > { %8086 = vmatprep.mubr.msk.f32.mxu0 %vm1522_vm9, %v2032_v19 }
 0x864   : > { %v8077_v37 = vpop.f32.mrf.mxu1  ;;  %8087 = vmatmul.mubr.msk.f32.vlgmr.msra.gmra.mxu0 %vm1522_vm9, %v8074_v18 }
 0x866   : > { %v2042_v48 = vpop.f32.mrf.mxu1 }
 0x867   : > { %8089 = vmatprep.mubr.msk.f32.mxu0 %vm1522_vm9, %v2042_v48 }
 0x868   : > { %v8080_v47 = vpop.f32.mrf.mxu1  ;;  %8090 = vmatmul.mubr.msk.f32.gmra.mxu0 %vm1522_vm9, %v8077_v37 }
 0x86a   : > { %v2052_v20 = vpop.f32.mrf.mxu1 }
 0x86b   : > { %8092 = vmatprep.mubr.msk.f32.mxu0 %vm1522_vm9, %v2052_v20 }
 0x86c   : > { %v8083_v50 = vpop.f32.mrf.mxu1  ;;  %8093 = vmatmul.mubr.msk.f32.gmra.mxu0 %vm1522_vm9, %v8080_v47 }
 0x86e   : > { %v2062_v49 = vpop.f32.mrf.mxu1 }
 0x86f   : > { %8095 = vmatprep.mubr.msk.f32.mxu0 %vm1522_vm9, %v2062_v49 }
 0x870   : > { %8096 = vmatmul.mubr.msk.f32.gmra.mxu0 %vm1522_vm9, %v8083_v50  ;;  %v8104_v21 = vpop.f32.mrf.mxu1 }
 0x871   : > { %v2386_v52 = vmul.f32 0.70710677, %v8104_v21 }
 0x872   : > { %v2346_v22 = vpop.f32.mrf.mxu1 }
 0x873   : > { %v2385_v51 = vmul.f32 0.70710677, %v2346_v22  ;;  %v2396_v23 = vsel %vm1304_vm8, %v2386_v52, -inf }
 0x874   : > { %2397 = vmax.xlane.f32.xlu0 %v2396_v23  ;;  %v8107_v53 = vpop.f32.mrf.mxu1 }
 0x875   : > { %v2388_v24 = vmul.f32 0.70710677, %v8107_v53  ;;  %v2393_v25 = vsel %vm1304_vm8, %v2385_v51, -inf }
 0x876   : > { %2394 = vmax.xlane.f32.xlu1 %v2393_v25  ;;  %v2356_v26 = vpop.f32.mrf.mxu1 }
 0x877   : > { %v2387_v28 = vmul.f32 0.70710677, %v2356_v26  ;;  %v2402_v30 = vsel %vm1304_vm8, %v2388_v24, -inf }
 0x878   : > { %v8110_v29 = vpop.f32.mrf.mxu1 }
 0x879   : > { %v2390_v14 = vmul.f32 0.70710677, %v8110_v29  ;;  %v2399_v17 = vsel %vm1304_vm8, %v2387_v28, -inf }
 0x87a   : > { %2403 = vmax.xlane.f32.xlu1 %v2402_v30  ;;  %2400 = vmax.xlane.f32.xlu0 %v2399_v17  ;;  %v2366_v36 = vpop.f32.mrf.mxu1 }
 0x87b   : > { %v2389_v33 = vmul.f32 0.70710677, %v2366_v36  ;;  %v2408_v10 = vsel %vm1304_vm8, %v2390_v14, -inf }
 0x87c   : > { %v8113_v34 = vpop.f32.mrf.mxu1 }
 0x87d   : > { %v2392_v15 = vmul.f32 0.70710677, %v8113_v34  ;;  %v2405_v18 = vsel %vm1304_vm8, %v2389_v33, -inf }
 0x87e   : > { %2409 = vmax.xlane.f32.xlu1 %v2408_v10  ;;  %2406 = vmax.xlane.f32.xlu0 %v2405_v18  ;;  %v2376_v19 = vpop.f32.mrf.mxu1 }
 0x87f   : > { %v2391_v37 = vmul.f32 0.70710677, %v2376_v19  ;;  %v2414_v48 = vsel %vm1304_vm8, %v2392_v15, -inf }
 0x881   : > { %v2411_v47 = vsel %vm1304_vm8, %v2391_v37, -inf }
 0x882   : > { %2415 = vmax.xlane.f32.xlu1 %v2414_v48  ;;  %2412 = vmax.xlane.f32.xlu0 %v2411_v47 }
 0x893   : > { %2481 = vrot.lane.b32.xlu1 %v9301_v44, %s8981_s22 }
 0x897   : > { %2803 = vrot.lane.b32.xlu1 %v9203_v3, %s8982_s23 }
 0x898   : > { %2483 = vrot.lane.b32.xlu0 %v9298_v42, %s8981_s22 }
 0x8fd   : > { %v2398_v20 = vpop.xlane.xlu0 %2397 }
 0x8fe   : > { %v2418_v50 = vsub.f32 %v2386_v52, %v2398_v20 }
 0x8ff   : > { %v2395_v49 = vpop.xlane.xlu1 %2394 }
 0x900   : > { %v2427_v21 = vmul.f32 1.442695, %v2418_v50  ;;  %v2417_v22 = vsub.f32 %v2385_v51, %v2395_v49 }
 0x902   : > { %8705 = vpow2.f32 %v2427_v21  ;;  %v2425_v23 = vmul.f32 1.442695, %v2417_v22 }
 0x903   : > { %v2401_v53 = vpop.xlane.xlu0 %2400  ;;  %v2404_v25 = vpop.xlane.xlu1 %2403 }
 0x904   : > { %8707 = vpow2.f32 %v2425_v23  ;;  %v2419_v26 = vsub.f32 %v2387_v28, %v2401_v53  ;;  %v2420_v29 = vsub.f32 %v2388_v24, %v2404_v25 }
 0x906   : > { %v2429_v30 = vmul.f32 1.442695, %v2419_v26  ;;  %v2431_v17 = vmul.f32 1.442695, %v2420_v29 }
 0x907   : > { %v2407_v36 = vpop.xlane.xlu0 %2406  ;;  %v2410_v34 = vpop.xlane.xlu1 %2409 }
 0x908   : > { %8709 = vpow2.f32 %v2429_v30  ;;  %v2421_v3 = vsub.f32 %v2389_v33, %v2407_v36  ;;  %v2422_v10 = vsub.f32 %v2390_v14, %v2410_v34 }
 0x909   : > { %8711 = vpow2.f32 %v2431_v17 }
 0x90a   : > { %v2433_v18 = vmul.f32 1.442695, %v2421_v3  ;;  %v2435_v52 = vmul.f32 1.442695, %v2422_v10  ;;  %v9556_v10 = vld [vmem:[%s10708_s4 + $0x8] sm:$0xff] }
 0x90b   : > { %v2413_v19 = vpop.xlane.xlu0 %2412  ;;  %v2416_v48 = vpop.xlane.xlu1 %2415 }
 0x90c   : > { %8713 = vpow2.f32 %v2433_v18  ;;  %v2423_v51 = vsub.f32 %v2391_v37, %v2413_v19  ;;  %v2424_v47 = vsub.f32 %v2392_v15, %v2416_v48  ;;  %v9565_v18 = vld [vmem:[%s10708_s4 + $0x28] sm:$0xff]  ;;  %v9586_v19 = vld [vmem:[%s10708_s4 + $0x38] sm:$0xff] }
 0x90d   : > { %8715 = vpow2.f32 %v2435_v52  ;;  %v9572_v52 = vld [vmem:[%s10708_s4 + $0x18] sm:$0xff]  ;;  %v9593_v48 = vld [vmem:[%s10708_s4 + $0x68] sm:$0xff] }
 0x90e   : > { %v2437_v20 = vmul.f32 1.442695, %v2423_v51  ;;  %v2439_v50 = vmul.f32 1.442695, %v2424_v47  ;;  %v9600_v51 = vld [vmem:[%s10708_s4 + $0x58] sm:$0xff] }
 0x90f   : > { %v9526_v28 = vpop.eup %8705  ;;  %v2484_v24 = vpop.permute.xlu0 %2483  ;;  %v9607_v47 = vld [vmem:[%s10708_s4 + $0x78] sm:$0xff] }
 0x910   : > { %v2482_v49 = vpop.permute.xlu1 %2481  ;;  %8717 = vpow2.f32 %v2437_v20  ;;  %8114 = vmatprep.subr.mxu0 %v2484_v24  ;;  %v2444_v14 = vsel %vm1304_vm8, %v9526_v28, 0.0 }
 0x911   : > { %v9530_v33 = vpop.eup %8707  ;;  %8719 = vpow2.f32 %v2439_v50  ;;  %2445 = vadd.xlane.f32.xlu1 %v2444_v14  ;;  %8115 = vmatpush3.msra.mxu0 %v2484_v24 }
 0x912   : > { %8116 = vmatprep.subr.mxu0 %v2482_v49  ;;  %v2441_v15 = vsel %vm1304_vm8, %v9530_v33, 0.0 }
 0x913   : > { %2442 = vadd.xlane.f32.xlu0 %v2441_v15  ;;  %8117 = vmatpush3.msra.mxu0 %v2482_v49 }
 0x914   : > { %v2804_v37 = vpop.permute.xlu1 %2803 }
 0x915   : > { %8144 = vmatprep.subr.msk.mxu0 %vm944_vm7, %v2804_v37  ;;  %v8710_v21 = vpop.eup %8709 }
 0x916   : > { %v8712_v22 = vpop.eup %8711  ;;  %v2447_v23 = vsel %vm1304_vm8, %v8710_v21, 0.0 }
 0x917   : > { %2448 = vadd.xlane.f32.xlu0 %v2447_v23  ;;  %v2450_v53 = vsel %vm1304_vm8, %v8712_v22, 0.0 }
 0x918   : > { %2451 = vadd.xlane.f32.xlu1 %v2450_v53 }
 0x919   : > { %v9537_v25 = vpop.eup %8713 }
 0x91a   : > { %v9539_v26 = vpop.eup %8715  ;;  %v2453_v29 = vsel %vm1304_vm8, %v9537_v25, 0.0 }
 0x91b   : > { %2454 = vadd.xlane.f32.xlu0 %v2453_v29  ;;  %v2456_v30 = vsel %vm1304_vm8, %v9539_v26, 0.0 }
 0x91c   : > { %2457 = vadd.xlane.f32.xlu1 %v2456_v30 }
 0x91d   : > { %v9545_v17 = vpop.eup %8717 }
 0x91e   : > { %v9547_v36 = vpop.eup %8719  ;;  %v2459_v34 = vsel %vm1304_vm8, %v9545_v17, 0.0 }
 0x91f   : > { %2460 = vadd.xlane.f32.xlu0 %v2459_v34  ;;  %v2462_v3 = vsel %vm1304_vm8, %v9547_v36, 0.0 }
 0x920   : > { %2463 = vadd.xlane.f32.xlu1 %v2462_v3 }
 0x931   : > { %2785 = vrot.lane.b32.xlu1 %v9556_v10, %s8982_s23 }
 0x935   : > { %2801 = vrot.lane.b32.xlu0 %v9208_v45, %s8982_s23  ;;  %2789 = vrot.lane.b32.xlu1 %v9565_v18, %s8982_s23  ;;  %v9579_v45 = vld [vmem:[%s10708_s4 + $0x48] sm:$0xff] }
 0x939   : > { %2787 = vrot.lane.b32.xlu0 %v9572_v52, %s8982_s23  ;;  %2793 = vrot.lane.b32.xlu1 %v9579_v45, %s8982_s23 }
 0x93d   : > { %2791 = vrot.lane.b32.xlu0 %v9586_v19, %s8982_s23  ;;  %2797 = vrot.lane.b32.xlu1 %v9593_v48, %s8982_s23 }
 0x941   : > { %2795 = vrot.lane.b32.xlu0 %v9600_v51, %s8982_s23 }
 0x945   : > { %2799 = vrot.lane.b32.xlu0 %v9607_v47, %s8982_s23 }
 0x99a   : > { %v2446_v20 = vpop.xlane.xlu1 %2445 }
 0x99b   : > { %8721 = vrcp.f32 %v2446_v20 }
 0x99c   : > { %v2443_v50 = vpop.xlane.xlu0 %2442 }
 0x99d   : > { %8723 = vrcp.f32 %v2443_v50 }
 0x9a0   : > { %v2449_v24 = vpop.xlane.xlu0 %2448 }
 0x9a1   : > { %8725 = vrcp.f32 %v2449_v24  ;;  %v2452_v49 = vpop.xlane.xlu1 %2451 }
 0x9a2   : > { %8727 = vrcp.f32 %v2452_v49 }
 0x9a4   : > { %v2455_v14 = vpop.xlane.xlu0 %2454 }
 0x9a5   : > { %8729 = vrcp.f32 %v2455_v14  ;;  %v2458_v15 = vpop.xlane.xlu1 %2457 }
 0x9a6   : > { %8731 = vrcp.f32 %v2458_v15  ;;  %v9618_v15 = vld [vmem:[#allocation2 + $0x50] sm:$0xff] }
 0x9a8   : > { %v2461_v23 = vpop.xlane.xlu0 %2460  ;;  %v8722_v53 = vpop.eup %8721 }
 0x9a9   : > { %8733 = vrcp.f32 %v2461_v23  ;;  %v2464_v29 = vpop.xlane.xlu1 %2463  ;;  %v2474_v3 = vmul.f32 %v8722_v53, %v9526_v28 }
 0x9aa   : > { %v8724_v30 = vpop.eup %8723  ;;  %8735 = vrcp.f32 %v2464_v29 }
 0x9ab   : > { %v2473_v34 = vmul.f32 %v8724_v30, %v9530_v33 }
 0x9ac   : > { %v2802_v24 = vpop.permute.xlu0 %2801 }
 0x9ad   : > { %8118 = vmatprep.mubr.msk.f32.mxu0 %vm1304_vm8, %v2473_v34  ;;  %v9621_v28 = vpop.permute.xlu1 %2785 }
 0x9ae   : > { %v8726_v20 = vpop.eup %8725  ;;  %8119 = vmatmul.mubr.msk.f32.vlgmr.msra.gmra.mxu0 %vm1304_vm8, %v2474_v3  ;;  %10748 = vst [vmem:[#allocation18_spill] sm:$0xff] %v9621_v28 }
 0x9af   : > { %v8728_v50 = vpop.eup %8727  ;;  %8145 = vmatpush3.xpose.msk.msra.mxu0 %vm944_vm7, %v2804_v37  ;;  %v2475_v49 = vmul.f32 %v8726_v20, %v8710_v21 }
 0x9b0   : > { %8146 = vmatprep.subr.msk.mxu0 %vm944_vm7, %v2802_v24  ;;  %v2476_v14 = vmul.f32 %v8728_v50, %v8712_v22  ;;  %v9628_v21 = vpop.permute.xlu0 %2787  ;;  %v9670_v50 = vld [vmem:[#allocation2 + $0x38] sm:$0xff] }
 0x9b1   : > { %8121 = vmatprep.mubr.msk.f32.mxu0 %vm1304_vm8, %v2475_v49  ;;  %10749 = vst [vmem:[#allocation19_spill] sm:$0xff] %v9628_v21  ;;  %v9633_v3 = vpop.permute.xlu1 %2789  ;;  %8130 = vmatprep.subr.mxu1 %v9670_v50 }
 0x9b2   : > { %v8730_v33 = vpop.eup %8729  ;;  %8122 = vmatmul.mubr.msk.f32.gmra.mxu0 %vm1304_vm8, %v2476_v14  ;;  %10750 = vst [vmem:[#allocation20_spill] sm:$0xff] %v9633_v3  ;;  %8131 = vmatpush3.msra.mxu1 %v9670_v50 }
 0x9b3   : > { %v8732_v23 = vpop.eup %8731  ;;  %8147 = vmatpush3.xpose.msk.msra.mxu0 %vm944_vm7, %v2802_v24  ;;  %v2477_v53 = vmul.f32 %v8730_v33, %v9537_v25  ;;  %v9674_v24 = vpop.f32.mrf.mxu0 }
 0x9b4   : > { %v2478_v37 = vmul.f32 %v8732_v23, %v9539_v26  ;;  %8176 = vmatprep.subr.mxu0 %v9618_v15  ;;  %v9639_v25 = vpop.permute.xlu0 %2791  ;;  %v9643_v26 = vadd.f32 %v9270_v58, %v9160_v57 }
 0x9b5   : > { %8124 = vmatprep.mubr.msk.f32.mxu0 %vm1304_vm8, %v2477_v53  ;;  %10751 = vst [vmem:[#allocation21_spill] sm:$0xff] %v9639_v25  ;;  %v9676_v49 = vpop.f32.mrf.mxu0 }
 0x9b6   : > { %v8734_v22 = vpop.eup %8733  ;;  %8125 = vmatmul.mubr.msk.f32.gmra.mxu0 %vm1304_vm8, %v2478_v37 }
 0x9b7   : > { %v8736_v29 = vpop.eup %8735  ;;  %v2479_v30 = vmul.f32 %v8734_v22, %v9545_v17  ;;  %v9647_v17 = vpop.permute.xlu1 %2793 }
 0x9b8   : > { %v2480_v34 = vmul.f32 %v8736_v29, %v9547_v36  ;;  %10752 = vst [vmem:[#allocation22_spill] sm:$0xff] %v9647_v17  ;;  %v9654_v36 = vpop.permute.xlu0 %2795  ;;  %v9678_v14 = vpop.f32.mrf.mxu0 }
 0x9b9   : > { %8127 = vmatprep.mubr.msk.f32.mxu0 %vm1304_vm8, %v2479_v30  ;;  %10753 = vst [vmem:[#allocation23_spill] sm:$0xff] %v9654_v36 }
 0x9ba   : > { %8128 = vmatmul.mubr.msk.f32.gmra.mxu0 %vm1304_vm8, %v2480_v34  ;;  %v9680_v33 = vpop.f32.mrf.mxu0 }
 0x9bb   : > { %8148 = vmatprep.mubr.msk.f32.mxu0 %vm944_vm7, %v9621_v28  ;;  %v9660_v58 = vpop.permute.xlu1 %2797 }
 0x9bc   : > { %10754 = vst [vmem:[#allocation24_spill] sm:$0xff] %v9660_v58  ;;  %v9664_v20 = vpop.permute.xlu0 %2799  ;;  %v9682_v23 = vpop.f32.mrf.mxu0 }
 0x9bd   : > { %10755 = vst [vmem:[#allocation25_spill] sm:$0xff] %v9664_v20 }
 0x9be   : > { %8149 = vmatmul.mubr.msk.f32.vlgmr.msra.gmra.mxu0 %vm944_vm7, %v9628_v21  ;;  %v9684_v53 = vpop.f32.mrf.mxu0 }
 0x9bf   : > { %8177 = vmatpush3.msra.mxu0 %v9618_v15  ;;  %8151 = vmatprep.mubr.msk.f32.mxu0 %vm944_vm7, %v9633_v3 }
 0x9c0   : > { %8210 = vmatprep.subr.msk.mxu0 %vm944_vm7, %v9643_v26  ;;  %v9686_v37 = vpop.f32.mrf.mxu0 }
 0x9c2   : > { %8152 = vmatmul.mubr.msk.f32.gmra.mxu0 %vm944_vm7, %v9639_v25  ;;  %v9688_v22 = vpop.f32.mrf.mxu0 }
 0x9c3   : > { %8154 = vmatprep.mubr.msk.f32.mxu0 %vm944_vm7, %v9647_v17 }
 0x9c6   : > { %8155 = vmatmul.mubr.msk.f32.gmra.mxu0 %vm944_vm7, %v9654_v36 }
 0x9c7   : > { %8157 = vmatprep.mubr.msk.f32.mxu0 %vm944_vm7, %v9660_v58 }
 0x9ca   : > { %8158 = vmatmul.mubr.msk.f32.gmra.mxu0 %vm944_vm7, %v9664_v20 }
 0xa6e   : > { %v8120_v29 = vpop.f32.mrf.mxu0 }
 0xa70   : > { %v2577_v30 = vpop.f32.mrf.mxu0 }
 0xa71   : > { %8132 = vmatprep.mubr.msk.f32.mxu1 %vm1522_vm9, %v2577_v30 }
 0xa72   : > { %v8123_v34 = vpop.f32.mrf.mxu0  ;;  %8133 = vmatmul.mubr.msk.f32.vlgmr.msra.gmra.mxu1 %vm1522_vm9, %v8120_v29 }
 0xa74   : > { %v2587_v54 = vpop.f32.mrf.mxu0 }
 0xa75   : > { %8135 = vmatprep.mubr.msk.f32.mxu1 %vm1522_vm9, %v2587_v54 }
 0xa76   : > { %v8126_v55 = vpop.f32.mrf.mxu0  ;;  %8136 = vmatmul.mubr.msk.f32.gmra.mxu1 %vm1522_vm9, %v8123_v34 }
 0xa78   : > { %v2597_v20 = vpop.f32.mrf.mxu0 }
 0xa79   : > { %8138 = vmatprep.mubr.msk.f32.mxu1 %vm1522_vm9, %v2597_v20 }
 0xa7a   : > { %v8129_v58 = vpop.f32.mrf.mxu0  ;;  %8139 = vmatmul.mubr.msk.f32.gmra.mxu1 %vm1522_vm9, %v8126_v55 }
 0xa7c   : > { %v2607_v36 = vpop.f32.mrf.mxu0 }
 0xa7d   : > { %8141 = vmatprep.mubr.msk.f32.mxu1 %vm1522_vm9, %v2607_v36 }
 0xa7e   : > { %8142 = vmatmul.mubr.msk.f32.gmra.mxu1 %vm1522_vm9, %v8129_v58  ;;  %v8150_v30 = vpop.f32.mrf.mxu0 }
 0xa7f   : > { %v2931_v17 = vmul.f32 0.70710677, %v8150_v30 }
 0xa80   : > { %v2891_v29 = vpop.f32.mrf.mxu0 }
 0xa81   : > { %v2930_v25 = vmul.f32 0.70710677, %v2891_v29  ;;  %v2941_v54 = vsel %vm1304_vm8, %v2931_v17, -inf }
 0xa82   : > { %2942 = vmax.xlane.f32.xlu0 %v2941_v54  ;;  %v8153_v3 = vpop.f32.mrf.mxu0 }
 0xa83   : > { %v2933_v34 = vmul.f32 0.70710677, %v8153_v3  ;;  %v2938_v21 = vsel %vm1304_vm8, %v2930_v25, -inf }
 0xa84   : > { %2939 = vmax.xlane.f32.xlu1 %v2938_v21  ;;  %v2901_v20 = vpop.f32.mrf.mxu0 }
 0xa85   : > { %v2932_v28 = vmul.f32 0.70710677, %v2901_v20  ;;  %v2947_v36 = vsel %vm1304_vm8, %v2933_v34, -inf }
 0xa86   : > { %v8156_v55 = vpop.f32.mrf.mxu0 }
 0xa87   : > { %v2935_v40 = vmul.f32 0.70710677, %v8156_v55  ;;  %v2944_v58 = vsel %vm1304_vm8, %v2932_v28, -inf }
 0xa88   : > { %2948 = vmax.xlane.f32.xlu1 %v2947_v36  ;;  %2945 = vmax.xlane.f32.xlu0 %v2944_v58  ;;  %v2911_v30 = vpop.f32.mrf.mxu0 }
 0xa89   : > { %v2934_v29 = vmul.f32 0.70710677, %v2911_v30  ;;  %v2953_v54 = vsel %vm1304_vm8, %v2935_v40, -inf }
 0xa8a   : > { %v8159_v39 = vpop.f32.mrf.mxu0 }
 0xa8b   : > { %v2937_v31 = vmul.f32 0.70710677, %v8159_v39  ;;  %v2950_v3 = vsel %vm1304_vm8, %v2934_v29, -inf }
 0xa8c   : > { %2954 = vmax.xlane.f32.xlu1 %v2953_v54  ;;  %2951 = vmax.xlane.f32.xlu0 %v2950_v3  ;;  %v2921_v21 = vpop.f32.mrf.mxu0 }
 0xa8d   : > { %v2936_v20 = vmul.f32 0.70710677, %v2921_v21  ;;  %v2959_v55 = vsel %vm1304_vm8, %v2937_v31, -inf }
 0xa8f   : > { %v2956_v35 = vsel %vm1304_vm8, %v2936_v20, -inf }
 0xa90   : > { %2960 = vmax.xlane.f32.xlu1 %v2959_v55  ;;  %2957 = vmax.xlane.f32.xlu0 %v2956_v35 }
 0xb0b   : > { %v2943_v36 = vpop.xlane.xlu0 %2942 }
 0xb0c   : > { %v2963_v58 = vsub.f32 %v2931_v17, %v2943_v36 }
 0xb0d   : > { %v2940_v1 = vpop.xlane.xlu1 %2939 }
 0xb0e   : > { %v2972_v30 = vmul.f32 1.442695, %v2963_v58  ;;  %v2962_v38 = vsub.f32 %v2930_v25, %v2940_v1 }
 0xb10   : > { %8737 = vpow2.f32 %v2972_v30  ;;  %v2970_v39 = vmul.f32 1.442695, %v2962_v38 }
 0xb11   : > { %v2946_v32 = vpop.xlane.xlu0 %2945  ;;  %v2949_v27 = vpop.xlane.xlu1 %2948 }
 0xb12   : > { %8739 = vpow2.f32 %v2970_v39  ;;  %v2964_v54 = vsub.f32 %v2932_v28, %v2946_v32  ;;  %v2965_v3 = vsub.f32 %v2933_v34, %v2949_v27 }
 0xb14   : > { %v2974_v11 = vmul.f32 1.442695, %v2964_v54  ;;  %v2976_v21 = vmul.f32 1.442695, %v2965_v3 }
 0xb15   : > { %v2952_v9 = vpop.xlane.xlu0 %2951  ;;  %v2955_v8 = vpop.xlane.xlu1 %2954 }
 0xb16   : > { %8741 = vpow2.f32 %v2974_v11  ;;  %v2966_v7 = vsub.f32 %v2934_v29, %v2952_v9  ;;  %v2967_v55 = vsub.f32 %v2935_v40, %v2955_v8 }
 0xb17   : > { %8743 = vpow2.f32 %v2976_v21 }
 0xb18   : > { %v2978_v35 = vmul.f32 1.442695, %v2966_v7  ;;  %v2980_v17 = vmul.f32 1.442695, %v2967_v55 }
 0xb19   : > { %v2958_v36 = vpop.xlane.xlu0 %2957  ;;  %v2961_v58 = vpop.xlane.xlu1 %2960 }
 0xb1a   : > { %8745 = vpow2.f32 %v2978_v35  ;;  %v2968_v1 = vsub.f32 %v2936_v20, %v2958_v36  ;;  %v2969_v38 = vsub.f32 %v2937_v31, %v2961_v58 }
 0xb1b   : > { %8747 = vpow2.f32 %v2980_v17 }
 0xb1c   : > { %v2982_v25 = vmul.f32 1.442695, %v2968_v1  ;;  %v2984_v30 = vmul.f32 1.442695, %v2969_v38 }
 0xb1d   : > { %v9706_v32 = vpop.eup %8737 }
 0xb1e   : > { %8749 = vpow2.f32 %v2982_v25  ;;  %v2989_v27 = vsel %vm1304_vm8, %v9706_v32, 0.0 }
 0xb1f   : > { %v9710_v11 = vpop.eup %8739  ;;  %8751 = vpow2.f32 %v2984_v30  ;;  %2990 = vadd.xlane.f32.xlu1 %v2989_v27 }
 0xb20   : > { %v2986_v7 = vsel %vm1304_vm8, %v9710_v11, 0.0 }
 0xb21   : > { %2987 = vadd.xlane.f32.xlu0 %v2986_v7 }
 0xb23   : > { %v9714_v8 = vpop.eup %8741 }
 0xb24   : > { %v9716_v9 = vpop.eup %8743  ;;  %v2992_v31 = vsel %vm1304_vm8, %v9714_v8, 0.0 }
 0xb25   : > { %2993 = vadd.xlane.f32.xlu0 %v2992_v31  ;;  %v2995_v40 = vsel %vm1304_vm8, %v9716_v9, 0.0 }
 0xb26   : > { %2996 = vadd.xlane.f32.xlu1 %v2995_v40 }
 0xb27   : > { %v9722_v28 = vpop.eup %8745 }
 0xb28   : > { %v9724_v34 = vpop.eup %8747  ;;  %v2998_v29 = vsel %vm1304_vm8, %v9722_v28, 0.0 }
 0xb29   : > { %2999 = vadd.xlane.f32.xlu0 %v2998_v29  ;;  %v3001_v20 = vsel %vm1304_vm8, %v9724_v34, 0.0  ;;  %v9801_v29 = vadd.f32 %v9272_v59, %v9160_v57  ;;  %v9812_v59 = vld [vmem:[#allocation2 + $0x8] sm:$0xff] }
 0xb2a   : > { %3002 = vadd.xlane.f32.xlu1 %v3001_v20 }
 0xb2b   : > { %v9730_v39 = vpop.eup %8749 }
 0xb2c   : > { %v9732_v54 = vpop.eup %8751  ;;  %v3004_v3 = vsel %vm1304_vm8, %v9730_v39, 0.0 }
 0xb2d   : > { %3005 = vadd.xlane.f32.xlu0 %v3004_v3  ;;  %v3007_v21 = vsel %vm1304_vm8, %v9732_v54, 0.0 }
 0xb2e   : > { %3008 = vadd.xlane.f32.xlu1 %v3007_v21 }
 0xb3f   : > { %3026 = vrot.lane.b32.xlu1 %v9301_v44, %s8983_s27  ;;  %v8134_v44 = vpop.f32.mrf.mxu1 }
 0xb43   : > { %1663 = vrot.lane.b32.xlu1 %v9488_v43, %s8984_s28  ;;  %3028 = vrot.lane.b32.xlu0 %v9298_v42, %s8983_s27  ;;  %v2706_v43 = vpop.f32.mrf.mxu1 }
 0xb45   : > { %v8137_v42 = vpop.f32.mrf.mxu1 }
 0xb47   : > { %2208 = vrot.lane.b32.xlu1 %v9676_v49, %s8984_s28  ;;  %1661 = vrot.lane.b32.xlu0 %v9490_v46, %s8984_s28  ;;  %v2716_v46 = vpop.f32.mrf.mxu1 }
 0xb4b   : > { %1665 = vrot.lane.b32.xlu1 %v9494_v61, %s8984_s28  ;;  %2210 = vrot.lane.b32.xlu0 %v9674_v24, %s8984_s28 }
 0xb4f   : > { %1667 = vrot.lane.b32.xlu1 %v9492_v56, %s8984_s28  ;;  %2755 = vrot.lane.b32.xlu0 %v8134_v44, %s8984_s28  ;;  %v8140_v56 = vpop.f32.mrf.mxu1 }
 0xb51   : > { %v2726_v61 = vpop.f32.mrf.mxu1 }
 0xb53   : > { %2212 = vrot.lane.b32.xlu1 %v9680_v33, %s8984_s28  ;;  %2753 = vrot.lane.b32.xlu0 %v2706_v43, %s8984_s28  ;;  %v8143_v24 = vpop.f32.mrf.mxu1 }
 0xb57   : > { %2214 = vrot.lane.b32.xlu1 %v9678_v14, %s8984_s28  ;;  %2759 = vrot.lane.b32.xlu0 %v8137_v42, %s8984_s28 }
 0xb5b   : > { %1669 = vrot.lane.b32.xlu1 %v9498_v63, %s8984_s28  ;;  %2757 = vrot.lane.b32.xlu0 %v2716_v46, %s8984_s28 }
 0xb5f   : > { %1671 = vrot.lane.b32.xlu1 %v9496_v62, %s8984_s28  ;;  %2763 = vrot.lane.b32.xlu0 %v8140_v56, %s8984_s28  ;;  %v2736_v62 = vpop.f32.mrf.mxu1 }
 0xb63   : > { %2216 = vrot.lane.b32.xlu1 %v9684_v53, %s8984_s28  ;;  %2761 = vrot.lane.b32.xlu0 %v2726_v61, %s8984_s28 }
 0xb67   : > { %2218 = vrot.lane.b32.xlu1 %v9682_v23, %s8984_s28  ;;  %2767 = vrot.lane.b32.xlu0 %v8143_v24, %s8984_s28 }
 0xb6b   : > { %1673 = vrot.lane.b32.xlu1 %v9502_v16, %s8984_s28 }
 0xb6f   : > { %1675 = vrot.lane.b32.xlu1 %v9500_v5, %s8984_s28 }
 0xb73   : > { %2220 = vrot.lane.b32.xlu1 %v9688_v22, %s8984_s28 }
 0xb77   : > { %2222 = vrot.lane.b32.xlu1 %v9686_v37, %s8984_s28 }
 0xb7b   : > { %2765 = vrot.lane.b32.xlu1 %v2736_v62, %s8984_s28 }
 0xba8   : > { %v2991_v63 = vpop.xlane.xlu1 %2990 }
 0xbaa   : > { %v2988_v49 = vpop.xlane.xlu0 %2987 }
 0xbab   : > { %8753 = vrcp.f32 %v2988_v49 }
 0xbac   : > { %8755 = vrcp.f32 %v2991_v63 }
 0xbae   : > { %v2994_v14 = vpop.xlane.xlu0 %2993 }
 0xbaf   : > { %8757 = vrcp.f32 %v2994_v14  ;;  %v2997_v33 = vpop.xlane.xlu1 %2996 }
 0xbb0   : > { %8759 = vrcp.f32 %v2997_v33 }
 0xbb2   : > { %v3000_v16 = vpop.xlane.xlu0 %2999 }
 0xbb3   : > { %8761 = vrcp.f32 %v3000_v16  ;;  %v3003_v5 = vpop.xlane.xlu1 %3002 }
 0xbb4   : > { %8763 = vrcp.f32 %v3003_v5 }
 0xbb6   : > { %v3006_v23 = vpop.xlane.xlu0 %3005 }
 0xbb7   : > { %8765 = vrcp.f32 %v3006_v23  ;;  %v3009_v53 = vpop.xlane.xlu1 %3008 }
 0xbb8   : > { %v8754_v22 = vpop.eup %8753  ;;  %8767 = vrcp.f32 %v3009_v53 }
 0xbb9   : > { %v3018_v37 = vmul.f32 %v8754_v22, %v9710_v11  ;;  %v8756_v55 = vpop.eup %8755 }
 0xbba   : > { %v3029_v35 = vpop.permute.xlu0 %3028  ;;  %v3019_v58 = vmul.f32 %v8756_v55, %v9706_v32 }
 0xbbb   : > { %8160 = vmatprep.subr.mxu1 %v3029_v35  ;;  %8164 = vmatprep.mubr.msk.f32.mxu1 %vm1304_vm8, %v3018_v37  ;;  %v3027_v36 = vpop.permute.xlu1 %3026 }
 0xbbc   : > { %v8758_v17 = vpop.eup %8757  ;;  %8161 = vmatpush3.msra.mxu1 %v3029_v35 }
 0xbbd   : > { %8162 = vmatprep.subr.mxu1 %v3027_v36  ;;  %v3020_v1 = vmul.f32 %v8758_v17, %v9714_v8  ;;  %v8760_v38 = vpop.eup %8759 }
 0xbbe   : > { %8163 = vmatpush3.msra.mxu1 %v3027_v36  ;;  %v3021_v30 = vmul.f32 %v8760_v38, %v9716_v9 }
 0xbbf   : > { %8165 = vmatmul.mubr.msk.f32.vlgmr.msra.gmra.mxu1 %vm1304_vm8, %v3019_v58  ;;  %v1662_v58 = vpop.permute.xlu0 %1661  ;;  %v1664_v38 = vpop.permute.xlu1 %1663 }
 0xbc0   : > { %v8762_v25 = vpop.eup %8761  ;;  %8167 = vmatprep.mubr.msk.f32.mxu1 %vm1304_vm8, %v3020_v1 }
 0xbc1   : > { %v3022_v27 = vmul.f32 %v8762_v25, %v9722_v28  ;;  %v8764_v11 = vpop.eup %8763 }
 0xbc2   : > { %v3023_v32 = vmul.f32 %v8764_v11, %v9724_v34 }
 0xbc3   : > { %8168 = vmatmul.mubr.msk.f32.gmra.mxu1 %vm1304_vm8, %v3021_v30  ;;  %v2211_v25 = vpop.permute.xlu0 %2210  ;;  %v2209_v30 = vpop.permute.xlu1 %2208 }
 0xbc4   : > { %v8766_v7 = vpop.eup %8765  ;;  %8170 = vmatprep.mubr.msk.f32.mxu1 %vm1304_vm8, %v3022_v27 }
 0xbc5   : > { %v3024_v8 = vmul.f32 %v8766_v7, %v9730_v39  ;;  %v8768_v31 = vpop.eup %8767 }
 0xbc6   : > { %v3025_v40 = vmul.f32 %v8768_v31, %v9732_v54 }
 0xbc7   : > { %8171 = vmatmul.mubr.msk.f32.gmra.mxu1 %vm1304_vm8, %v3023_v32  ;;  %v2756_v27 = vpop.permute.xlu0 %2755  ;;  %v1666_v11 = vpop.permute.xlu1 %1665 }
 0xbc8   : > { %8173 = vmatprep.mubr.msk.f32.mxu1 %vm1304_vm8, %v3024_v8 }
 0xbcb   : > { %8174 = vmatmul.mubr.msk.f32.gmra.mxu1 %vm1304_vm8, %v3025_v40  ;;  %v2754_v7 = vpop.permute.xlu0 %2753  ;;  %v1668_v32 = vpop.permute.xlu1 %1667 }
 0xbcf   : > { %v2760_v8 = vpop.permute.xlu0 %2759  ;;  %v2213_v31 = vpop.permute.xlu1 %2212 }
 0xbd3   : > { %v2758_v40 = vpop.permute.xlu0 %2757 }
 0xc7f   : > { %v8166_v9 = vpop.f32.mrf.mxu1 }
 0xc81   : > { %v3122_v28 = vpop.f32.mrf.mxu1 }
 0xc82   : > { %8178 = vmatprep.mubr.msk.f32.mxu0 %vm1522_vm9, %v3122_v28  ;;  %v2764_v28 = vpop.permute.xlu0 %2763 }
 0xc83   : > { %v8169_v34 = vpop.f32.mrf.mxu1  ;;  %8179 = vmatmul.mubr.msk.f32.vlgmr.msra.gmra.mxu0 %vm1522_vm9, %v8166_v9  ;;  %v2215_v9 = vpop.permute.xlu1 %2214 }
 0xc84   : > { %8211 = vmatpush3.xpose.msk.msra.mxu0 %vm944_vm7, %v9643_v26 }
 0xc85   : > { %8212 = vmatprep.subr.msk.mxu0 %vm944_vm7, %v9801_v29  ;;  %v3132_v20 = vpop.f32.mrf.mxu1 }
 0xc86   : > { %8181 = vmatprep.mubr.msk.f32.mxu0 %vm1522_vm9, %v3132_v20  ;;  %v9887_v20 = vld [vmem:[%s10709_s5 + $0x2] ss:$0 sm:$0xff] }
 0xc87   : > { %v8172_v39 = vpop.f32.mrf.mxu1  ;;  %8182 = vmatmul.mubr.msk.f32.gmra.mxu0 %vm1522_vm9, %v8169_v34  ;;  %v2762_v34 = vpop.permute.xlu0 %2761 }
 0xc88   : > { %8213 = vmatpush3.xpose.msk.msra.mxu0 %vm944_vm7, %v9801_v29 }
 0xc89   : > { %v3142_v57 = vpop.f32.mrf.mxu1  ;;  %8242 = vmatprep.subr.mxu0 %v9812_v59 }
 0xc8a   : > { %8184 = vmatprep.mubr.msk.f32.mxu0 %vm1522_vm9, %v3142_v57 }
 0xc8b   : > { %v8175_v54 = vpop.f32.mrf.mxu1  ;;  %8185 = vmatmul.mubr.msk.f32.gmra.mxu0 %vm1522_vm9, %v8172_v39  ;;  %v1686_v39 = vadd.f32 %v9887_v20, %v1664_v38 }
 0xc8d   : > { %v3152_v3 = vpop.f32.mrf.mxu1 }
 0xc8e   : > { %8187 = vmatprep.mubr.msk.f32.mxu0 %vm1522_vm9, %v3152_v3 }
 0xc8f   : > { %8188 = vmatmul.mubr.msk.f32.gmra.mxu0 %vm1522_vm9, %v8175_v54  ;;  %v1685_v54 = vadd.f32 %v9887_v20, %v1662_v58 }
 0xc90   : > { %8214 = vmatprep.mubr.msk.f32.mxu0 %vm944_vm7, %v9556_v10 }
 0xc93   : > { %8215 = vmatmul.mubr.msk.f32.vlgmr.msra.gmra.mxu0 %vm944_vm7, %v9572_v52 }
 0xc94   : > { %8217 = vmatprep.mubr.msk.f32.mxu0 %vm944_vm7, %v9565_v18  ;;  %8243 = vmatpush3.msra.mxu0 %v9812_v59 }
 0xc97   : > { %8218 = vmatmul.mubr.msk.f32.gmra.mxu0 %vm944_vm7, %v9586_v19 }
 0xc98   : > { %8220 = vmatprep.mubr.msk.f32.mxu0 %vm944_vm7, %v9579_v45 }
 0xc9b   : > { %8221 = vmatmul.mubr.msk.f32.gmra.mxu0 %vm944_vm7, %v9600_v51 }
 0xc9c   : > { %8223 = vmatprep.mubr.msk.f32.mxu0 %vm944_vm7, %v9593_v48 }
 0xc9f   : > { %8224 = vmatmul.mubr.msk.f32.gmra.mxu0 %vm944_vm7, %v9607_v47 }
 0xd43   : > { %v8180_v10 = vpop.f32.mrf.mxu0 }
 0xd44   : > { %3300 = vrot.lane.b32.xlu0 %v8180_v10, %s8984_s28 }
 0xd45   : > { %v3251_v18 = vpop.f32.mrf.mxu0 }
 0xd47   : > { %v8183_v52 = vpop.f32.mrf.mxu0 }
 0xd48   : > { %3298 = vrot.lane.b32.xlu0 %v3251_v18, %s8984_s28  ;;  %v1688_v18 = vadd.f32 %v9887_v20, %v1668_v32 }
 0xd49   : > { %v3261_v19 = vpop.f32.mrf.mxu0 }
 0xd4b   : > { %v8186_v21 = vpop.f32.mrf.mxu0 }
 0xd4c   : > { %3304 = vrot.lane.b32.xlu0 %v8183_v52, %s8984_s28 }
 0xd4d   : > { %v3271_v45 = vpop.f32.mrf.mxu0 }
 0xd4f   : > { %v8189_v44 = vpop.f32.mrf.mxu0 }
 0xd50   : > { %3302 = vrot.lane.b32.xlu0 %v3261_v19, %s8984_s28 }
 0xd51   : > { %v3281_v51 = vpop.f32.mrf.mxu0 }
 0xd52   : > { %3310 = vrot.lane.b32.xlu1 %v3281_v51, %s8984_s28 }
 0xd53   : > { %v8216_v48 = vpop.f32.mrf.mxu0 }
 0xd54   : > { %3308 = vrot.lane.b32.xlu0 %v8186_v21, %s8984_s28  ;;  %v9845_v61 = vmul.f32 0.70710677, %v8216_v48  ;;  %v1687_v48 = vadd.f32 %v9887_v20, %v1666_v11 }
 0xd55   : > { %v3579_v47 = vpop.f32.mrf.mxu0 }
 0xd56   : > { %v9843_v46 = vmul.f32 0.70710677, %v3579_v47  ;;  %v3629_v14 = vsel %vm1304_vm8, %v9845_v61, -inf }
 0xd57   : > { %v8219_v43 = vpop.f32.mrf.mxu0 }
 0xd58   : > { %3306 = vrot.lane.b32.xlu0 %v3271_v45, %s8984_s28  ;;  %v9847_v24 = vmul.f32 0.70710677, %v8219_v43  ;;  %v3626_v62 = vsel %vm1304_vm8, %v9843_v46, -inf  ;;  %v2235_v45 = vadd.f32 %v2215_v9, %v1688_v18 }
 0xd59   : > { %v3589_v42 = vpop.f32.mrf.mxu0 }
 0xd5a   : > { %v9851_v49 = vmul.f32 0.70710677, %v3589_v42  ;;  %v3635_v16 = vsel %vm1304_vm8, %v9847_v24, -inf  ;;  %v2780_v47 = vadd.f32 %v2760_v8, %v2235_v45 }
 0xd5b   : > { %v8222_v56 = vpop.f32.mrf.mxu0 }
 0xd5c   : > { %v9855_v33 = vmul.f32 0.70710677, %v8222_v56  ;;  %v3632_v53 = vsel %vm1304_vm8, %v9851_v49, -inf  ;;  %v2234_v56 = vadd.f32 %v2213_v31, %v1687_v48 }
 0xd5d   : > { %v3599_v63 = vpop.f32.mrf.mxu0 }
 0xd5e   : > { %v9859_v23 = vmul.f32 0.70710677, %v3599_v63  ;;  %v3641_v55 = vsel %vm1304_vm8, %v9855_v33, -inf }
 0xd5f   : > { %v8225_v5 = vpop.f32.mrf.mxu0 }
 0xd60   : > { %v9863_v22 = vmul.f32 0.70710677, %v8225_v5  ;;  %v3638_v17 = vsel %vm1304_vm8, %v9859_v23, -inf }
 0xd61   : > { %v3609_v37 = vpop.f32.mrf.mxu0 }
 0xd62   : > { %v9867_v35 = vmul.f32 0.70710677, %v3609_v37  ;;  %v3647_v36 = vsel %vm1304_vm8, %v9863_v22, -inf }
 0xd64   : > { %v3644_v1 = vsel %vm1304_vm8, %v9867_v35, -inf }
 0xd76   : > { %3627 = vmax.xlane.f32.xlu1 %v3626_v62 }
 0xd77   : > { %3630 = vmax.xlane.f32.xlu0 %v3629_v14  ;;  %v2779_v14 = vadd.f32 %v2758_v40, %v2234_v56 }
 0xd7a   : > { %3636 = vmax.xlane.f32.xlu1 %v3635_v16 }
 0xd7b   : > { %3633 = vmax.xlane.f32.xlu0 %v3632_v53 }
 0xd7e   : > { %3642 = vmax.xlane.f32.xlu1 %v3641_v55 }
 0xd7f   : > { %3639 = vmax.xlane.f32.xlu0 %v3638_v17 }
 0xd82   : > { %3648 = vmax.xlane.f32.xlu1 %v3647_v36 }
 0xd83   : > { %3645 = vmax.xlane.f32.xlu0 %v3644_v1 }
 0xd93   : > { %3373 = vrot.lane.b32.xlu1 %v9618_v15, %s8973_s16  ;;  %v1670_v15 = vpop.permute.xlu1 %1669 }
 0xd94   : > { %v1689_v53 = vadd.f32 %v9887_v20, %v1670_v15 }
 0xd97   : > { %3367 = vrot.lane.b32.xlu1 %v9812_v59, %s8973_s16  ;;  %v1672_v57 = vpop.permute.xlu1 %1671  ;;  %v9890_v59 = vpop.permute.xlu0 %2767 }
 0xd98   : > { %v1690_v62 = vadd.f32 %v9887_v20, %v1672_v57 }
 0xd99   : > { %3312 = vrot.lane.b32.xlu0 %v8189_v44, %s8984_s28 }
 0xd9b   : > { %v2217_v19 = vpop.permute.xlu1 %2216 }
 0xd9c   : > { %v2236_v55 = vadd.f32 %v2217_v19, %v1689_v53 }
 0xd9d   : > { %3371 = vrot.lane.b32.xlu0 %v9670_v50, %s8973_s16  ;;  %v2233_v50 = vadd.f32 %v2211_v25, %v1686_v39 }
 0xd9e   : > { %v2781_v1 = vadd.f32 %v2762_v34, %v2236_v55 }
 0xd9f   : > { %v2778_v3 = vadd.f32 %v2756_v27, %v2233_v50  ;;  %v2219_v43 = vpop.permute.xlu1 %2218 }
 0xda0   : > { %v2237_v16 = vadd.f32 %v2219_v43, %v1690_v62 }
 0xda1   : > { %3369 = vrot.lane.b32.xlu0 %v9484_v2, %s8973_s16  ;;  %v2232_v2 = vadd.f32 %v2209_v30, %v1685_v54 }
 0xda2   : > { %v2782_v17 = vadd.f32 %v2764_v28, %v2237_v16 }
 0xda3   : > { %v2777_v21 = vadd.f32 %v2754_v7, %v2232_v2  ;;  %v1674_v30 = vpop.permute.xlu1 %1673 }
 0xda4   : > { %v1691_v45 = vadd.f32 %v9887_v20, %v1674_v30 }
 0xda7   : > { %v1676_v27 = vpop.permute.xlu1 %1675 }
 0xda8   : > { %v1692_v18 = vadd.f32 %v9887_v20, %v1676_v27 }
 0xdab   : > { %v2221_v11 = vpop.permute.xlu1 %2220 }
 0xdaf   : > { %v2223_v7 = vpop.permute.xlu1 %2222 }
 0xdb3   : > { %v2766_v32 = vpop.permute.xlu1 %2765 }
 0xdb6   : > { %v3301_v10 = vpop.permute.xlu0 %3300 }
 0xdb7   : > { %v3323_v52 = vadd.f32 %v3301_v10, %v2778_v3 }
 0xdb9   : > { %3349 = vrot.lane.b32.xlu0 %v3323_v52, %s8985_s7  ;;  %v2239_v52 = vadd.f32 %v2223_v7, %v1692_v18 }
 0xdba   : > { %v3299_v44 = vpop.permute.xlu0 %3298 }
 0xdbb   : > { %v3322_v51 = vadd.f32 %v3299_v44, %v2777_v21  ;;  %v2784_v44 = vadd.f32 %v9890_v59, %v2239_v52 }
 0xdbd   : > { %3347 = vrot.lane.b32.xlu0 %v3322_v51, %s8985_s7 }
 0xdbe   : > { %v3305_v42 = vpop.permute.xlu0 %3304 }
 0xdbf   : > { %v3325_v63 = vadd.f32 %v3305_v42, %v2780_v47 }
 0xdc1   : > { %3353 = vrot.lane.b32.xlu0 %v3325_v63, %s8985_s7 }
 0xdc2   : > { %v3303_v5 = vpop.permute.xlu0 %3302 }
 0xdc3   : > { %v3324_v37 = vadd.f32 %v3303_v5, %v2779_v14  ;;  %v9941_v5 = vadd.f32 %v9388_v12, %v9295_v41 }
 0xdc4   : > { %v3311_v8 = vpop.permute.xlu1 %3310 }
 0xdc5   : > { %3351 = vrot.lane.b32.xlu1 %v3324_v37, %s8985_s7 }
 0xdc6   : > { %v3309_v36 = vpop.permute.xlu0 %3308 }
 0xdc7   : > { %v3327_v58 = vadd.f32 %v3309_v36, %v2782_v17 }
 0xdc9   : > { %3357 = vrot.lane.b32.xlu1 %v3327_v58, %s8985_s7 }
 0xdca   : > { %v3307_v38 = vpop.permute.xlu0 %3306 }
 0xdcb   : > { %v3326_v25 = vadd.f32 %v3307_v38, %v2781_v1 }
 0xdcd   : > { %3355 = vrot.lane.b32.xlu1 %v3326_v25, %s8985_s7 }
 0xdff   : > { %v9903_v31 = vpop.xlane.xlu1 %3627 }
 0xe00   : > { %v3631_v40 = vpop.xlane.xlu0 %3630  ;;  %v3650_v12 = vsub.f32 %v9843_v46, %v9903_v31  ;;  %v9963_v46 = vadd.f32 %v9390_v13, %v9295_v41 }
 0xe01   : > { %v3651_v9 = vsub.f32 %v9845_v61, %v3631_v40 }
 0xe02   : > { %v3658_v58 = vmul.f32 1.442695, %v3650_v12 }
 0xe03   : > { %v3660_v28 = vmul.f32 1.442695, %v3651_v9  ;;  %v3637_v15 = vpop.xlane.xlu1 %3636 }
 0xe04   : > { %v3653_v39 = vsub.f32 %v9847_v24, %v3637_v15  ;;  %v3634_v34 = vpop.xlane.xlu0 %3633 }
 0xe05   : > { %8769 = vpow2.f32 %v3660_v28  ;;  %v3652_v57 = vsub.f32 %v9851_v49, %v3634_v34 }
 0xe06   : > { %v3664_v50 = vmul.f32 1.442695, %v3653_v39 }
 0xe07   : > { %v3662_v54 = vmul.f32 1.442695, %v3652_v57  ;;  %v3643_v3 = vpop.xlane.xlu1 %3642 }
 0xe08   : > { %8771 = vpow2.f32 %v3664_v50  ;;  %v3655_v10 = vsub.f32 %v9855_v33, %v3643_v3  ;;  %v3640_v2 = vpop.xlane.xlu0 %3639  ;;  %v2238_v33 = vadd.f32 %v2221_v11, %v1691_v45 }
 0xe09   : > { %8773 = vpow2.f32 %v3662_v54  ;;  %v3654_v1 = vsub.f32 %v9859_v23, %v3640_v2 }
 0xe0a   : > { %v3668_v61 = vmul.f32 1.442695, %v3655_v10  ;;  %v2783_v42 = vadd.f32 %v2766_v32, %v2238_v33 }
 0xe0b   : > { %v3649_v19 = vpop.xlane.xlu1 %3648  ;;  %v3666_v38 = vmul.f32 1.442695, %v3654_v1 }
 0xe0c   : > { %v3657_v21 = vsub.f32 %v9863_v22, %v3649_v19  ;;  %v3646_v24 = vpop.xlane.xlu0 %3645  ;;  %8775 = vpow2.f32 %v3668_v61  ;;  %v3328_v56 = vadd.f32 %v3311_v8, %v2783_v42 }
 0xe0d   : > { %v3656_v25 = vsub.f32 %v9867_v35, %v3646_v24 }
 0xe0e   : > { %v3672_v49 = vmul.f32 1.442695, %v3657_v21 }
 0xe0f   : > { %v9913_v51 = vpop.permute.xlu1 %3373  ;;  %v3670_v27 = vmul.f32 1.442695, %v3656_v25 }
 0xe10   : > { %v3313_v48 = vpop.permute.xlu0 %3312  ;;  %8190 = vmatprep.subr.mxu1 %v9913_v51  ;;  %8777 = vpow2.f32 %v3672_v49 }
 0xe11   : > { %v3329_v47 = vadd.f32 %v3313_v48, %v2784_v44  ;;  %8191 = vmatpush3.msra.mxu1 %v9913_v51  ;;  %8779 = vpow2.f32 %v3658_v58 }
 0xe12   : > { %v9917_v43 = vpop.eup %8769  ;;  %8781 = vpow2.f32 %v3666_v38 }
 0xe13   : > { %3361 = vrot.lane.b32.xlu1 %v3329_v47, %s8985_s7  ;;  %v3677_v22 = vsel %vm1304_vm8, %v9917_v43, 0.0  ;;  %v9935_v16 = vpop.permute.xlu1 %3367  ;;  %8783 = vpow2.f32 %v3670_v27 }
 0xe14   : > { %v9922_v20 = vpop.permute.xlu0 %3371  ;;  %3678 = vadd.xlane.f32.xlu0 %v3677_v22 }
 0xe15   : > { %v9924_v59 = vpop.eup %8771  ;;  %8192 = vmatprep.subr.mxu1 %v9922_v20 }
 0xe16   : > { %v3683_v62 = vsel %vm1304_vm8, %v9924_v59, 0.0  ;;  %8193 = vmatpush3.msra.mxu1 %v9922_v20  ;;  %v9931_v63 = vpop.eup %8773 }
 0xe17   : > { %3359 = vrot.lane.b32.xlu1 %v3328_v56, %s8985_s7  ;;  %v3680_v53 = vsel %vm1304_vm8, %v9931_v63, 0.0  ;;  %v8915_v56 = vld [vmem:[#allocation2 + $0x20] sm:$0xff] }
 0xe18   : > { %v9933_v14 = vpop.permute.xlu0 %3369  ;;  %3684 = vadd.xlane.f32.xlu0 %v3683_v62 }
 0xe19   : > { %8194 = vmatprep.subr.mxu1 %v9933_v14  ;;  %v9946_v37 = vpop.eup %8775 }
 0xe1a   : > { %8195 = vmatpush3.msra.mxu1 %v9933_v14  ;;  %v3689_v55 = vsel %vm1304_vm8, %v9946_v37, 0.0 }
 0xe1b   : > { %8196 = vmatprep.subr.mxu1 %v9935_v16 }
 0xe1c   : > { %3681 = vadd.xlane.f32.xlu0 %v3680_v53  ;;  %8197 = vmatpush3.msra.mxu1 %v9935_v16  ;;  %v10756_v53 = vld [vmem:[#allocation6_spill] sm:$0xff] }
 0xe1d   : > { %8226 = vmatprep.subr.mxu1 %v9941_v5  ;;  %v9952_v17 = vpop.eup %8777 }
 0xe1e   : > { %v3695_v36 = vsel %vm1304_vm8, %v9952_v17, 0.0  ;;  %v8780_v23 = vpop.eup %8779 }
 0xe1f   : > { %v3674_v41 = vsel %vm1304_vm8, %v8780_v23, 0.0  ;;  %v8782_v13 = vpop.eup %8781 }
 0xe20   : > { %3690 = vadd.xlane.f32.xlu0 %v3689_v55  ;;  %v3686_v8 = vsel %vm1304_vm8, %v8782_v13, 0.0  ;;  %v8784_v31 = vpop.eup %8783  ;;  %v10758_v55 = vld [vmem:[#allocation8_spill] sm:$0xff] }
 0xe21   : > { %v3692_v9 = vsel %vm1304_vm8, %v8784_v31, 0.0 }
 0xe24   : > { %3696 = vadd.xlane.f32.xlu0 %v3695_v36 }
 0xe2b   : > { %v3350_v30 = vpop.permute.xlu0 %3349 }
 0xe2f   : > { %v3348_v11 = vpop.permute.xlu0 %3347 }
 0xe30   : > { %8198 = vmatprep.mubr.msk.f32.mxu1 %vm691_vm5, %v3348_v11 }
 0xe31   : > { %8199 = vmatmul.mubr.msk.f32.vlgmr.msra.gmra.mxu1 %vm691_vm5, %v3350_v30 }
 0xe32   : > { %8227 = vmatpush3.msra.mxu1 %v9941_v5 }
 0xe33   : > { %8228 = vmatprep.subr.mxu1 %v9963_v46  ;;  %v3354_v7 = vpop.permute.xlu0 %3353 }
 0xe34   : > { %8229 = vmatpush3.msra.mxu1 %v9963_v46 }
 0xe37   : > { %v3352_v35 = vpop.permute.xlu1 %3351 }
 0xe38   : > { %8201 = vmatprep.mubr.msk.f32.mxu1 %vm691_vm5, %v3352_v35 }
 0xe39   : > { %8202 = vmatmul.mubr.msk.f32.gmra.mxu1 %vm691_vm5, %v3354_v7 }
 0xe3a   : > { %4012 = vrot.lane.b32.xlu0 %v9801_v29, %s8978_s17 }
 0xe3b   : > { %3675 = vadd.xlane.f32.xlu1 %v3674_v41  ;;  %v3358_v32 = vpop.permute.xlu1 %3357 }
 0xe3f   : > { %3687 = vadd.xlane.f32.xlu1 %v3686_v8  ;;  %v3356_v40 = vpop.permute.xlu1 %3355 }
 0xe40   : > { %8204 = vmatprep.mubr.msk.f32.mxu1 %vm691_vm5, %v3356_v40 }
 0xe41   : > { %8205 = vmatmul.mubr.msk.f32.gmra.mxu1 %vm691_vm5, %v3358_v32 }
 0xe43   : > { %3693 = vadd.xlane.f32.xlu1 %v3692_v9 }
 0xe54   : > { %4014 = vrot.lane.b32.xlu1 %v9643_v26, %s8978_s17 }
 0xe85   : > { %v3362_v28 = vpop.permute.xlu1 %3361 }
 0xe89   : > { %v3360_v15 = vpop.permute.xlu1 %3359 }
 0xe8a   : > { %8207 = vmatprep.mubr.msk.f32.mxu1 %vm691_vm5, %v3360_v15 }
 0xe8b   : > { %8208 = vmatmul.mubr.msk.f32.gmra.mxu1 %vm691_vm5, %v3362_v28 }
 0xe9d   : > { %v3679_v39 = vpop.xlane.xlu0 %3678 }
 0xe9e   : > { %8785 = vrcp.f32 %v3679_v39 }
 0xea1   : > { %v3685_v34 = vpop.xlane.xlu0 %3684 }
 0xea5   : > { %v3682_v57 = vpop.xlane.xlu0 %3681 }
 0xea6   : > { %8787 = vrcp.f32 %v3682_v57 }
 0xea9   : > { %v3691_v54 = vpop.xlane.xlu0 %3690 }
 0xeab   : > { %v8786_v18 = vpop.eup %8785 }
 0xeac   : > { %v3707_v24 = vmul.f32 %v8786_v18, %v9917_v43 }
 0xead   : > { %v3697_v2 = vpop.xlane.xlu0 %3696 }
 0xeb1   : > { %v4013_v48 = vpop.permute.xlu0 %4012 }
 0xeb3   : > { %v8788_v61 = vpop.eup %8787 }
 0xeb4   : > { %v3708_v49 = vmul.f32 %v8788_v61, %v9931_v63 }
 0xec4   : > { %v3676_v50 = vpop.xlane.xlu1 %3675 }
 0xec5   : > { %8789 = vrcp.f32 %v3676_v50 }
 0xec6   : > { %8791 = vrcp.f32 %v3685_v34 }
 0xec8   : > { %v3688_v3 = vpop.xlane.xlu1 %3687 }
 0xec9   : > { %8793 = vrcp.f32 %v3688_v3 }
 0xeca   : > { %8795 = vrcp.f32 %v3691_v54 }
 0xecc   : > { %v3694_v10 = vpop.xlane.xlu1 %3693 }
 0xecd   : > { %8797 = vrcp.f32 %v3694_v10 }
 0xece   : > { %8799 = vrcp.f32 %v3697_v2 }
 0xed0   : > { %v4015_v52 = vpop.permute.xlu1 %4014 }
 0xed1   : > { %8256 = vmatprep.subr.msk.mxu1 %vm944_vm7, %v4015_v52 }
 0xed2   : > { %v8790_v19 = vpop.eup %8789 }
 0xed3   : > { %v3706_v21 = vmul.f32 %v8790_v19, %v8780_v23  ;;  %v8792_v45 = vpop.eup %8791 }
 0xed4   : > { %v3709_v33 = vmul.f32 %v8792_v45, %v9924_v59 }
 0xed5   : > { %8230 = vmatprep.mubr.msk.f32.mxu1 %vm1304_vm8, %v3706_v21 }
 0xed6   : > { %v8794_v44 = vpop.eup %8793  ;;  %8231 = vmatmul.mubr.msk.f32.vlgmr.msra.gmra.mxu1 %vm1304_vm8, %v3707_v24 }
 0xed7   : > { %8257 = vmatpush3.xpose.msk.msra.mxu1 %vm944_vm7, %v4015_v52  ;;  %8233 = vmatprep.mubr.msk.f32.mxu1 %vm1304_vm8, %v3708_v49  ;;  %v8796_v47 = vpop.eup %8795  ;;  %v3710_v42 = vmul.f32 %v8794_v44, %v8782_v13 }
 0xed8   : > { %8258 = vmatprep.subr.msk.mxu1 %vm944_vm7, %v4013_v48  ;;  %v3711_v22 = vmul.f32 %v8796_v47, %v9946_v37  ;;  %v10757_v37 = vld [vmem:[#allocation7_spill] sm:$0xff] }
 0xeda   : > { %v8798_v43 = vpop.eup %8797  ;;  %8234 = vmatmul.mubr.msk.f32.gmra.mxu1 %vm1304_vm8, %v3709_v33 }
 0xedb   : > { %8259 = vmatpush3.xpose.msk.msra.mxu1 %vm944_vm7, %v4013_v48  ;;  %8236 = vmatprep.mubr.msk.f32.mxu1 %vm1304_vm8, %v3710_v42  ;;  %v8800_v62 = vpop.eup %8799  ;;  %v3712_v63 = vmul.f32 %v8798_v43, %v8784_v31 }
 0xedc   : > { %8288 = vmatprep.subr.mxu1 %v8915_v56  ;;  %v3713_v59 = vmul.f32 %v8800_v62, %v9952_v17 }
 0xede   : > { %8237 = vmatmul.mubr.msk.f32.gmra.mxu1 %vm1304_vm8, %v3711_v22 }
 0xedf   : > { %8239 = vmatprep.mubr.msk.f32.mxu1 %vm1304_vm8, %v3712_v63 }
 0xee2   : > { %8240 = vmatmul.mubr.msk.f32.gmra.mxu1 %vm1304_vm8, %v3713_v59 }
 0xee3   : > { %8260 = vmatprep.mubr.msk.f32.mxu1 %vm944_vm7, %v9353_v6  ;;  %v10759_v6 = vld [vmem:[#allocation9_spill] sm:$0xff] }
 0xee6   : > { %8261 = vmatmul.mubr.msk.f32.vlgmr.msra.gmra.mxu1 %vm944_vm7, %v9355_v60 }
 0xee7   : > { %8263 = vmatprep.mubr.msk.f32.mxu1 %vm944_vm7, %v9358_v0  ;;  %8289 = vmatpush3.msra.mxu1 %v8915_v56 }
 0xeea   : > { %8264 = vmatmul.mubr.msk.f32.gmra.mxu1 %vm944_vm7, %v9364_v4 }
 0xeeb   : > { %8266 = vmatprep.mubr.msk.f32.mxu1 %vm944_vm7, %v10756_v53 }
 0xeee   : > { %8267 = vmatmul.mubr.msk.f32.gmra.mxu1 %vm944_vm7, %v10757_v37 }
 0xeef   : > { %8269 = vmatprep.mubr.msk.f32.mxu1 %vm944_vm7, %v10758_v55 }
 0xef1   : > { %v10015_v60 = vpop.f32.mrf.mxu1 }
 0xef2   : > { %8270 = vmatmul.mubr.msk.f32.gmra.mxu1 %vm944_vm7, %v10759_v6 }
 0xef3   : > { %v10017_v17 = vpop.f32.mrf.mxu1 }
 0xef9   : > { %v10019_v0 = vpop.f32.mrf.mxu1 }
 0xefb   : > { %v10021_v12 = vpop.f32.mrf.mxu1 }
 0xf01   : > { %v10023_v4 = vpop.f32.mrf.mxu1 }
 0xf03   : > { %v10025_v36 = vpop.f32.mrf.mxu1 }
 0xf4b   : > { %v10027_v58 = vpop.f32.mrf.mxu1 }
 0xf4d   : > { %v10029_v1 = vpop.f32.mrf.mxu1 }
 0xf96   : > { %v8232_v38 = vpop.f32.mrf.mxu1 }
 0xf98   : > { %v3804_v25 = vpop.f32.mrf.mxu1 }
 0xf99   : > { %8244 = vmatprep.mubr.msk.f32.mxu0 %vm1522_vm9, %v3804_v25 }
 0xf9a   : > { %v8235_v30 = vpop.f32.mrf.mxu1  ;;  %8245 = vmatmul.mubr.msk.f32.vlgmr.msra.gmra.mxu0 %vm1522_vm9, %v8232_v38 }
 0xf9c   : > { %v3814_v27 = vpop.f32.mrf.mxu1 }
 0xf9d   : > { %8247 = vmatprep.mubr.msk.f32.mxu0 %vm1522_vm9, %v3814_v27 }
 0xf9e   : > { %v8238_v11 = vpop.f32.mrf.mxu1  ;;  %8248 = vmatmul.mubr.msk.f32.gmra.mxu0 %vm1522_vm9, %v8235_v30 }
 0xfa0   : > { %v3824_v23 = vpop.f32.mrf.mxu1 }
 0xfa1   : > { %8250 = vmatprep.mubr.msk.f32.mxu0 %vm1522_vm9, %v3824_v23 }
 0xfa2   : > { %v8241_v35 = vpop.f32.mrf.mxu1  ;;  %8251 = vmatmul.mubr.msk.f32.gmra.mxu0 %vm1522_vm9, %v8238_v11 }
 0xfa4   : > { %v3834_v7 = vpop.f32.mrf.mxu1 }
 0xfa5   : > { %8253 = vmatprep.mubr.msk.f32.mxu0 %vm1522_vm9, %v3834_v7 }
 0xfa6   : > { %8254 = vmatmul.mubr.msk.f32.gmra.mxu0 %vm1522_vm9, %v8241_v35  ;;  %v8262_v41 = vpop.f32.mrf.mxu1 }
 0xfa7   : > { %v4126_v13 = vmul.f32 0.70710677, %v8262_v41 }
 0xfa8   : > { %v4086_v32 = vpop.f32.mrf.mxu1 }
 0xfa9   : > { %v4125_v8 = vmul.f32 0.70710677, %v4086_v32  ;;  %v4136_v31 = vsel %vm1304_vm8, %v4126_v13, -inf }
 0xfaa   : > { %4137 = vmax.xlane.f32.xlu0 %v4136_v31  ;;  %v8265_v40 = vpop.f32.mrf.mxu1 }
 0xfab   : > { %v4128_v9 = vmul.f32 0.70710677, %v8265_v40  ;;  %v4133_v28 = vsel %vm1304_vm8, %v4125_v8, -inf }
 0xfac   : > { %4134 = vmax.xlane.f32.xlu1 %v4133_v28  ;;  %v4096_v15 = vpop.f32.mrf.mxu1 }
 0xfad   : > { %v4127_v39 = vmul.f32 0.70710677, %v4096_v15  ;;  %v4142_v50 = vsel %vm1304_vm8, %v4128_v9, -inf }
 0xfae   : > { %v8268_v34 = vpop.f32.mrf.mxu1 }
 0xfaf   : > { %v4130_v57 = vmul.f32 0.70710677, %v8268_v34  ;;  %v4139_v54 = vsel %vm1304_vm8, %v4127_v39, -inf }
 0xfb0   : > { %4143 = vmax.xlane.f32.xlu1 %v4142_v50  ;;  %4140 = vmax.xlane.f32.xlu0 %v4139_v54  ;;  %v4106_v3 = vpop.f32.mrf.mxu1 }
 0xfb1   : > { %v4129_v10 = vmul.f32 0.70710677, %v4106_v3  ;;  %v4148_v52 = vsel %vm1304_vm8, %v4130_v57, -inf }
 0xfb2   : > { %v8271_v2 = vpop.f32.mrf.mxu1 }
 0xfb3   : > { %v4132_v18 = vmul.f32 0.70710677, %v8271_v2  ;;  %v4145_v61 = vsel %vm1304_vm8, %v4129_v10, -inf }
 0xfb4   : > { %4149 = vmax.xlane.f32.xlu1 %v4148_v52  ;;  %4146 = vmax.xlane.f32.xlu0 %v4145_v61  ;;  %v4116_v19 = vpop.f32.mrf.mxu1 }
 0xfb5   : > { %v4131_v21 = vmul.f32 0.70710677, %v4116_v19  ;;  %v4154_v24 = vsel %vm1304_vm8, %v4132_v18, -inf }
 0xfb7   : > { %v4151_v45 = vsel %vm1304_vm8, %v4131_v21, -inf }
 0xfb8   : > { %4155 = vmax.xlane.f32.xlu1 %v4154_v24  ;;  %4152 = vmax.xlane.f32.xlu0 %v4151_v45 }
 0xfc9   : > { %4223 = vrot.lane.b32.xlu1 %v9963_v46, %s8979_s18 }
 0xfce   : > { %4225 = vrot.lane.b32.xlu0 %v9941_v5, %s8979_s18 }
0x1033   : > { %v4138_v49 = vpop.xlane.xlu0 %4137 }
0x1034   : > { %v4158_v44 = vsub.f32 %v4126_v13, %v4138_v49 }
0x1035   : > { %v4135_v48 = vpop.xlane.xlu1 %4134 }
0x1036   : > { %v4167_v33 = vmul.f32 1.442695, %v4158_v44  ;;  %v4157_v47 = vsub.f32 %v4125_v8, %v4135_v48 }
0x1038   : > { %8801 = vpow2.f32 %v4167_v33  ;;  %v4165_v42 = vmul.f32 1.442695, %v4157_v47 }
0x1039   : > { %v4144_v43 = vpop.xlane.xlu1 %4143  ;;  %v4141_v22 = vpop.xlane.xlu0 %4140 }
0x103a   : > { %8803 = vpow2.f32 %v4165_v42  ;;  %v4160_v56 = vsub.f32 %v4128_v9, %v4144_v43  ;;  %v4159_v62 = vsub.f32 %v4127_v39, %v4141_v22 }
0x103c   : > { %v4171_v63 = vmul.f32 1.442695, %v4160_v56  ;;  %v4169_v59 = vmul.f32 1.442695, %v4159_v62 }
0x103d   : > { %v4150_v53 = vpop.xlane.xlu1 %4149  ;;  %v4147_v37 = vpop.xlane.xlu0 %4146 }
0x103e   : > { %8805 = vpow2.f32 %v4171_v63  ;;  %v4162_v55 = vsub.f32 %v4130_v57, %v4150_v53  ;;  %v4161_v6 = vsub.f32 %v4129_v10, %v4147_v37 }
0x103f   : > { %8807 = vpow2.f32 %v4169_v59 }
0x1040   : > { %v4175_v38 = vmul.f32 1.442695, %v4162_v55  ;;  %v4173_v25 = vmul.f32 1.442695, %v4161_v6 }
0x1041   : > { %v4156_v30 = vpop.xlane.xlu1 %4155  ;;  %v4153_v27 = vpop.xlane.xlu0 %4152 }
0x1042   : > { %8809 = vpow2.f32 %v4175_v38  ;;  %v4164_v11 = vsub.f32 %v4132_v18, %v4156_v30  ;;  %v4163_v23 = vsub.f32 %v4131_v21, %v4153_v27  ;;  %v8916_v38 = vld [vmem:[#allocation2 + $0x38] sm:$0xff] }
0x1043   : > { %8811 = vpow2.f32 %v4173_v25 }
0x1044   : > { %v4179_v35 = vmul.f32 1.442695, %v4164_v11  ;;  %v4177_v7 = vmul.f32 1.442695, %v4163_v23  ;;  %v10760_v23 = vld [vmem:[#allocation10_spill] sm:$0xff] }
0x1045   : > { %v8802_v41 = vpop.eup %8801  ;;  %v4226_v13 = vpop.permute.xlu0 %4225 }
0x1046   : > { %8813 = vpow2.f32 %v4179_v35  ;;  %8272 = vmatprep.subr.mxu0 %v4226_v13  ;;  %v4184_v32 = vsel %vm1304_vm8, %v8802_v41, 0.0  ;;  %v4224_v31 = vpop.permute.xlu1 %4223  ;;  %v10761_v35 = vld [vmem:[#allocation11_spill] sm:$0xff] }
0x1047   : > { %v8804_v8 = vpop.eup %8803  ;;  %8815 = vpow2.f32 %v4177_v7  ;;  %4185 = vadd.xlane.f32.xlu1 %v4184_v32  ;;  %8273 = vmatpush3.msra.mxu0 %v4226_v13  ;;  %v10762_v7 = vld [vmem:[#allocation12_spill] sm:$0xff]  ;;  %v10764_v13 = vld [vmem:[#allocation14_spill] sm:$0xff]  ;;  %v10765_v32 = vld [vmem:[#allocation15_spill] sm:$0xff] }
0x1048   : > { %8274 = vmatprep.subr.mxu0 %v4224_v31  ;;  %v4181_v40 = vsel %vm1304_vm8, %v8804_v8, 0.0 }
0x1049   : > { %4182 = vadd.xlane.f32.xlu0 %v4181_v40  ;;  %8275 = vmatpush3.msra.mxu0 %v4224_v31  ;;  %v10767_v31 = vld [vmem:[#allocation17_spill] sm:$0xff] }
0x104b   : > { %v8806_v9 = vpop.eup %8805 }
0x104c   : > { %v8808_v28 = vpop.eup %8807  ;;  %v4190_v15 = vsel %vm1304_vm8, %v8806_v9, 0.0 }
0x104d   : > { %4191 = vadd.xlane.f32.xlu1 %v4190_v15  ;;  %v4187_v39 = vsel %vm1304_vm8, %v8808_v28, 0.0 }
0x104e   : > { %4188 = vadd.xlane.f32.xlu0 %v4187_v39 }
0x104f   : > { %v8810_v34 = vpop.eup %8809 }
0x1050   : > { %v8812_v57 = vpop.eup %8811  ;;  %v4196_v50 = vsel %vm1304_vm8, %v8810_v34, 0.0 }
0x1051   : > { %4197 = vadd.xlane.f32.xlu1 %v4196_v50  ;;  %v4193_v54 = vsel %vm1304_vm8, %v8812_v57, 0.0 }
0x1052   : > { %4194 = vadd.xlane.f32.xlu0 %v4193_v54 }
0x1053   : > { %v8814_v3 = vpop.eup %8813 }
0x1054   : > { %v8816_v10 = vpop.eup %8815  ;;  %v4202_v2 = vsel %vm1304_vm8, %v8814_v3, 0.0 }
0x1055   : > { %4203 = vadd.xlane.f32.xlu1 %v4202_v2  ;;  %v4199_v18 = vsel %vm1304_vm8, %v8816_v10, 0.0 }
0x1056   : > { %4200 = vadd.xlane.f32.xlu0 %v4199_v18 }
0x105a   : > { %v10091_v40 = vpop.f32.mrf.mxu0 }
0x1066   : > { %4529 = vrot.lane.b32.xlu1 %v9643_v26, %s8980_s20 }
0x106c   : > { %4527 = vrot.lane.b32.xlu0 %v9801_v29, %s8980_s20 }
0x10d0   : > { %v4186_v52 = vpop.xlane.xlu1 %4185 }
0x10d1   : > { %8817 = vrcp.f32 %v4186_v52 }
0x10d2   : > { %v4183_v61 = vpop.xlane.xlu0 %4182 }
0x10d3   : > { %8819 = vrcp.f32 %v4183_v61 }
0x10d6   : > { %v4192_v19 = vpop.xlane.xlu1 %4191 }
0x10d7   : > { %8821 = vrcp.f32 %v4192_v19  ;;  %v4189_v21 = vpop.xlane.xlu0 %4188 }
0x10d8   : > { %8823 = vrcp.f32 %v4189_v21 }
0x10da   : > { %v4198_v24 = vpop.xlane.xlu1 %4197 }
0x10db   : > { %8825 = vrcp.f32 %v4198_v24  ;;  %v4195_v45 = vpop.xlane.xlu0 %4194 }
0x10dc   : > { %8827 = vrcp.f32 %v4195_v45 }
0x10de   : > { %v4204_v49 = vpop.xlane.xlu1 %4203  ;;  %v8818_v44 = vpop.eup %8817 }
0x10df   : > { %8829 = vrcp.f32 %v4204_v49  ;;  %v4201_v48 = vpop.xlane.xlu0 %4200  ;;  %v4214_v42 = vmul.f32 %v8818_v44, %v8802_v41  ;;  %v10763_v41 = vld [vmem:[#allocation13_spill] sm:$0xff] }
0x10e0   : > { %v8820_v33 = vpop.eup %8819  ;;  %8831 = vrcp.f32 %v4201_v48 }
0x10e1   : > { %v4213_v47 = vmul.f32 %v8820_v33, %v8804_v8  ;;  %v10766_v8 = vld [vmem:[#allocation16_spill] sm:$0xff] }
0x10e2   : > { %v4530_v43 = vpop.permute.xlu1 %4529 }
0x10e3   : > { %8276 = vmatprep.mubr.msk.f32.mxu0 %vm1304_vm8, %v4213_v47  ;;  %8302 = vmatprep.subr.msk.mxu0 %vm944_vm7, %v4530_v43  ;;  %v4528_v62 = vpop.permute.xlu0 %4527 }
0x10e4   : > { %v8822_v22 = vpop.eup %8821  ;;  %8277 = vmatmul.mubr.msk.f32.vlgmr.msra.gmra.mxu0 %vm1304_vm8, %v4214_v42 }
0x10e5   : > { %v8824_v56 = vpop.eup %8823  ;;  %8303 = vmatpush3.xpose.msk.msra.mxu0 %vm944_vm7, %v4530_v43  ;;  %v4216_v63 = vmul.f32 %v8822_v22, %v8806_v9  ;;  %v10093_v9 = vpop.f32.mrf.mxu0 }
0x10e6   : > { %8304 = vmatprep.subr.msk.mxu0 %vm944_vm7, %v4528_v62  ;;  %v4215_v59 = vmul.f32 %v8824_v56, %v8808_v28 }
0x10e7   : > { %v10095_v28 = vpop.f32.mrf.mxu0 }
0x10e8   : > { %v8826_v53 = vpop.eup %8825  ;;  %8279 = vmatprep.mubr.msk.f32.mxu0 %vm1304_vm8, %v4215_v59 }
0x10e9   : > { %v8828_v37 = vpop.eup %8827  ;;  %8280 = vmatmul.mubr.msk.f32.gmra.mxu0 %vm1304_vm8, %v4216_v63  ;;  %v4218_v55 = vmul.f32 %v8826_v53, %v8810_v34  ;;  %v10097_v15 = vpop.f32.mrf.mxu0 }
0x10ea   : > { %8305 = vmatpush3.xpose.msk.msra.mxu0 %vm944_vm7, %v4528_v62  ;;  %v4217_v6 = vmul.f32 %v8828_v37, %v8812_v57 }
0x10eb   : > { %8334 = vmatprep.subr.mxu0 %v8916_v38  ;;  %v10099_v39 = vpop.f32.mrf.mxu0 }
0x10ec   : > { %v8830_v25 = vpop.eup %8829  ;;  %8282 = vmatprep.mubr.msk.f32.mxu0 %vm1304_vm8, %v4217_v6 }
0x10ed   : > { %v8832_v30 = vpop.eup %8831  ;;  %8283 = vmatmul.mubr.msk.f32.gmra.mxu0 %vm1304_vm8, %v4218_v55  ;;  %v4220_v27 = vmul.f32 %v8830_v25, %v8814_v3  ;;  %v10101_v34 = vpop.f32.mrf.mxu0 }
0x10ee   : > { %v4219_v11 = vmul.f32 %v8832_v30, %v8816_v10 }
0x10ef   : > { %v10103_v57 = vpop.f32.mrf.mxu0 }
0x10f0   : > { %8285 = vmatprep.mubr.msk.f32.mxu0 %vm1304_vm8, %v4219_v11 }
0x10f1   : > { %8286 = vmatmul.mubr.msk.f32.gmra.mxu0 %vm1304_vm8, %v4220_v27  ;;  %v10105_v50 = vpop.f32.mrf.mxu0 }
0x10f2   : > { %8306 = vmatprep.mubr.msk.f32.mxu0 %vm944_vm7, %v10760_v23 }
0x10f5   : > { %8307 = vmatmul.mubr.msk.f32.vlgmr.msra.gmra.mxu0 %vm944_vm7, %v10761_v35 }
0x10f6   : > { %8309 = vmatprep.mubr.msk.f32.mxu0 %vm944_vm7, %v10762_v7  ;;  %8335 = vmatpush3.msra.mxu0 %v8916_v38 }
0x10f9   : > { %8310 = vmatmul.mubr.msk.f32.gmra.mxu0 %vm944_vm7, %v10763_v41 }
0x10fa   : > { %8312 = vmatprep.mubr.msk.f32.mxu0 %vm944_vm7, %v10764_v13 }
0x10fd   : > { %8313 = vmatmul.mubr.msk.f32.gmra.mxu0 %vm944_vm7, %v10765_v32 }
0x10fe   : > { %8315 = vmatprep.mubr.msk.f32.mxu0 %vm944_vm7, %v10766_v8 }
0x1101   : > { %8316 = vmatmul.mubr.msk.f32.gmra.mxu0 %vm944_vm7, %v10767_v31 }
0x11a4   : > { %v8278_v54 = vpop.f32.mrf.mxu0 }
0x11a6   : > { %v4319_v3 = vpop.f32.mrf.mxu0 }
0x11a7   : > { %8290 = vmatprep.mubr.msk.f32.mxu1 %vm1522_vm9, %v4319_v3 }
0x11a8   : > { %8291 = vmatmul.mubr.msk.f32.vlgmr.msra.gmra.mxu1 %vm1522_vm9, %v8278_v54 }
0x11a9   : > { %v8281_v10 = vpop.f32.mrf.mxu0 }
0x11ab   : > { %v4329_v2 = vpop.f32.mrf.mxu0 }
0x11ac   : > { %8293 = vmatprep.mubr.msk.f32.mxu1 %vm1522_vm9, %v4329_v2 }
0x11ad   : > { %v8284_v18 = vpop.f32.mrf.mxu0  ;;  %8294 = vmatmul.mubr.msk.f32.gmra.mxu1 %vm1522_vm9, %v8281_v10 }
0x11af   : > { %v4339_v52 = vpop.f32.mrf.mxu0 }
0x11b0   : > { %8296 = vmatprep.mubr.msk.f32.mxu1 %vm1522_vm9, %v4339_v52 }
0x11b1   : > { %v8287_v61 = vpop.f32.mrf.mxu0  ;;  %8297 = vmatmul.mubr.msk.f32.gmra.mxu1 %vm1522_vm9, %v8284_v18 }
0x11b3   : > { %v4349_v19 = vpop.f32.mrf.mxu0 }
0x11b4   : > { %8299 = vmatprep.mubr.msk.f32.mxu1 %vm1522_vm9, %v4349_v19 }
0x11b5   : > { %8300 = vmatmul.mubr.msk.f32.gmra.mxu1 %vm1522_vm9, %v8287_v61  ;;  %v8308_v21 = vpop.f32.mrf.mxu0 }
0x11b6   : > { %v4641_v24 = vmul.f32 0.70710677, %v8308_v21 }
0x11b7   : > { %v4601_v45 = vpop.f32.mrf.mxu0 }
0x11b8   : > { %v4640_v49 = vmul.f32 0.70710677, %v4601_v45  ;;  %v4651_v44 = vsel %vm1304_vm8, %v4641_v24, -inf }
0x11b9   : > { %4652 = vmax.xlane.f32.xlu0 %v4651_v44  ;;  %v8311_v48 = vpop.f32.mrf.mxu0 }
0x11ba   : > { %v4643_v33 = vmul.f32 0.70710677, %v8311_v48  ;;  %v4648_v47 = vsel %vm1304_vm8, %v4640_v49, -inf }
0x11bb   : > { %4649 = vmax.xlane.f32.xlu1 %v4648_v47  ;;  %v4611_v42 = vpop.f32.mrf.mxu0 }
0x11bc   : > { %v4642_v43 = vmul.f32 0.70710677, %v4611_v42  ;;  %v4657_v62 = vsel %vm1304_vm8, %v4643_v33, -inf }
0x11bd   : > { %v8314_v22 = vpop.f32.mrf.mxu0 }
0x11be   : > { %v4645_v56 = vmul.f32 0.70710677, %v8314_v22  ;;  %v4654_v63 = vsel %vm1304_vm8, %v4642_v43, -inf }
0x11bf   : > { %4658 = vmax.xlane.f32.xlu1 %v4657_v62  ;;  %4655 = vmax.xlane.f32.xlu0 %v4654_v63  ;;  %v4621_v59 = vpop.f32.mrf.mxu0 }
0x11c0   : > { %v4644_v53 = vmul.f32 0.70710677, %v4621_v59  ;;  %v4663_v6 = vsel %vm1304_vm8, %v4645_v56, -inf }
0x11c1   : > { %v8317_v37 = vpop.f32.mrf.mxu0 }
0x11c2   : > { %v4647_v55 = vmul.f32 0.70710677, %v8317_v37  ;;  %v4660_v38 = vsel %vm1304_vm8, %v4644_v53, -inf }
0x11c3   : > { %4664 = vmax.xlane.f32.xlu1 %v4663_v6  ;;  %4661 = vmax.xlane.f32.xlu0 %v4660_v38  ;;  %v4631_v25 = vpop.f32.mrf.mxu0 }
0x11c4   : > { %v4646_v30 = vmul.f32 0.70710677, %v4631_v25  ;;  %v4669_v27 = vsel %vm1304_vm8, %v4647_v55, -inf }
0x11c6   : > { %v4666_v11 = vsel %vm1304_vm8, %v4646_v30, -inf }
0x11c7   : > { %4670 = vmax.xlane.f32.xlu1 %v4669_v27  ;;  %4667 = vmax.xlane.f32.xlu0 %v4666_v11 }
0x11d8   : > { %4736 = vrot.lane.b32.xlu1 %v9963_v46, %s8981_s22 }
0x11dd   : > { %4738 = vrot.lane.b32.xlu0 %v9941_v5, %s8981_s22 }
0x1242   : > { %v4653_v23 = vpop.xlane.xlu0 %4652 }
0x1243   : > { %v4673_v35 = vsub.f32 %v4641_v24, %v4653_v23 }
0x1244   : > { %v4650_v7 = vpop.xlane.xlu1 %4649 }
0x1245   : > { %v4682_v41 = vmul.f32 1.442695, %v4673_v35  ;;  %v4672_v13 = vsub.f32 %v4640_v49, %v4650_v7 }
0x1247   : > { %8833 = vpow2.f32 %v4682_v41  ;;  %v4680_v32 = vmul.f32 1.442695, %v4672_v13 }
0x1248   : > { %v4659_v8 = vpop.xlane.xlu1 %4658  ;;  %v4656_v31 = vpop.xlane.xlu0 %4655 }
0x1249   : > { %8835 = vpow2.f32 %v4680_v32  ;;  %v4675_v54 = vsub.f32 %v4643_v33, %v4659_v8  ;;  %v4674_v3 = vsub.f32 %v4642_v43, %v4656_v31 }
0x124b   : > { %v4686_v10 = vmul.f32 1.442695, %v4675_v54  ;;  %v4684_v2 = vmul.f32 1.442695, %v4674_v3 }
0x124c   : > { %v4665_v18 = vpop.xlane.xlu1 %4664  ;;  %v4662_v52 = vpop.xlane.xlu0 %4661 }
0x124d   : > { %8837 = vpow2.f32 %v4686_v10  ;;  %v4677_v61 = vsub.f32 %v4645_v56, %v4665_v18  ;;  %v4676_v19 = vsub.f32 %v4644_v53, %v4662_v52 }
0x124e   : > { %8839 = vpow2.f32 %v4684_v2 }
0x124f   : > { %v4690_v21 = vmul.f32 1.442695, %v4677_v61  ;;  %v4688_v24 = vmul.f32 1.442695, %v4676_v19 }
0x1250   : > { %v4671_v45 = vpop.xlane.xlu1 %4670  ;;  %v4668_v44 = vpop.xlane.xlu0 %4667 }
0x1251   : > { %8841 = vpow2.f32 %v4690_v21  ;;  %v4679_v49 = vsub.f32 %v4647_v55, %v4671_v45  ;;  %v4678_v48 = vsub.f32 %v4646_v30, %v4668_v44 }
0x1252   : > { %8843 = vpow2.f32 %v4688_v24 }
0x1253   : > { %v4694_v47 = vmul.f32 1.442695, %v4679_v49  ;;  %v4692_v42 = vmul.f32 1.442695, %v4678_v48 }
0x1254   : > { %v8834_v33 = vpop.eup %8833  ;;  %v4739_v43 = vpop.permute.xlu0 %4738 }
0x1255   : > { %8845 = vpow2.f32 %v4694_v47  ;;  %8318 = vmatprep.subr.mxu1 %v4739_v43  ;;  %v4699_v22 = vsel %vm1304_vm8, %v8834_v33, 0.0  ;;  %v4737_v56 = vpop.permute.xlu1 %4736  ;;  %v10147_v47 = vld [vmem:[#allocation2 + $0x50] sm:$0xff] }
0x1256   : > { %v8836_v62 = vpop.eup %8835  ;;  %8847 = vpow2.f32 %v4692_v42  ;;  %4700 = vadd.xlane.f32.xlu1 %v4699_v22  ;;  %8319 = vmatpush3.msra.mxu1 %v4739_v43 }
0x1257   : > { %8320 = vmatprep.subr.mxu1 %v4737_v56  ;;  %v4696_v63 = vsel %vm1304_vm8, %v8836_v62, 0.0 }
0x1258   : > { %4697 = vadd.xlane.f32.xlu0 %v4696_v63  ;;  %8321 = vmatpush3.msra.mxu1 %v4737_v56  ;;  %v10769_v56 = vld [vmem:[#allocation19_spill] sm:$0xff]  ;;  %v10770_v63 = vld [vmem:[#allocation20_spill] sm:$0xff] }
0x125a   : > { %v8838_v59 = vpop.eup %8837 }
0x125b   : > { %v8840_v53 = vpop.eup %8839  ;;  %v4705_v37 = vsel %vm1304_vm8, %v8838_v59, 0.0 }
0x125c   : > { %4706 = vadd.xlane.f32.xlu1 %v4705_v37  ;;  %v4702_v55 = vsel %vm1304_vm8, %v8840_v53, 0.0  ;;  %v10773_v37 = vld [vmem:[#allocation22_spill] sm:$0xff] }
0x125d   : > { %4703 = vadd.xlane.f32.xlu0 %v4702_v55  ;;  %v10774_v55 = vld [vmem:[#allocation23_spill] sm:$0xff] }
0x125e   : > { %v8842_v6 = vpop.eup %8841 }
0x125f   : > { %v8844_v38 = vpop.eup %8843  ;;  %v4711_v25 = vsel %vm1304_vm8, %v8842_v6, 0.0 }
0x1260   : > { %4712 = vadd.xlane.f32.xlu1 %v4711_v25  ;;  %v4708_v30 = vsel %vm1304_vm8, %v8844_v38, 0.0 }
0x1261   : > { %4709 = vadd.xlane.f32.xlu0 %v4708_v30 }
0x1262   : > { %v8846_v27 = vpop.eup %8845 }
0x1263   : > { %v8848_v11 = vpop.eup %8847  ;;  %v4717_v23 = vsel %vm1304_vm8, %v8846_v27, 0.0 }
0x1264   : > { %4718 = vadd.xlane.f32.xlu1 %v4717_v23  ;;  %v4714_v35 = vsel %vm1304_vm8, %v8848_v11, 0.0 }
0x1265   : > { %4715 = vadd.xlane.f32.xlu0 %v4714_v35 }
0x1268   : > { %v10172_v25 = vpop.f32.mrf.mxu1 }
0x126a   : > { %v10174_v30 = vpop.f32.mrf.mxu1 }
0x1275   : > { %5042 = vrot.lane.b32.xlu1 %v9643_v26, %s8982_s23 }
0x127b   : > { %5040 = vrot.lane.b32.xlu0 %v9801_v29, %s8982_s23 }
0x12df   : > { %v4701_v7 = vpop.xlane.xlu1 %4700 }
0x12e0   : > { %8849 = vrcp.f32 %v4701_v7 }
0x12e1   : > { %v4698_v41 = vpop.xlane.xlu0 %4697 }
0x12e2   : > { %8851 = vrcp.f32 %v4698_v41 }
0x12e5   : > { %v4707_v13 = vpop.xlane.xlu1 %4706 }
0x12e6   : > { %8853 = vrcp.f32 %v4707_v13  ;;  %v4704_v32 = vpop.xlane.xlu0 %4703 }
0x12e7   : > { %8855 = vrcp.f32 %v4704_v32 }
0x12e9   : > { %v4713_v8 = vpop.xlane.xlu1 %4712 }
0x12ea   : > { %8857 = vrcp.f32 %v4713_v8  ;;  %v4710_v31 = vpop.xlane.xlu0 %4709 }
0x12eb   : > { %8859 = vrcp.f32 %v4710_v31 }
0x12ed   : > { %v4719_v54 = vpop.xlane.xlu1 %4718  ;;  %v8850_v3 = vpop.eup %8849 }
0x12ee   : > { %8861 = vrcp.f32 %v4719_v54  ;;  %v4716_v10 = vpop.xlane.xlu0 %4715  ;;  %v4729_v29 = vmul.f32 %v8850_v3, %v8834_v33 }
0x12ef   : > { %v8852_v26 = vpop.eup %8851  ;;  %8863 = vrcp.f32 %v4716_v10 }
0x12f0   : > { %v4728_v2 = vmul.f32 %v8852_v26, %v8836_v62  ;;  %v10768_v62 = vld [vmem:[#allocation18_spill] sm:$0xff] }
0x12f1   : > { %v5043_v18 = vpop.permute.xlu1 %5042 }
0x12f2   : > { %8322 = vmatprep.mubr.msk.f32.mxu1 %vm1304_vm8, %v4728_v2  ;;  %8348 = vmatprep.subr.msk.mxu1 %vm944_vm7, %v5043_v18  ;;  %v5041_v19 = vpop.permute.xlu0 %5040 }
0x12f3   : > { %v8854_v52 = vpop.eup %8853  ;;  %8323 = vmatmul.mubr.msk.f32.vlgmr.msra.gmra.mxu1 %vm1304_vm8, %v4729_v29 }
0x12f4   : > { %v8856_v61 = vpop.eup %8855  ;;  %8349 = vmatpush3.xpose.msk.msra.mxu1 %vm944_vm7, %v5043_v18  ;;  %v4731_v21 = vmul.f32 %v8854_v52, %v8838_v59  ;;  %v10771_v59 = vmov 0.0  }
0x12f5   : > { %8350 = vmatprep.subr.msk.mxu1 %vm944_vm7, %v5041_v19  ;;  %v4730_v24 = vmul.f32 %v8856_v61, %v8840_v53  ;;  %v10772_v53 = vld [vmem:[#allocation21_spill] sm:$0xff] }
0x12f7   : > { %v8858_v45 = vpop.eup %8857  ;;  %8325 = vmatprep.mubr.msk.f32.mxu1 %vm1304_vm8, %v4730_v24 }
0x12f8   : > { %v8860_v44 = vpop.eup %8859  ;;  %8326 = vmatmul.mubr.msk.f32.gmra.mxu1 %vm1304_vm8, %v4731_v21  ;;  %v4733_v49 = vmul.f32 %v8858_v45, %v8842_v6  ;;  %v10775_v6 = vld [vmem:[#allocation24_spill] sm:$0xff] }
0x12f9   : > { %8351 = vmatpush3.xpose.msk.msra.mxu1 %vm944_vm7, %v5041_v19  ;;  %v4732_v48 = vmul.f32 %v8860_v44, %v8844_v38  ;;  %v10776_v38 = vld [vmem:[#allocation25_spill] sm:$0xff] }
0x12fa   : > { %8380 = vmatprep.subr.mxu1 %v10147_v47 }
0x12fb   : > { %v8862_v42 = vpop.eup %8861  ;;  %8328 = vmatprep.mubr.msk.f32.mxu1 %vm1304_vm8, %v4732_v48 }
0x12fc   : > { %v8864_v33 = vpop.eup %8863  ;;  %8329 = vmatmul.mubr.msk.f32.gmra.mxu1 %vm1304_vm8, %v4733_v49  ;;  %v4735_v43 = vmul.f32 %v8862_v42, %v8846_v27  ;;  %v10176_v27 = vpop.f32.mrf.mxu1 }
0x12fd   : > { %v4734_v22 = vmul.f32 %v8864_v33, %v8848_v11 }
0x12fe   : > { %v10178_v11 = vpop.f32.mrf.mxu1 }
0x12ff   : > { %8331 = vmatprep.mubr.msk.f32.mxu1 %vm1304_vm8, %v4734_v22 }
0x1300   : > { %8332 = vmatmul.mubr.msk.f32.gmra.mxu1 %vm1304_vm8, %v4735_v43  ;;  %v10180_v23 = vpop.f32.mrf.mxu1 }
0x1301   : > { %8352 = vmatprep.mubr.msk.f32.mxu1 %vm944_vm7, %v10768_v62 }
0x1302   : > { %v10182_v35 = vpop.f32.mrf.mxu1 }
0x1304   : > { %8353 = vmatmul.mubr.msk.f32.vlgmr.msra.gmra.mxu1 %vm944_vm7, %v10769_v56  ;;  %v10184_v7 = vpop.f32.mrf.mxu1 }
0x1305   : > { %8355 = vmatprep.mubr.msk.f32.mxu1 %vm944_vm7, %v10770_v63  ;;  %8381 = vmatpush3.msra.mxu1 %v10147_v47 }
0x1306   : > { %8414 = vmatprep.subr.mxu1 %v10771_v59  ;;  %v10186_v41 = vpop.f32.mrf.mxu1 }
0x1308   : > { %8356 = vmatmul.mubr.msk.f32.gmra.mxu1 %vm944_vm7, %v10772_v53 }
0x1309   : > { %8358 = vmatprep.mubr.msk.f32.mxu1 %vm944_vm7, %v10773_v37 }
0x130c   : > { %8359 = vmatmul.mubr.msk.f32.gmra.mxu1 %vm944_vm7, %v10774_v55 }
0x130d   : > { %8361 = vmatprep.mubr.msk.f32.mxu1 %vm944_vm7, %v10775_v6 }
0x1310   : > { %8362 = vmatmul.mubr.msk.f32.gmra.mxu1 %vm944_vm7, %v10776_v38 }
0x13b3   : > { %v8324_v13 = vpop.f32.mrf.mxu1 }
0x13b5   : > { %v4832_v32 = vpop.f32.mrf.mxu1 }
0x13b6   : > { %8336 = vmatprep.mubr.msk.f32.mxu0 %vm1522_vm9, %v4832_v32 }
0x13b7   : > { %8337 = vmatmul.mubr.msk.f32.vlgmr.msra.gmra.mxu0 %vm1522_vm9, %v8324_v13 }
0x13b8   : > { %v8327_v8 = vpop.f32.mrf.mxu1 }
0x13ba   : > { %v4842_v31 = vpop.f32.mrf.mxu1 }
0x13bb   : > { %8339 = vmatprep.mubr.msk.f32.mxu0 %vm1522_vm9, %v4842_v31 }
0x13bc   : > { %v8330_v54 = vpop.f32.mrf.mxu1  ;;  %8340 = vmatmul.mubr.msk.f32.gmra.mxu0 %vm1522_vm9, %v8327_v8 }
0x13be   : > { %v4852_v3 = vpop.f32.mrf.mxu1 }
0x13bf   : > { %8342 = vmatprep.mubr.msk.f32.mxu0 %vm1522_vm9, %v4852_v3 }
0x13c0   : > { %v8333_v10 = vpop.f32.mrf.mxu1  ;;  %8343 = vmatmul.mubr.msk.f32.gmra.mxu0 %vm1522_vm9, %v8330_v54 }
0x13c2   : > { %v4862_v26 = vpop.f32.mrf.mxu1 }
0x13c3   : > { %8345 = vmatprep.mubr.msk.f32.mxu0 %vm1522_vm9, %v4862_v26 }
0x13c4   : > { %8346 = vmatmul.mubr.msk.f32.gmra.mxu0 %vm1522_vm9, %v8333_v10  ;;  %v8354_v2 = vpop.f32.mrf.mxu1 }
0x13c5   : > { %v5154_v29 = vmul.f32 0.70710677, %v8354_v2 }
0x13c6   : > { %v5114_v18 = vpop.f32.mrf.mxu1 }
0x13c7   : > { %v5153_v52 = vmul.f32 0.70710677, %v5114_v18  ;;  %v5164_v61 = vsel %vm1304_vm8, %v5154_v29, -inf }
0x13c8   : > { %5165 = vmax.xlane.f32.xlu0 %v5164_v61  ;;  %v8357_v19 = vpop.f32.mrf.mxu1 }
0x13c9   : > { %v5156_v21 = vmul.f32 0.70710677, %v8357_v19  ;;  %v5161_v24 = vsel %vm1304_vm8, %v5153_v52, -inf }
0x13ca   : > { %5162 = vmax.xlane.f32.xlu1 %v5161_v24  ;;  %v5124_v45 = vpop.f32.mrf.mxu1 }
0x13cb   : > { %v5155_v44 = vmul.f32 0.70710677, %v5124_v45  ;;  %v5170_v42 = vsel %vm1304_vm8, %v5156_v21, -inf }
0x13cc   : > { %v8360_v49 = vpop.f32.mrf.mxu1 }
0x13cd   : > { %v5158_v48 = vmul.f32 0.70710677, %v8360_v49  ;;  %v5167_v33 = vsel %vm1304_vm8, %v5155_v44, -inf }
0x13ce   : > { %5171 = vmax.xlane.f32.xlu1 %v5170_v42  ;;  %5168 = vmax.xlane.f32.xlu0 %v5167_v33  ;;  %v5134_v43 = vpop.f32.mrf.mxu1 }
0x13cf   : > { %v5157_v22 = vmul.f32 0.70710677, %v5134_v43  ;;  %v5176_v63 = vsel %vm1304_vm8, %v5158_v48, -inf }
0x13d0   : > { %v8363_v62 = vpop.f32.mrf.mxu1 }
0x13d1   : > { %v5160_v56 = vmul.f32 0.70710677, %v8363_v62  ;;  %v5173_v53 = vsel %vm1304_vm8, %v5157_v22, -inf }
0x13d2   : > { %5177 = vmax.xlane.f32.xlu1 %v5176_v63  ;;  %5174 = vmax.xlane.f32.xlu0 %v5173_v53  ;;  %v5144_v37 = vpop.f32.mrf.mxu1 }
0x13d3   : > { %v5159_v55 = vmul.f32 0.70710677, %v5144_v37  ;;  %v5182_v6 = vsel %vm1304_vm8, %v5160_v56, -inf }
0x13d5   : > { %v5179_v38 = vsel %vm1304_vm8, %v5159_v55, -inf }
0x13d6   : > { %5183 = vmax.xlane.f32.xlu1 %v5182_v6  ;;  %5180 = vmax.xlane.f32.xlu0 %v5179_v38 }
0x1451   : > { %v5166_v13 = vpop.xlane.xlu0 %5165 }
0x1452   : > { %v5186_v32 = vsub.f32 %v5154_v29, %v5166_v13 }
0x1453   : > { %v5163_v8 = vpop.xlane.xlu1 %5162 }
0x1454   : > { %v5195_v31 = vmul.f32 1.442695, %v5186_v32  ;;  %v5185_v54 = vsub.f32 %v5153_v52, %v5163_v8 }
0x1456   : > { %8865 = vpow2.f32 %v5195_v31  ;;  %v5193_v3 = vmul.f32 1.442695, %v5185_v54 }
0x1457   : > { %v5172_v10 = vpop.xlane.xlu1 %5171  ;;  %v5169_v26 = vpop.xlane.xlu0 %5168 }
0x1458   : > { %8867 = vpow2.f32 %v5193_v3  ;;  %v5188_v2 = vsub.f32 %v5156_v21, %v5172_v10  ;;  %v5187_v18 = vsub.f32 %v5155_v44, %v5169_v26 }
0x145a   : > { %v5199_v61 = vmul.f32 1.442695, %v5188_v2  ;;  %v5197_v19 = vmul.f32 1.442695, %v5187_v18 }
0x145b   : > { %v5178_v24 = vpop.xlane.xlu1 %5177  ;;  %v5175_v45 = vpop.xlane.xlu0 %5174 }
0x145c   : > { %8869 = vpow2.f32 %v5199_v61  ;;  %v5190_v49 = vsub.f32 %v5158_v48, %v5178_v24  ;;  %v5189_v42 = vsub.f32 %v5157_v22, %v5175_v45 }
0x145d   : > { %8871 = vpow2.f32 %v5197_v19 }
0x145e   : > { %v5203_v33 = vmul.f32 1.442695, %v5190_v49  ;;  %v5201_v29 = vmul.f32 1.442695, %v5189_v42 }
0x145f   : > { %v5184_v43 = vpop.xlane.xlu1 %5183  ;;  %v5181_v62 = vpop.xlane.xlu0 %5180 }
0x1460   : > { %8873 = vpow2.f32 %v5203_v33  ;;  %v5192_v52 = vsub.f32 %v5160_v56, %v5184_v43  ;;  %v5191_v63 = vsub.f32 %v5159_v55, %v5181_v62 }
0x1461   : > { %8875 = vpow2.f32 %v5201_v29 }
0x1462   : > { %v5207_v53 = vmul.f32 1.442695, %v5192_v52  ;;  %v5205_v37 = vmul.f32 1.442695, %v5191_v63 }
0x1463   : > { %v10204_v21 = vpop.eup %8865 }
0x1464   : > { %8877 = vpow2.f32 %v5207_v53  ;;  %v5212_v44 = vsel %vm1304_vm8, %v10204_v21, 0.0 }
0x1465   : > { %v10208_v6 = vpop.eup %8867  ;;  %8879 = vpow2.f32 %v5205_v37  ;;  %5213 = vadd.xlane.f32.xlu1 %v5212_v44 }
0x1466   : > { %v5209_v48 = vsel %vm1304_vm8, %v10208_v6, 0.0 }
0x1467   : > { %5210 = vadd.xlane.f32.xlu0 %v5209_v48 }
0x1469   : > { %v10212_v22 = vpop.eup %8869 }
0x146a   : > { %v10214_v56 = vpop.eup %8871  ;;  %v5218_v55 = vsel %vm1304_vm8, %v10212_v22, 0.0 }
0x146b   : > { %5219 = vadd.xlane.f32.xlu1 %v5218_v55  ;;  %v5215_v38 = vsel %vm1304_vm8, %v10214_v56, 0.0  ;;  %v793_v55 = vlaneseq }
0x146c   : > { %5216 = vadd.xlane.f32.xlu0 %v5215_v38 }
0x146d   : > { %v10220_v13 = vpop.eup %8873  ;;  %vm10382_vm10 = vcmp.lt.s32.totalorder %v793_v55, 128 }
0x146e   : > { %v10222_v32 = vpop.eup %8875  ;;  %v5224_v8 = vsel %vm1304_vm8, %v10220_v13, 0.0 }
0x146f   : > { %5225 = vadd.xlane.f32.xlu1 %v5224_v8  ;;  %v5221_v31 = vsel %vm1304_vm8, %v10222_v32, 0.0 }
0x1470   : > { %5222 = vadd.xlane.f32.xlu0 %v5221_v31 }
0x1471   : > { %v10228_v54 = vpop.eup %8877 }
0x1472   : > { %v10230_v3 = vpop.eup %8879  ;;  %v5230_v10 = vsel %vm1304_vm8, %v10228_v54, 0.0 }
0x1473   : > { %5231 = vadd.xlane.f32.xlu1 %v5230_v10  ;;  %v5227_v26 = vsel %vm1304_vm8, %v10230_v3, 0.0  ;;  %v324_v10 = vld [vmem:[%s10709_s5 + $0x1] sm:$0x3] }
0x1474   : > { %5228 = vadd.xlane.f32.xlu0 %v5227_v26 }
0x1484   : > { %5249 = vrot.lane.b32.xlu1 %v9963_v46, %s8983_s27  ;;  %v8338_v46 = vpop.f32.mrf.mxu0 }
0x1488   : > { %3980 = vrot.lane.b32.xlu1 %v10093_v9, %s8984_s28 }
0x148a   : > { %5251 = vrot.lane.b32.xlu0 %v9941_v5, %s8983_s27  ;;  %v4961_v5 = vpop.f32.mrf.mxu0 }
0x148c   : > { %4495 = vrot.lane.b32.xlu1 %v10174_v30, %s8984_s28 }
0x148e   : > { %3982 = vrot.lane.b32.xlu0 %v10091_v40, %s8984_s28  ;;  %v8341_v40 = vpop.f32.mrf.mxu0 }
0x1490   : > { %3984 = vrot.lane.b32.xlu1 %v10097_v15, %s8984_s28  ;;  %v4971_v9 = vpop.f32.mrf.mxu0 }
0x1492   : > { %4497 = vrot.lane.b32.xlu0 %v10172_v25, %s8984_s28 }
0x1494   : > { %3986 = vrot.lane.b32.xlu1 %v10095_v28, %s8984_s28  ;;  %v8344_v28 = vpop.f32.mrf.mxu0 }
0x1496   : > { %5010 = vrot.lane.b32.xlu0 %v8338_v46, %s8984_s28  ;;  %v4981_v15 = vpop.f32.mrf.mxu0 }
0x1498   : > { %4499 = vrot.lane.b32.xlu1 %v10178_v11, %s8984_s28 }
0x149a   : > { %5008 = vrot.lane.b32.xlu0 %v4961_v5, %s8984_s28  ;;  %v8986_v5 = vmov 1966171168  }
0x149c   : > { %4501 = vrot.lane.b32.xlu1 %v10176_v27, %s8984_s28 }
0x149e   : > { %5014 = vrot.lane.b32.xlu0 %v8341_v40, %s8984_s28  ;;  %v911_v40 = vunpack.c.l.s4 %v8986_v5 }
0x14a0   : > { %3988 = vrot.lane.b32.xlu1 %v10101_v34, %s8984_s28 }
0x14a2   : > { %5012 = vrot.lane.b32.xlu0 %v4971_v9, %s8984_s28  ;;  %v912_v9 = vunpack.c.0.s8 %v911_v40 }
0x14a4   : > { %3990 = vrot.lane.b32.xlu1 %v10099_v39, %s8984_s28  ;;  %v10276_v39 = vpop.f32.mrf.mxu0 }
0x14a6   : > { %5018 = vrot.lane.b32.xlu0 %v8344_v28, %s8984_s28  ;;  %v4991_v34 = vpop.f32.mrf.mxu0  ;;  %v905_v28 = vld [vmem:[%s284_s10] sm:$0x1] }
0x14a8   : > { %4503 = vrot.lane.b32.xlu1 %v10182_v35, %s8984_s28 }
0x14aa   : > { %5016 = vrot.lane.b32.xlu0 %v4981_v15, %s8984_s28  ;;  %v906_v15 = vld [vmem:[%s284_s10 + $0x1] sm:$0x1] }
0x14ac   : > { %4505 = vrot.lane.b32.xlu1 %v10180_v23, %s8984_s28 }
0x14b0   : > { %3992 = vrot.lane.b32.xlu1 %v10105_v50, %s8984_s28 }
0x14b4   : > { %3994 = vrot.lane.b32.xlu1 %v10103_v57, %s8984_s28 }
0x14b8   : > { %4507 = vrot.lane.b32.xlu1 %v10186_v41, %s8984_s28 }
0x14bc   : > { %4509 = vrot.lane.b32.xlu1 %v10184_v7, %s8984_s28 }
0x14c0   : > { %5020 = vrot.lane.b32.xlu1 %v4991_v34, %s8984_s28 }
0x14ee   : > { %v5214_v25 = vpop.xlane.xlu1 %5213 }
0x14f0   : > { %v5211_v30 = vpop.xlane.xlu0 %5210 }
0x14f1   : > { %8881 = vrcp.f32 %v5211_v30 }
0x14f2   : > { %8883 = vrcp.f32 %v5214_v25  ;;  %v909_v25 = vcombine.low %v905_v28, %v906_v15 }
0x14f4   : > { %v5220_v27 = vpop.xlane.xlu1 %5219 }
0x14f5   : > { %v5217_v50 = vpop.xlane.xlu0 %5216 }
0x14f6   : > { %8885 = vrcp.f32 %v5217_v50 }
0x14f7   : > { %8887 = vrcp.f32 %v5220_v27 }
0x14f8   : > { %v5226_v57 = vpop.xlane.xlu1 %5225 }
0x14f9   : > { %v5223_v11 = vpop.xlane.xlu0 %5222 }
0x14fa   : > { %8889 = vrcp.f32 %v5223_v11 }
0x14fb   : > { %8891 = vrcp.f32 %v5226_v57 }
0x14fc   : > { %v5232_v23 = vpop.xlane.xlu1 %5231 }
0x14fd   : > { %v5229_v35 = vpop.xlane.xlu0 %5228 }
0x14fe   : > { %v8882_v41 = vpop.eup %8881  ;;  %8893 = vrcp.f32 %v5229_v35 }
0x14ff   : > { %v5241_v7 = vmul.f32 %v8882_v41, %v10208_v6  ;;  %8895 = vrcp.f32 %v5232_v23  ;;  %v8884_v2 = vpop.eup %8883 }
0x1500   : > { %v5250_v19 = vpop.permute.xlu1 %5249  ;;  %v5242_v24 = vmul.f32 %v8884_v2, %v10204_v21 }
0x1501   : > { %v5252_v18 = vpop.permute.xlu0 %5251  ;;  %8368 = vmatprep.mubr.msk.f32.mxu0 %vm1304_vm8, %v5241_v7 }
0x1502   : > { %8364 = vmatprep.subr.mxu0 %v5252_v18 }
0x1503   : > { %v8886_v61 = vpop.eup %8885  ;;  %8365 = vmatpush3.msra.mxu0 %v5252_v18 }
0x1504   : > { %8366 = vmatprep.subr.mxu0 %v5250_v19  ;;  %v5243_v45 = vmul.f32 %v8886_v61, %v10214_v56  ;;  %v8888_v49 = vpop.eup %8887  ;;  %v3981_v11 = vpop.permute.xlu1 %3980 }
0x1505   : > { %8367 = vmatpush3.msra.mxu0 %v5250_v19  ;;  %v5244_v33 = vmul.f32 %v8888_v49, %v10212_v22  ;;  %v3983_v41 = vpop.permute.xlu0 %3982 }
0x1506   : > { %8369 = vmatmul.mubr.msk.f32.vlgmr.msra.gmra.mxu0 %vm1304_vm8, %v5242_v24  ;;  %8394 = vmatprep.subr.mxu0 %v9913_v51 }
0x1507   : > { %v8890_v42 = vpop.eup %8889  ;;  %8371 = vmatprep.mubr.msk.f32.mxu0 %vm1304_vm8, %v5243_v45  ;;  %8395 = vmatpush3.msra.mxu0 %v9913_v51 }
0x1508   : > { %8396 = vmatprep.subr.mxu0 %v9922_v20  ;;  %v5245_v29 = vmul.f32 %v8890_v42, %v10222_v32  ;;  %v8892_v43 = vpop.eup %8891  ;;  %v794_v32 = vshrl.u32 %v793_v55, 7  ;;  %v4496_v23 = vpop.permute.xlu1 %4495 }
0x1509   : > { %8397 = vmatpush3.msra.mxu0 %v9922_v20  ;;  %v5246_v51 = vmul.f32 %v8892_v43, %v10220_v13  ;;  %v4498_v2 = vpop.permute.xlu0 %4497 }
0x150a   : > { %8372 = vmatmul.mubr.msk.f32.gmra.mxu0 %vm1304_vm8, %v5244_v33  ;;  %8398 = vmatprep.subr.mxu0 %v9933_v14  ;;  %v10337_v34 = vsub.s32 1, %v794_v32  ;;  %v10339_v30 = vsub.s32 %v912_v9, %v794_v32 }
0x150b   : > { %v8894_v62 = vpop.eup %8893  ;;  %8374 = vmatprep.mubr.msk.f32.mxu0 %vm1304_vm8, %v5245_v29  ;;  %8399 = vmatpush3.msra.mxu0 %v9933_v14 }
0x150c   : > { %8400 = vmatprep.subr.mxu0 %v9935_v16  ;;  %v5247_v52 = vmul.f32 %v8894_v62, %v10230_v3  ;;  %v8896_v63 = vpop.eup %8895  ;;  %v800_v27 = vrot.slane %v324_v10, %v10337_v34  ;;  %v916_v50 = vrot.slane %v909_v25, %v10339_v30 }
0x150d   : > { %8401 = vmatpush3.msra.mxu0 %v9935_v16  ;;  %v5248_v20 = vmul.f32 %v8896_v63, %v10228_v54  ;;  %v10320_v54 = vsub.s32 0, %v794_v32  ;;  %v5011_v61 = vpop.permute.xlu0 %5010 }
0x150e   : > { %8375 = vmatmul.mubr.msk.f32.gmra.mxu0 %vm1304_vm8, %v5246_v51  ;;  %8425 = vmatprep.subr.mxu0 %v10771_v59  ;;  %v923_v57 = vrot.slane %v916_v50, %v10339_v30 }
0x150f   : > { %8377 = vmatprep.mubr.msk.f32.mxu0 %vm1304_vm8, %v5247_v52  ;;  %v796_v46 = vrot.slane %v324_v10, %v10320_v54  ;;  %v8918_v52 = vld [vmem:[%s10709_s5 + $0x2] ss:$0 sm:$0xff] }
0x1510   : > { %v4004_v63 = vadd.f32 %v8918_v52, %v3981_v11 }
0x1511   : > { %v5009_v24 = vpop.permute.xlu0 %5008 }
0x1512   : > { %8378 = vmatmul.mubr.msk.f32.gmra.mxu0 %vm1304_vm8, %v5248_v20 }
0x1515   : > { %v5015_v49 = vpop.permute.xlu0 %5014 }
0x1519   : > { %v5013_v33 = vpop.permute.xlu0 %5012 }
0x151d   : > { %v5019_v43 = vpop.permute.xlu0 %5018 }
0x1521   : > { %v5017_v51 = vpop.permute.xlu0 %5016 }
0x15c6   : > { %v8370_v14 = vpop.f32.mrf.mxu0 }
0x15c8   : > { %v5345_v53 = vpop.f32.mrf.mxu0 }
0x15c9   : > { %8382 = vmatprep.mubr.msk.f32.mxu1 %vm1522_vm9, %v5345_v53  ;;  %v4519_v53 = vadd.f32 %v4496_v23, %v4004_v63  ;;  %v8919_v63 = vld [vmem:[#allocation2 + $0x20] sm:$0xff] }
0x15ca   : > { %v8373_v37 = vpop.f32.mrf.mxu0  ;;  %8383 = vmatmul.mubr.msk.f32.vlgmr.msra.gmra.mxu1 %vm1522_vm9, %v8370_v14 }
0x15cc   : > { %v5355_v21 = vpop.f32.mrf.mxu0 }
0x15cd   : > { %8385 = vmatprep.mubr.msk.f32.mxu1 %vm1522_vm9, %v5355_v21  ;;  %v5032_v21 = vadd.f32 %v5009_v24, %v4519_v53 }
0x15ce   : > { %v8376_v16 = vpop.f32.mrf.mxu0  ;;  %8386 = vmatmul.mubr.msk.f32.gmra.mxu1 %vm1522_vm9, %v8373_v37  ;;  %v4005_v37 = vadd.f32 %v8918_v52, %v3983_v41 }
0x15d0   : > { %v5365_v44 = vpop.f32.mrf.mxu0 }
0x15d1   : > { %8388 = vmatprep.mubr.msk.f32.mxu1 %vm1522_vm9, %v5365_v44  ;;  %v4520_v44 = vadd.f32 %v4498_v2, %v4005_v37  ;;  %v8921_v37 = vld [vmem:[#allocation2 + $0x8] sm:$0xff] }
0x15d2   : > { %v8379_v6 = vpop.f32.mrf.mxu0  ;;  %8389 = vmatmul.mubr.msk.f32.gmra.mxu1 %vm1522_vm9, %v8376_v16 }
0x15d4   : > { %v5375_v48 = vpop.f32.mrf.mxu0 }
0x15d5   : > { %8391 = vmatprep.mubr.msk.f32.mxu1 %vm1522_vm9, %v5375_v48 }
0x15d6   : > { %8392 = vmatmul.mubr.msk.f32.gmra.mxu1 %vm1522_vm9, %v8379_v6 }
0x15d7   : > { %8422 = vmatprep.mubr.msk.f32.mxu1 %vm8976_vm3, %v10771_v59 }
0x168a   : > { %v8384_v22 = vpop.f32.mrf.mxu1 }
0x168b   : > { %5523 = vrot.lane.b32.xlu0 %v8384_v22, %s8984_s28 }
0x168c   : > { %v5474_v56 = vpop.f32.mrf.mxu1 }
0x168e   : > { %v8387_v38 = vpop.f32.mrf.mxu1 }
0x168f   : > { %5521 = vrot.lane.b32.xlu0 %v5474_v56, %s8984_s28 }
0x1690   : > { %v5484_v13 = vpop.f32.mrf.mxu1 }
0x1692   : > { %v8390_v8 = vpop.f32.mrf.mxu1 }
0x1693   : > { %5527 = vrot.lane.b32.xlu0 %v8387_v38, %s8984_s28  ;;  %v5033_v38 = vadd.f32 %v5011_v61, %v4520_v44 }
0x1694   : > { %v5494_v31 = vpop.f32.mrf.mxu1 }
0x1696   : > { %v8393_v3 = vpop.f32.mrf.mxu1 }
0x1697   : > { %5525 = vrot.lane.b32.xlu0 %v5484_v13, %s8984_s28 }
0x1698   : > { %v5504_v26 = vpop.f32.mrf.mxu1 }
0x1699   : > { %5533 = vrot.lane.b32.xlu1 %v5504_v26, %s8984_s28 }
0x169b   : > { %5531 = vrot.lane.b32.xlu0 %v8390_v8, %s8984_s28 }
0x169d   : > { %817 = vrot.lane.b32.xlu1 %v796_v46, %s8974_s19 }
0x169f   : > { %5529 = vrot.lane.b32.xlu0 %v5494_v31, %s8984_s28 }
0x16a3   : > { %5022 = vrot.lane.b32.xlu0 %v10276_v39, %s8984_s28  ;;  %v3985_v39 = vpop.permute.xlu1 %3984 }
0x16a4   : > { %v4006_v56 = vadd.f32 %v8918_v52, %v3985_v39 }
0x16a7   : > { %5535 = vrot.lane.b32.xlu0 %v8393_v3, %s8984_s28  ;;  %v3987_v35 = vpop.permute.xlu1 %3986 }
0x16a8   : > { %v4007_v6 = vadd.f32 %v8918_v52, %v3987_v35 }
0x16ab   : > { %819 = vrot.lane.b32.xlu0 %v800_v27, %s8974_s19  ;;  %v4500_v7 = vpop.permute.xlu1 %4499 }
0x16ac   : > { %v4521_v8 = vadd.f32 %v4500_v7, %v4006_v56 }
0x16ae   : > { %v5034_v10 = vadd.f32 %v5013_v33, %v4521_v8 }
0x16af   : > { %924 = vrot.lane.b32.xlu0 %v923_v57, %s8974_s19  ;;  %v4502_v18 = vpop.permute.xlu1 %4501 }
0x16b0   : > { %v4522_v13 = vadd.f32 %v4502_v18, %v4007_v6 }
0x16b2   : > { %v5035_v46 = vadd.f32 %v5015_v49, %v4522_v13 }
0x16b3   : > { %v3989_v19 = vpop.permute.xlu1 %3988 }
0x16b4   : > { %v4008_v9 = vadd.f32 %v8918_v52, %v3989_v19 }
0x16b7   : > { %v3991_v45 = vpop.permute.xlu1 %3990 }
0x16b8   : > { %v4009_v31 = vadd.f32 %v8918_v52, %v3991_v45 }
0x16bb   : > { %v4504_v42 = vpop.permute.xlu1 %4503 }
0x16bc   : > { %v4523_v25 = vadd.f32 %v4504_v42, %v4008_v9 }
0x16be   : > { %v5036_v39 = vadd.f32 %v5017_v51, %v4523_v25  ;;  %v10777_v51 = vld [vmem:[#allocation5_spill] sm:$0xff] }
0x16bf   : > { %v4506_v29 = vpop.permute.xlu1 %4505 }
0x16c0   : > { %v4524_v26 = vadd.f32 %v4506_v29, %v4009_v31 }
0x16c2   : > { %v5037_v27 = vadd.f32 %v5019_v43, %v4524_v26 }
0x16c3   : > { %v3993_v62 = vpop.permute.xlu1 %3992 }
0x16c4   : > { %v4010_v23 = vadd.f32 %v8918_v52, %v3993_v62 }
0x16c7   : > { %v3995_v20 = vpop.permute.xlu1 %3994 }
0x16c8   : > { %v4011_v18 = vadd.f32 %v8918_v52, %v3995_v20  ;;  %v8920_v20 = vld [vmem:[#allocation2 + $0x38] sm:$0xff] }
0x16cb   : > { %v4508_v22 = vpop.permute.xlu1 %4507 }
0x16cc   : > { %v4525_v41 = vadd.f32 %v4508_v22, %v4010_v23 }
0x16cf   : > { %v4510_v5 = vpop.permute.xlu1 %4509 }
0x16d0   : > { %v4526_v24 = vadd.f32 %v4510_v5, %v4011_v18 }
0x16d3   : > { %v5021_v11 = vpop.permute.xlu1 %5020 }
0x16d4   : > { %v5038_v61 = vadd.f32 %v5021_v11, %v4525_v41 }
0x16fd   : > { %v5524_v14 = vpop.permute.xlu0 %5523 }
0x16fe   : > { %v5546_v3 = vadd.f32 %v5524_v14, %v5033_v38 }
0x1701   : > { %v5522_v16 = vpop.permute.xlu0 %5521 }
0x1702   : > { %v5545_v48 = vadd.f32 %v5522_v16, %v5032_v21  ;;  %v326_v21 = vld [vmem:[%s10709_s5 + $0x2] sm:$0x3] }
0x1703   : > { %v3338_v16 = vrot.slane %v326_v21, %v10337_v34  ;;  %v3334_v55 = vrot.slane %v326_v21, %v10320_v54 }
0x1704   : > { %5561 = vrot.lane.b32.xlu1 %v5545_v48, %s8985_s7 }
0x1705   : > { %v5528_v32 = vpop.permute.xlu0 %5527 }
0x1706   : > { %v5548_v28 = vadd.f32 %v5528_v32, %v5035_v46 }
0x1708   : > { %5563 = vrot.lane.b32.xlu1 %v5546_v3, %s8985_s7 }
0x1709   : > { %v5526_v40 = vpop.permute.xlu0 %5525 }
0x170a   : > { %v5547_v15 = vadd.f32 %v5526_v40, %v5034_v10 }
0x170b   : > { %v5534_v2 = vpop.permute.xlu1 %5533 }
0x170c   : > { %5567 = vrot.lane.b32.xlu1 %v5548_v28, %s8985_s7  ;;  %5565 = vrot.lane.b32.xlu0 %v5547_v15, %s8985_s7  ;;  %v5551_v45 = vadd.f32 %v5534_v2, %v5038_v61 }
0x170d   : > { %v5532_v50 = vpop.permute.xlu0 %5531 }
0x170e   : > { %v5550_v57 = vadd.f32 %v5532_v50, %v5037_v27 }
0x170f   : > { %v818_v29 = vpop.permute.xlu1 %817 }
0x1710   : > { %5571 = vrot.lane.b32.xlu1 %v5550_v57, %s8985_s7 }
0x1711   : > { %v5530_v35 = vpop.permute.xlu0 %5529 }
0x1712   : > { %v5549_v7 = vadd.f32 %v5530_v35, %v5036_v39 }
0x1714   : > { %5569 = vrot.lane.b32.xlu0 %v5549_v7, %s8985_s7 }
0x1715   : > { %v5023_v19 = vpop.permute.xlu0 %5022 }
0x1716   : > { %v5039_v49 = vadd.f32 %v5023_v19, %v4526_v24 }
0x1718   : > { %5573 = vrot.lane.b32.xlu0 %v5551_v45, %s8985_s7 }
0x1719   : > { %v5536_v42 = vpop.permute.xlu0 %5535 }
0x171a   : > { %v5552_v33 = vadd.f32 %v5536_v42, %v5039_v49 }
0x171c   : > { %5575 = vrot.lane.b32.xlu1 %v5552_v33, %s8985_s7  ;;  %5704 = vrot.lane.b32.xlu0 %v10147_v47, %s8974_s19 }
0x171d   : > { %v820_v43 = vpop.permute.xlu0 %819 }
0x171e   : > { %v821_v62 = vsel %vm691_vm5, %v818_v29, %v820_v43 }
0x171f   : > { %v10362_v52 = vadd.f32 %v10777_v51, %v821_v62 }
0x1720   : > { %5700 = vrot.lane.b32.xlu0 %v8919_v63, %s8974_s19  ;;  %5702 = vrot.lane.b32.xlu1 %v8920_v20, %s8974_s19 }
0x1721   : > { %v896_v14 = vsub.f32 0.0, %v10362_v52  ;;  %v925_v38 = vpop.permute.xlu0 %924 }
0x1723   : > { %v897_v53 = vmul.f32 1.442695, %v896_v14 }
0x1724   : > { %5698 = vrot.lane.b32.xlu0 %v8921_v37, %s8974_s19  ;;  %s7152_s19 = sshll.u32 %s10781_s8, 1  ;;  %s8988_s8 = smov 8  }
0x1725   : > { %8897 = vpow2.f32 %v897_v53  ;;  %s10379_s27 = scalar_lea.vmem %s10710_s6, %s7152_s19 }
0x1728   : > { %5914 = vrot.lane.b32.xlu0 %v8920_v20, %s8972_s9 }
0x172c   : > { %3381 = vrot.lane.b32.xlu0 %v3338_v16, %s8987_s24 }
0x1730   : > { %5910 = vrot.lane.b32.xlu0 %v8921_v37, %s8972_s9 }
0x1732   : > { %v8898_v44 = vpop.eup %8897 }
0x1733   : > { %v899_v6 = vadd.f32 1.0, %v8898_v44 }
0x1735   : > { %8899 = vrcp.f32 %v899_v6 }
0x1742   : > { %v8900_v48 = vpop.eup %8899 }
0x1743   : > { %v902_v22 = vmul.f32 0.9, %v8900_v48 }
0x1745   : > { %v903_v56 = vadd.f32 0.1, %v902_v22 }
0x1747   : > { %v904_v13 = vmul.f32 0.1, %v903_v56 }
0x1749   : > { %v7034_v8 = vsel %vm691_vm5, %v10362_v52, %v904_v13  ;;  %v927_v31 = vmul.f32 %v925_v38, %v904_v13  ;;  %v10449_v13 = vld [vmem:[#allocation2 + $0x58] sm:$0xff] }
0x174a   : > { %v7035_v3 = vsel %vm450_vm2, %v7034_v8, 0.0  ;;  %v10451_v8 = vld [vmem:[#allocation2 + $0x40] sm:$0xff] }
0x174b   : > { %v7052_v10 = vrot.slane %v7035_v3, %v10339_v30  ;;  %929 = vrot.lane.b32.xlu1 %v927_v31, %s8973_s16  ;;  %7036 = vst.msk [vmem:[%s10379_s27 + $0x1] sm:$0x1] %vm10382_vm10, %v7035_v3  ;;  %v10457_v31 = vld [vmem:[#allocation2 + $0x28] sm:$0xff]  ;;  %v10459_v3 = vld [vmem:[#allocation2 + $0x10] sm:$0xff] }
0x174d   : > { %v7053_v26 = vcombine.high %v7052_v10, %v7052_v10 }
0x174f   : > { %v7060_v46 = vrot.slane %v7053_v26, %v10339_v30  ;;  %5916 = vrot.lane.b32.xlu1 %v10147_v47, %s8972_s9  ;;  %v10468_v26 = vld [vmem:[%s10709_s5 + $0x3] ss:$0 sm:$0xff] }
0x1751   : > { %7491 = vst.msk [vmem:[%s10379_s27 + $0x3] sm:$0x1] %vm10382_vm10, %v7060_v46  ;;  %v8922_v46 = vld [vmem:[%s10708_s4 + $0x18] sm:$0xff] }
0x1753   : > { %3379 = vrot.lane.b32.xlu1 %v3334_v55, %s8987_s24 }
0x1757   : > { %5912 = vrot.lane.b32.xlu1 %v8919_v63, %s8972_s9 }
0x1776   : > { %v5562_v5 = vpop.permute.xlu1 %5561 }
0x1777   : > { %8402 = vmatprep.mubr.msk.f32.mxu0 %vm691_vm5, %v5562_v5  ;;  %v8923_v5 = vld [vmem:[%s10708_s4 + $0x8] sm:$0xff] }
0x177a   : > { %v5564_v40 = vpop.permute.xlu1 %5563 }
0x177b   : > { %8403 = vmatmul.mubr.msk.f32.vlgmr.msra.gmra.mxu0 %vm691_vm5, %v5564_v40 }
0x177e   : > { %v5568_v9 = vpop.permute.xlu1 %5567  ;;  %v5566_v30 = vpop.permute.xlu0 %5565 }
0x177f   : > { %8405 = vmatprep.mubr.msk.f32.mxu0 %vm691_vm5, %v5566_v30 }
0x1780   : > { %8406 = vmatmul.mubr.msk.f32.gmra.mxu0 %vm691_vm5, %v5568_v9 }
0x1782   : > { %v5572_v28 = vpop.permute.xlu1 %5571 }
0x1786   : > { %v5570_v47 = vpop.permute.xlu0 %5569 }
0x1787   : > { %8408 = vmatprep.mubr.msk.f32.mxu0 %vm691_vm5, %v5570_v47  ;;  %v8924_v47 = vld [vmem:[%s10708_s4 + $0x38] sm:$0xff] }
0x1788   : > { %8409 = vmatmul.mubr.msk.f32.gmra.mxu0 %vm691_vm5, %v5572_v28 }
0x178a   : > { %v5574_v15 = vpop.permute.xlu0 %5573 }
0x178b   : > { %8411 = vmatprep.mubr.msk.f32.mxu0 %vm691_vm5, %v5574_v15  ;;  %v8925_v15 = vld [vmem:[%s10708_s4 + $0x28] sm:$0xff] }
0x178e   : > { %v5576_v25 = vpop.permute.xlu1 %5575  ;;  %v5705_v27 = vpop.permute.xlu0 %5704 }
0x178f   : > { %8412 = vmatmul.mubr.msk.f32.gmra.mxu0 %vm691_vm5, %v5576_v25  ;;  %8415 = vmatpush3.msra.mxu1 %v5705_v27 }
0x1790   : > { %8416 = vmatprep.subr.mxu1 %v10771_v59  ;;  %8426 = vmatpush3.msra.mxu0 %v5705_v27 }
0x1791   : > { %8427 = vmatprep.subr.mxu0 %v10771_v59  ;;  %8433 = vmatprep.mubr.msk.f32.mxu0 %vm8976_vm3, %v10771_v59 }
0x1792   : > { %v5703_v50 = vpop.permute.xlu1 %5702  ;;  %v5701_v57 = vpop.permute.xlu0 %5700 }
0x1793   : > { %8417 = vmatpush3.msra.mxu1 %v5703_v50  ;;  %8428 = vmatpush3.msra.mxu0 %v5703_v50 }
0x1794   : > { %8418 = vmatprep.subr.mxu1 %v10771_v59  ;;  %8429 = vmatprep.subr.mxu0 %v10771_v59 }
0x1795   : > { %8419 = vmatpush3.msra.mxu1 %v5701_v57  ;;  %8430 = vmatpush3.msra.mxu0 %v5701_v57  ;;  %v8926_v57 = vld [vmem:[%s10708_s4 + $0x58] sm:$0xff] }
0x1796   : > { %v5699_v11 = vpop.permute.xlu0 %5698  ;;  %8420 = vmatprep.subr.mxu1 %v10771_v59  ;;  %8431 = vmatprep.subr.mxu0 %v10771_v59 }
0x1797   : > { %8421 = vmatpush3.msra.mxu1 %v5699_v11  ;;  %8432 = vmatpush3.msra.mxu0 %v5699_v11 }
0x1798   : > { %8468 = vmatprep.subr.mxu0 %v10449_v13 }
0x179a   : > { %v5915_v39 = vpop.permute.xlu0 %5914 }
0x179e   : > { %v3382_v2 = vpop.permute.xlu0 %3381 }
0x17a2   : > { %v5911_v45 = vpop.permute.xlu0 %5910 }
0x17bd   : > { %v930_v23 = vpop.permute.xlu1 %929 }
0x17be   : > { %v932_v35 = vadd.f32 %v930_v23, %v10362_v52  ;;  %v8927_v23 = vld [vmem:[%s10708_s4 + $0x48] sm:$0xff] }
0x17c0   : > { %v5813_v41 = vrot.slane %v932_v35, 1  ;;  %8423 = vmatmul.mubr.msk.f32.vlgmr.msra.gmra.mxu1 %vm691_vm5, %v932_v35 }
0x17c1   : > { %v5917_v7 = vpop.permute.xlu1 %5916 }
0x17c2   : > { %8434 = vmatmul.mubr.msk.f32.vlgmr.msra.gmra.mxu0 %vm691_vm5, %v5813_v41  ;;  %8436 = vmatprep.subr.mxu1 %v5917_v7 }
0x17c3   : > { %8437 = vmatpush3.msra.mxu1 %v5917_v7  ;;  %8469 = vmatpush3.msra.mxu0 %v10449_v13  ;;  %v8928_v7 = vld [vmem:[%s10708_s4 + $0x78] sm:$0xff] }
0x17c4   : > { %8438 = vmatprep.subr.mxu1 %v5915_v39  ;;  %8470 = vmatprep.subr.mxu0 %v10451_v8 }
0x17c5   : > { %v3380_v18 = vpop.permute.xlu1 %3379  ;;  %8439 = vmatpush3.msra.mxu1 %v5915_v39  ;;  %8471 = vmatpush3.msra.mxu0 %v10451_v8 }
0x17c6   : > { %v3384_v61 = vsel %vm3383_vm11, %v3380_v18, %v3382_v2  ;;  %8472 = vmatprep.subr.mxu0 %v10457_v31  ;;  %v8929_v18 = vld [vmem:[%s10708_s4 + $0x68] sm:$0xff] }
0x17c7   : > { %v3469_v19 = vadd.f32 %v10017_v17, %v3384_v61  ;;  %v3474_v49 = vadd.f32 %v10015_v60, %v3384_v61  ;;  %v3479_v42 = vadd.f32 %v10021_v12, %v3384_v61  ;;  %v3484_v33 = vadd.f32 %v10019_v0, %v3384_v61  ;;  %8473 = vmatpush3.msra.mxu0 %v10457_v31 }
0x17c8   : > { %v3489_v17 = vadd.f32 %v10025_v36, %v3384_v61  ;;  %v3494_v29 = vadd.f32 %v10023_v4, %v3384_v61  ;;  %v3499_v43 = vadd.f32 %v10029_v1, %v3384_v61  ;;  %v3504_v60 = vadd.f32 %v10027_v58, %v3384_v61  ;;  %8474 = vmatprep.subr.mxu0 %v10459_v3 }
0x17c9   : > { %v5913_v24 = vpop.permute.xlu1 %5912  ;;  %8444 = vmatprep.mubr.msk.f32.mxu1 %vm691_vm5, %v3469_v19  ;;  %8475 = vmatpush3.msra.mxu0 %v10459_v3 }
0x17ca   : > { %8440 = vmatprep.subr.mxu1 %v5913_v24 }
0x17cb   : > { %8441 = vmatpush3.msra.mxu1 %v5913_v24 }
0x17cc   : > { %8442 = vmatprep.subr.mxu1 %v5911_v45 }
0x17cd   : > { %8443 = vmatpush3.msra.mxu1 %v5911_v45 }
0x17ce   : > { %8445 = vmatmul.mubr.msk.f32.vlgmr.msra.gmra.mxu1 %vm691_vm5, %v3474_v49 }
0x17cf   : > { %8447 = vmatprep.mubr.msk.f32.mxu1 %vm691_vm5, %v3479_v42 }
0x17d2   : > { %8448 = vmatmul.mubr.msk.f32.gmra.mxu1 %vm691_vm5, %v3484_v33 }
0x17d3   : > { %8450 = vmatprep.mubr.msk.f32.mxu1 %vm691_vm5, %v3489_v17 }
0x17d6   : > { %8451 = vmatmul.mubr.msk.f32.gmra.mxu1 %vm691_vm5, %v3494_v29 }
0x17d7   : > { %8453 = vmatprep.mubr.msk.f32.mxu1 %vm691_vm5, %v3499_v43 }
0x17da   : > { %8454 = vmatmul.mubr.msk.f32.gmra.mxu1 %vm691_vm5, %v3504_v60 }
0x183b   : > { %v8404_v12 = vpop.f32.mrf.mxu0 }
0x183c   : > { %v5665_v36 = vadd.f32 %v8404_v12, %v3384_v61 }
0x183d   : > { %v5659_v0 = vpop.f32.mrf.mxu0 }
0x183e   : > { %v5660_v62 = vadd.f32 %v5659_v0, %v3384_v61 }
0x1840   : > { %v8407_v51 = vpop.f32.mrf.mxu0  ;;  %8456 = vmatprep.mubr.msk.f32.mxu1 %vm691_vm5, %v5660_v62 }
0x1841   : > { %8457 = vmatmul.mubr.msk.f32.gmra.mxu1 %vm691_vm5, %v5665_v36  ;;  %v5675_v1 = vadd.f32 %v8407_v51, %v3384_v61 }
0x1842   : > { %v5669_v4 = vpop.f32.mrf.mxu0 }
0x1843   : > { %v5670_v52 = vadd.f32 %v5669_v4, %v3384_v61 }
0x1845   : > { %8459 = vmatprep.mubr.msk.f32.mxu1 %vm691_vm5, %v5670_v52 }
0x1846   : > { %8460 = vmatmul.mubr.msk.f32.gmra.mxu1 %vm691_vm5, %v5675_v1 }
0x1848   : > { %v8410_v63 = vpop.f32.mrf.mxu0 }
0x1849   : > { %v5685_v14 = vadd.f32 %v8410_v63, %v3384_v61 }
0x184a   : > { %v5679_v58 = vpop.f32.mrf.mxu0 }
0x184b   : > { %v5680_v20 = vadd.f32 %v5679_v58, %v3384_v61 }
0x184d   : > { %8462 = vmatprep.mubr.msk.f32.mxu1 %vm691_vm5, %v5680_v20 }
0x184e   : > { %8463 = vmatmul.mubr.msk.f32.gmra.mxu1 %vm691_vm5, %v5685_v14 }
0x184f   : > { %v8413_v53 = vpop.f32.mrf.mxu0 }
0x1850   : > { %v5695_v16 = vadd.f32 %v8413_v53, %v3384_v61 }
0x1851   : > { %v5689_v37 = vpop.f32.mrf.mxu0 }
0x1852   : > { %v5690_v21 = vadd.f32 %v5689_v37, %v3384_v61 }
0x1854   : > { %8465 = vmatprep.mubr.msk.f32.mxu1 %vm691_vm5, %v5690_v21 }
0x1855   : > { %8466 = vmatmul.mubr.msk.f32.gmra.mxu1 %vm691_vm5, %v5695_v16 }
0x1880   : > { %v5779_v44 = vpop.f32.mrf.mxu1 }
0x1881   : > { %v5786_v6 = vrot.slane %v5779_v44, %v10320_v54 }
0x1882   : > { %v8424_v48 = vpop.f32.mrf.mxu1  ;;  %v5882_v22 = vpop.f32.mrf.mxu0 }
0x1883   : > { %v5889_v56 = vrot.slane %v5882_v22, %v10320_v54  ;;  %5788 = vrot.lane.b32.xlu1 %v5786_v6, %s8988_s8 }
0x1884   : > { %v8435_v38 = vpop.f32.mrf.mxu0 }
0x1885   : > { %5891 = vrot.lane.b32.xlu0 %v5889_v56, %s8988_s8 }
0x188e   : > { %v8446_v58 = vpop.f32.mrf.mxu1 }
0x1890   : > { %v6100_v20 = vpop.f32.mrf.mxu1 }
0x1892   : > { %v8449_v14 = vpop.f32.mrf.mxu1 }
0x1894   : > { %v6110_v53 = vpop.f32.mrf.mxu1 }
0x1896   : > { %v8452_v37 = vpop.f32.mrf.mxu1 }
0x1898   : > { %v6120_v21 = vpop.f32.mrf.mxu1 }
0x189a   : > { %v8455_v16 = vpop.f32.mrf.mxu1 }
0x189c   : > { %v6130_v48 = vpop.f32.mrf.mxu1 }
0x18f5   : > { %v5789_v10 = vpop.permute.xlu1 %5788 }
0x18f6   : > { %v5792_v55 = vadd.f32 %v8922_v46, %v5789_v10  ;;  %v5791_v40 = vadd.f32 %v8923_v5, %v5789_v10  ;;  %v5794_v28 = vadd.f32 %v8924_v47, %v5789_v10  ;;  %v5793_v25 = vadd.f32 %v8925_v15, %v5789_v10 }
0x18f7   : > { %v5796_v11 = vadd.f32 %v8926_v57, %v5789_v10  ;;  %v5795_v39 = vadd.f32 %v8927_v23, %v5789_v10  ;;  %v5798_v2 = vadd.f32 %v8928_v7, %v5789_v10  ;;  %v5797_v61 = vadd.f32 %v8929_v18, %v5789_v10  ;;  %v5892_v19 = vpop.permute.xlu0 %5891 }
0x18f8   : > { %v5806_v9 = vadd.f32 %v10468_v26, %v5792_v55  ;;  %v5805_v30 = vadd.f32 %v10468_v26, %v5791_v40  ;;  %v5808_v27 = vadd.f32 %v10468_v26, %v5794_v28  ;;  %v5807_v50 = vadd.f32 %v10468_v26, %v5793_v25 }
0x18f9   : > { %v5810_v35 = vadd.f32 %v10468_v26, %v5796_v11  ;;  %v5809_v41 = vadd.f32 %v10468_v26, %v5795_v39  ;;  %v5812_v24 = vadd.f32 %v10468_v26, %v5798_v2  ;;  %v5811_v45 = vadd.f32 %v10468_v26, %v5797_v61 }
0x18fa   : > { %5940 = vrot.lane.b32.xlu0 %v5806_v9, %s8979_s18  ;;  %5938 = vrot.lane.b32.xlu1 %v5805_v30, %s8979_s18  ;;  %v5895_v49 = vadd.f32 %v8922_v46, %v5892_v19  ;;  %v5894_v42 = vadd.f32 %v8923_v5, %v5892_v19  ;;  %v5897_v29 = vadd.f32 %v8924_v47, %v5892_v19 }
0x18fb   : > { %v5896_v43 = vadd.f32 %v8925_v15, %v5892_v19  ;;  %v5899_v0 = vadd.f32 %v8926_v57, %v5892_v19  ;;  %v5898_v62 = vadd.f32 %v8927_v23, %v5892_v19  ;;  %v5901_v4 = vadd.f32 %v8928_v7, %v5892_v19 }
0x18fc   : > { %v5903_v33 = vadd.f32 %v10468_v26, %v5895_v49  ;;  %v5902_v17 = vadd.f32 %v10468_v26, %v5894_v42  ;;  %v5905_v60 = vadd.f32 %v10468_v26, %v5897_v29  ;;  %v5900_v52 = vadd.f32 %v8929_v18, %v5892_v19 }
0x18fd   : > { %v5904_v12 = vadd.f32 %v10468_v26, %v5896_v43  ;;  %v5907_v36 = vadd.f32 %v10468_v26, %v5899_v0  ;;  %v5906_v51 = vadd.f32 %v10468_v26, %v5898_v62  ;;  %v5909_v1 = vadd.f32 %v10468_v26, %v5901_v4 }
0x18fe   : > { %5944 = vrot.lane.b32.xlu0 %v5808_v27, %s8979_s18  ;;  %5942 = vrot.lane.b32.xlu1 %v5807_v50, %s8979_s18  ;;  %v5908_v63 = vadd.f32 %v10468_v26, %v5900_v52 }
0x1901   : > { %v8458_v38 = vpop.f32.mrf.mxu1 }
0x1902   : > { %5948 = vrot.lane.b32.xlu0 %v5810_v35, %s8979_s18  ;;  %5946 = vrot.lane.b32.xlu1 %v5809_v41, %s8979_s18 }
0x1906   : > { %5952 = vrot.lane.b32.xlu0 %v5812_v24, %s8979_s18  ;;  %5950 = vrot.lane.b32.xlu1 %v5811_v45, %s8979_s18 }
0x190a   : > { %5956 = vrot.lane.b32.xlu0 %v5903_v33, %s8979_s18  ;;  %5954 = vrot.lane.b32.xlu1 %v5902_v17, %s8979_s18 }
0x190e   : > { %5960 = vrot.lane.b32.xlu0 %v5905_v60, %s8979_s18  ;;  %5958 = vrot.lane.b32.xlu1 %v5904_v12, %s8979_s18 }
0x1912   : > { %5964 = vrot.lane.b32.xlu0 %v5907_v36, %s8979_s18  ;;  %5962 = vrot.lane.b32.xlu1 %v5906_v51, %s8979_s18 }
0x1916   : > { %5968 = vrot.lane.b32.xlu0 %v5909_v1, %s8979_s18  ;;  %5966 = vrot.lane.b32.xlu1 %v5908_v63, %s8979_s18 }
0x191a   : > { %6417 = vrot.lane.b32.xlu1 %v10449_v13, %s8973_s16  ;;  %6415 = vrot.lane.b32.xlu0 %v10451_v8, %s8973_s16 }
0x191e   : > { %6195 = vrot.lane.b32.xlu1 %v10468_v26, %s8977_s15  ;;  %6413 = vrot.lane.b32.xlu0 %v10457_v31, %s8973_s16 }
0x1922   : > { %6411 = vrot.lane.b32.xlu1 %v10459_v3, %s8973_s16  ;;  %6650 = vrot.lane.b32.xlu0 %v10449_v13, %s8972_s9 }
0x1926   : > { %6648 = vrot.lane.b32.xlu1 %v10451_v8, %s8972_s9  ;;  %6423 = vrot.lane.b32.xlu0 %v10468_v26, %s8985_s7 }
0x192a   : > { %6646 = vrot.lane.b32.xlu1 %v10457_v31, %s8972_s9  ;;  %6644 = vrot.lane.b32.xlu0 %v10459_v3, %s8972_s9  ;;  %v6140_v3 = vpop.f32.mrf.mxu1 }
0x192c   : > { %v8461_v28 = vpop.f32.mrf.mxu1 }
0x192e   : > { %v6150_v23 = vpop.f32.mrf.mxu1 }
0x1930   : > { %v8464_v2 = vpop.f32.mrf.mxu1 }
0x1932   : > { %v6160_v42 = vpop.f32.mrf.mxu1 }
0x1934   : > { %v8467_v29 = vpop.f32.mrf.mxu1 }
0x1936   : > { %v6170_v51 = vpop.f32.mrf.mxu1 }
0x196c   : > { %v5939_v44 = vpop.permute.xlu1 %5938  ;;  %v5941_v6 = vpop.permute.xlu0 %5940 }
0x196d   : > { %v6101_v22 = vadd.f32 %v6100_v20, %v5939_v44  ;;  %v6106_v56 = vadd.f32 %v8446_v58, %v5941_v6 }
0x196f   : > { %v6179_v13 = vmax.f32 %v6101_v22, 0.0  ;;  %v6180_v8 = vmax.f32 %v6106_v56, 0.0 }
0x1970   : > { %v5943_v10 = vpop.permute.xlu1 %5942  ;;  %v5945_v31 = vpop.permute.xlu0 %5944 }
0x1971   : > { %v6111_v26 = vadd.f32 %v6110_v53, %v5943_v10  ;;  %v6116_v46 = vadd.f32 %v8449_v14, %v5945_v31  ;;  %8476 = vmatprep.mubr.msk.f32.mxu0 %vm691_vm5, %v6179_v13 }
0x1972   : > { %8477 = vmatmul.mubr.msk.f32.vlgmr.msra.gmra.mxu0 %vm691_vm5, %v6180_v8 }
0x1973   : > { %v6181_v55 = vmax.f32 %v6111_v26, 0.0  ;;  %v6182_v5 = vmax.f32 %v6116_v46, 0.0 }
0x1974   : > { %v5947_v40 = vpop.permute.xlu1 %5946  ;;  %v5949_v9 = vpop.permute.xlu0 %5948 }
0x1975   : > { %v6121_v30 = vadd.f32 %v6120_v21, %v5947_v40  ;;  %v6126_v47 = vadd.f32 %v8452_v37, %v5949_v9  ;;  %8479 = vmatprep.mubr.msk.f32.mxu0 %vm691_vm5, %v6181_v55 }
0x1976   : > { %8480 = vmatmul.mubr.msk.f32.gmra.mxu0 %vm691_vm5, %v6182_v5 }
0x1977   : > { %v6183_v15 = vmax.f32 %v6121_v30, 0.0  ;;  %v6184_v25 = vmax.f32 %v6126_v47, 0.0 }
0x1978   : > { %v5951_v27 = vpop.permute.xlu1 %5950  ;;  %v5953_v50 = vpop.permute.xlu0 %5952 }
0x1979   : > { %v6131_v57 = vadd.f32 %v6130_v48, %v5951_v27  ;;  %v6136_v11 = vadd.f32 %v8455_v16, %v5953_v50  ;;  %8482 = vmatprep.mubr.msk.f32.mxu0 %vm691_vm5, %v6183_v15 }
0x197a   : > { %8483 = vmatmul.mubr.msk.f32.gmra.mxu0 %vm691_vm5, %v6184_v25 }
0x197b   : > { %v6185_v39 = vmax.f32 %v6131_v57, 0.0  ;;  %v6186_v35 = vmax.f32 %v6136_v11, 0.0 }
0x197c   : > { %v5955_v41 = vpop.permute.xlu1 %5954  ;;  %v5957_v7 = vpop.permute.xlu0 %5956 }
0x197d   : > { %v6141_v18 = vadd.f32 %v6140_v3, %v5955_v41  ;;  %v6146_v61 = vadd.f32 %v8458_v38, %v5957_v7  ;;  %8485 = vmatprep.mubr.msk.f32.mxu0 %vm691_vm5, %v6185_v39 }
0x197e   : > { %8486 = vmatmul.mubr.msk.f32.gmra.mxu0 %vm691_vm5, %v6186_v35 }
0x197f   : > { %v6187_v19 = vmax.f32 %v6141_v18, 0.0  ;;  %v6188_v24 = vmax.f32 %v6146_v61, 0.0 }
0x1980   : > { %v5959_v45 = vpop.permute.xlu1 %5958  ;;  %v5961_v49 = vpop.permute.xlu0 %5960 }
0x1981   : > { %v6151_v33 = vadd.f32 %v6150_v23, %v5959_v45  ;;  %v6156_v17 = vadd.f32 %v8461_v28, %v5961_v49  ;;  %8488 = vmatprep.mubr.msk.f32.mxu0 %vm691_vm5, %v6187_v19 }
0x1982   : > { %8489 = vmatmul.mubr.msk.f32.gmra.mxu0 %vm691_vm5, %v6188_v24 }
0x1983   : > { %v6189_v43 = vmax.f32 %v6151_v33, 0.0  ;;  %v6190_v60 = vmax.f32 %v6156_v17, 0.0 }
0x1984   : > { %v5963_v12 = vpop.permute.xlu1 %5962  ;;  %v5965_v0 = vpop.permute.xlu0 %5964 }
0x1985   : > { %v6161_v62 = vadd.f32 %v6160_v42, %v5963_v12  ;;  %v6166_v36 = vadd.f32 %v8464_v2, %v5965_v0  ;;  %8491 = vmatprep.mubr.msk.f32.mxu0 %vm691_vm5, %v6189_v43 }
0x1986   : > { %8492 = vmatmul.mubr.msk.f32.gmra.mxu0 %vm691_vm5, %v6190_v60 }
0x1987   : > { %v6191_v4 = vmax.f32 %v6161_v62, 0.0  ;;  %v6192_v52 = vmax.f32 %v6166_v36, 0.0 }
0x1988   : > { %v5967_v1 = vpop.permute.xlu1 %5966  ;;  %v5969_v63 = vpop.permute.xlu0 %5968 }
0x1989   : > { %v6171_v58 = vadd.f32 %v6170_v51, %v5967_v1  ;;  %v6176_v20 = vadd.f32 %v8467_v29, %v5969_v63  ;;  %8494 = vmatprep.mubr.msk.f32.mxu0 %vm691_vm5, %v6191_v4 }
0x198a   : > { %8495 = vmatmul.mubr.msk.f32.gmra.mxu0 %vm691_vm5, %v6192_v52 }
0x198b   : > { %v6193_v14 = vmax.f32 %v6171_v58, 0.0  ;;  %v6194_v53 = vmax.f32 %v6176_v20, 0.0 }
0x198c   : > { %v6418_v37 = vpop.permute.xlu1 %6417  ;;  %v6416_v21 = vpop.permute.xlu0 %6415 }
0x198d   : > { %8497 = vmatprep.mubr.msk.f32.mxu0 %vm691_vm5, %v6193_v14  ;;  %8500 = vmatprep.subr.mxu1 %v6418_v37  ;;  %v328_v14 = vld [vmem:[%s10709_s5 + $0x3] sm:$0x3] }
0x198e   : > { %8498 = vmatmul.mubr.msk.f32.gmra.mxu0 %vm691_vm5, %v6194_v53  ;;  %8501 = vmatpush3.msra.mxu1 %v6418_v37  ;;  %v6643_v53 = vrot.slane %v328_v14, %v10337_v34  ;;  %v6639_v37 = vrot.slane %v328_v14, %v10320_v54 }
0x198f   : > { %8502 = vmatprep.subr.mxu1 %v6416_v21 }
0x1990   : > { %8503 = vmatpush3.msra.mxu1 %v6416_v21  ;;  %v10562_v16 = vpop.permute.xlu1 %6195  ;;  %v6414_v44 = vpop.permute.xlu0 %6413  ;;  %6658 = vrot.lane.b32.xlu0 %v6643_v53, %s8987_s24  ;;  %v8930_v21 = vld [vmem:[%s10706_s2] sm:$0x3] }
0x1991   : > { %8504 = vmatprep.subr.mxu1 %v6414_v44  ;;  %6656 = vrot.lane.b32.xlu1 %v6639_v37, %s8987_s24 }
0x1992   : > { %8505 = vmatpush3.msra.mxu1 %v6414_v44 }
0x1994   : > { %v6412_v6 = vpop.permute.xlu1 %6411  ;;  %v6651_v48 = vpop.permute.xlu0 %6650 }
0x1995   : > { %8506 = vmatprep.subr.mxu1 %v6412_v6  ;;  %8532 = vmatprep.subr.mxu0 %v6651_v48 }
0x1996   : > { %8507 = vmatpush3.msra.mxu1 %v6412_v6  ;;  %8533 = vmatpush3.msra.mxu0 %v6651_v48 }
0x1997   : > { %8564 = vmatprep.subr.mxu1 %v10771_v59  ;;  %6871 = vrot.lane.b32.xlu1 %v8930_v21, %s8985_s7 }
0x1998   : > { %v6649_v22 = vpop.permute.xlu1 %6648  ;;  %v10599_v58 = vpop.permute.xlu0 %6423 }
0x1999   : > { %8534 = vmatprep.subr.mxu0 %v6649_v22 }
0x199a   : > { %8535 = vmatpush3.msra.mxu0 %v6649_v22 }
0x199c   : > { %v6647_v63 = vpop.permute.xlu1 %6646  ;;  %v6645_v20 = vpop.permute.xlu0 %6644 }
0x199d   : > { %8536 = vmatprep.subr.mxu0 %v6647_v63 }
0x199e   : > { %8537 = vmatpush3.msra.mxu0 %v6647_v63 }
0x199f   : > { %8538 = vmatprep.subr.mxu0 %v6645_v20 }
0x19a0   : > { %8539 = vmatpush3.msra.mxu0 %v6645_v20 }
0x1a32   : > { %v8478_v56 = vpop.f32.mrf.mxu0 }
0x1a33   : > { %v6318_v38 = vadd.f32 %v8478_v56, %v10562_v16 }
0x1a34   : > { %v6312_v13 = vpop.f32.mrf.mxu0 }
0x1a35   : > { %v6313_v8 = vadd.f32 %v6312_v13, %v10562_v16  ;;  %v6392_v26 = vmax.f32 %v6318_v38, 0.0 }
0x1a36   : > { %v8481_v10 = vpop.f32.mrf.mxu0 }
0x1a37   : > { %v6391_v31 = vmax.f32 %v6313_v8, 0.0  ;;  %v6328_v46 = vadd.f32 %v8481_v10, %v10562_v16 }
0x1a38   : > { %v6322_v3 = vpop.f32.mrf.mxu0 }
0x1a39   : > { %v6323_v55 = vadd.f32 %v6322_v3, %v10562_v16  ;;  %8508 = vmatprep.mubr.msk.f32.mxu1 %vm691_vm5, %v6391_v31  ;;  %v6394_v9 = vmax.f32 %v6328_v46, 0.0 }
0x1a3a   : > { %v8484_v5 = vpop.f32.mrf.mxu0  ;;  %8509 = vmatmul.mubr.msk.f32.vlgmr.msra.gmra.mxu1 %vm691_vm5, %v6392_v26 }
0x1a3b   : > { %v6393_v40 = vmax.f32 %v6323_v55, 0.0  ;;  %v6338_v30 = vadd.f32 %v8484_v5, %v10562_v16 }
0x1a3c   : > { %v6332_v47 = vpop.f32.mrf.mxu0 }
0x1a3d   : > { %v6333_v28 = vadd.f32 %v6332_v47, %v10562_v16  ;;  %8511 = vmatprep.mubr.msk.f32.mxu1 %vm691_vm5, %v6393_v40  ;;  %v6396_v27 = vmax.f32 %v6338_v30, 0.0 }
0x1a3e   : > { %v8487_v15 = vpop.f32.mrf.mxu0  ;;  %8512 = vmatmul.mubr.msk.f32.gmra.mxu1 %vm691_vm5, %v6394_v9 }
0x1a3f   : > { %v6395_v25 = vmax.f32 %v6333_v28, 0.0  ;;  %v6348_v50 = vadd.f32 %v8487_v15, %v10562_v16 }
0x1a40   : > { %v6342_v57 = vpop.f32.mrf.mxu0 }
0x1a41   : > { %v6343_v11 = vadd.f32 %v6342_v57, %v10562_v16  ;;  %8514 = vmatprep.mubr.msk.f32.mxu1 %vm691_vm5, %v6395_v25  ;;  %v6398_v35 = vmax.f32 %v6348_v50, 0.0 }
0x1a42   : > { %v8490_v23 = vpop.f32.mrf.mxu0  ;;  %8515 = vmatmul.mubr.msk.f32.gmra.mxu1 %vm691_vm5, %v6396_v27 }
0x1a43   : > { %v6397_v39 = vmax.f32 %v6343_v11, 0.0  ;;  %v6358_v41 = vadd.f32 %v8490_v23, %v10562_v16 }
0x1a44   : > { %v6352_v7 = vpop.f32.mrf.mxu0 }
0x1a45   : > { %v6353_v2 = vadd.f32 %v6352_v7, %v10562_v16  ;;  %8517 = vmatprep.mubr.msk.f32.mxu1 %vm691_vm5, %v6397_v39  ;;  %v6400_v19 = vmax.f32 %v6358_v41, 0.0 }
0x1a46   : > { %v8493_v18 = vpop.f32.mrf.mxu0  ;;  %8518 = vmatmul.mubr.msk.f32.gmra.mxu1 %vm691_vm5, %v6398_v35 }
0x1a47   : > { %v6399_v61 = vmax.f32 %v6353_v2, 0.0  ;;  %v6368_v24 = vadd.f32 %v8493_v18, %v10562_v16 }
0x1a48   : > { %v6362_v45 = vpop.f32.mrf.mxu0 }
0x1a49   : > { %v6363_v49 = vadd.f32 %v6362_v45, %v10562_v16  ;;  %8520 = vmatprep.mubr.msk.f32.mxu1 %vm691_vm5, %v6399_v61  ;;  %v6402_v17 = vmax.f32 %v6368_v24, 0.0 }
0x1a4a   : > { %v8496_v42 = vpop.f32.mrf.mxu0  ;;  %8521 = vmatmul.mubr.msk.f32.gmra.mxu1 %vm691_vm5, %v6400_v19 }
0x1a4b   : > { %v6401_v33 = vmax.f32 %v6363_v49, 0.0  ;;  %v6378_v29 = vadd.f32 %v8496_v42, %v10562_v16 }
0x1a4c   : > { %v6372_v43 = vpop.f32.mrf.mxu0 }
0x1a4d   : > { %v6373_v60 = vadd.f32 %v6372_v43, %v10562_v16  ;;  %8523 = vmatprep.mubr.msk.f32.mxu1 %vm691_vm5, %v6401_v33  ;;  %v6404_v62 = vmax.f32 %v6378_v29, 0.0 }
0x1a4e   : > { %v8499_v12 = vpop.f32.mrf.mxu0  ;;  %8524 = vmatmul.mubr.msk.f32.gmra.mxu1 %vm691_vm5, %v6402_v17 }
0x1a4f   : > { %v6403_v0 = vmax.f32 %v6373_v60, 0.0  ;;  %v6388_v36 = vadd.f32 %v8499_v12, %v10562_v16 }
0x1a50   : > { %v6382_v51 = vpop.f32.mrf.mxu0 }
0x1a51   : > { %v6383_v4 = vadd.f32 %v6382_v51, %v10562_v16  ;;  %8526 = vmatprep.mubr.msk.f32.mxu1 %vm691_vm5, %v6403_v0  ;;  %v6406_v1 = vmax.f32 %v6388_v36, 0.0  ;;  %v8989_v36 = vmov 9   ;;  %v8990_v51 = vmov 8  }
0x1a52   : > { %8527 = vmatmul.mubr.msk.f32.gmra.mxu1 %vm691_vm5, %v6404_v62  ;;  %v329_v62 = vld [vmem:[%s10709_s5 + $0x4] sm:$0x1]  ;;  %8639 = vset.pattern.permute.xlu0 %v8989_v36 }
0x1a53   : > { %v6405_v52 = vmax.f32 %v6383_v4, 0.0  ;;  %8640 = vset.pattern.permute.xlu1 %v8990_v51  ;;  %7004 = vperm.xlu0 %8639, %v329_v62  }
0x1a54   : > { %6995 = vperm.xlu1 %8640, %v329_v62  }
0x1a55   : > { %8529 = vmatprep.mubr.msk.f32.mxu1 %vm691_vm5, %v6405_v52 }
0x1a56   : > { %8530 = vmatmul.mubr.msk.f32.gmra.mxu1 %vm691_vm5, %v6406_v1 }
0x1a57   : > { %8596 = vmatprep.mubr.msk.f32.mxu1 %vm8976_vm3, %v10771_v59 }
0x1afa   : > { %v8510_v16 = vpop.f32.mrf.mxu1 }
0x1afb   : > { %v6546_v6 = vadd.f32 %v8510_v16, %v10599_v58 }
0x1afc   : > { %v6540_v44 = vpop.f32.mrf.mxu1 }
0x1afd   : > { %v6541_v48 = vadd.f32 %v6540_v44, %v10599_v58  ;;  %v6620_v13 = vmax.f32 %v6546_v6, 0.0 }
0x1afe   : > { %v8513_v22 = vpop.f32.mrf.mxu1 }
0x1aff   : > { %v6619_v34 = vmax.f32 %v6541_v48, 0.0  ;;  %v6556_v56 = vadd.f32 %v8513_v22, %v10599_v58  ;;  %v6657_v48 = vpop.permute.xlu1 %6656  ;;  %v6659_v22 = vpop.permute.xlu0 %6658 }
0x1b00   : > { %v6550_v38 = vpop.f32.mrf.mxu1 }
0x1b01   : > { %v6551_v8 = vadd.f32 %v6550_v38, %v10599_v58  ;;  %8540 = vmatprep.mubr.msk.f32.mxu0 %vm691_vm5, %v6619_v34  ;;  %v6622_v26 = vmax.f32 %v6556_v56, 0.0  ;;  %v6660_v56 = vsel %vm3383_vm11, %v6657_v48, %v6659_v22 }
0x1b02   : > { %v8516_v10 = vpop.f32.mrf.mxu1  ;;  %8541 = vmatmul.mubr.msk.f32.vlgmr.msra.gmra.mxu0 %vm691_vm5, %v6620_v13 }
0x1b03   : > { %v6621_v31 = vmax.f32 %v6551_v8, 0.0  ;;  %v6566_v46 = vadd.f32 %v8516_v10, %v10599_v58 }
0x1b04   : > { %v6560_v3 = vpop.f32.mrf.mxu1 }
0x1b05   : > { %v6561_v55 = vadd.f32 %v6560_v3, %v10599_v58  ;;  %8543 = vmatprep.mubr.msk.f32.mxu0 %vm691_vm5, %v6621_v31  ;;  %v6624_v9 = vmax.f32 %v6566_v46, 0.0 }
0x1b06   : > { %v8519_v5 = vpop.f32.mrf.mxu1  ;;  %8544 = vmatmul.mubr.msk.f32.gmra.mxu0 %vm691_vm5, %v6622_v26 }
0x1b07   : > { %v6623_v40 = vmax.f32 %v6561_v55, 0.0  ;;  %v6576_v30 = vadd.f32 %v8519_v5, %v10599_v58 }
0x1b08   : > { %v6570_v47 = vpop.f32.mrf.mxu1 }
0x1b09   : > { %v6571_v28 = vadd.f32 %v6570_v47, %v10599_v58  ;;  %8546 = vmatprep.mubr.msk.f32.mxu0 %vm691_vm5, %v6623_v40  ;;  %v6626_v27 = vmax.f32 %v6576_v30, 0.0 }
0x1b0a   : > { %v8522_v15 = vpop.f32.mrf.mxu1  ;;  %8547 = vmatmul.mubr.msk.f32.gmra.mxu0 %vm691_vm5, %v6624_v9 }
0x1b0b   : > { %v6625_v25 = vmax.f32 %v6571_v28, 0.0  ;;  %v6586_v50 = vadd.f32 %v8522_v15, %v10599_v58 }
0x1b0c   : > { %v6580_v57 = vpop.f32.mrf.mxu1 }
0x1b0d   : > { %v6581_v11 = vadd.f32 %v6580_v57, %v10599_v58  ;;  %8549 = vmatprep.mubr.msk.f32.mxu0 %vm691_vm5, %v6625_v25  ;;  %v6628_v35 = vmax.f32 %v6586_v50, 0.0 }
0x1b0e   : > { %v8525_v23 = vpop.f32.mrf.mxu1  ;;  %8550 = vmatmul.mubr.msk.f32.gmra.mxu0 %vm691_vm5, %v6626_v27 }
0x1b0f   : > { %v6627_v39 = vmax.f32 %v6581_v11, 0.0  ;;  %v6596_v41 = vadd.f32 %v8525_v23, %v10599_v58 }
0x1b10   : > { %v6590_v7 = vpop.f32.mrf.mxu1 }
0x1b11   : > { %v6591_v2 = vadd.f32 %v6590_v7, %v10599_v58  ;;  %8552 = vmatprep.mubr.msk.f32.mxu0 %vm691_vm5, %v6627_v39  ;;  %v6630_v19 = vmax.f32 %v6596_v41, 0.0 }
0x1b12   : > { %v8528_v18 = vpop.f32.mrf.mxu1  ;;  %8553 = vmatmul.mubr.msk.f32.gmra.mxu0 %vm691_vm5, %v6628_v35 }
0x1b13   : > { %v6629_v61 = vmax.f32 %v6591_v2, 0.0  ;;  %v6606_v24 = vadd.f32 %v8528_v18, %v10599_v58 }
0x1b14   : > { %v6600_v45 = vpop.f32.mrf.mxu1 }
0x1b15   : > { %v6601_v49 = vadd.f32 %v6600_v45, %v10599_v58  ;;  %8555 = vmatprep.mubr.msk.f32.mxu0 %vm691_vm5, %v6629_v61  ;;  %v6632_v17 = vmax.f32 %v6606_v24, 0.0 }
0x1b16   : > { %v8531_v42 = vpop.f32.mrf.mxu1  ;;  %8556 = vmatmul.mubr.msk.f32.gmra.mxu0 %vm691_vm5, %v6630_v19 }
0x1b17   : > { %v6631_v33 = vmax.f32 %v6601_v49, 0.0  ;;  %v6616_v29 = vadd.f32 %v8531_v42, %v10599_v58 }
0x1b18   : > { %v6610_v43 = vpop.f32.mrf.mxu1 }
0x1b19   : > { %v6611_v60 = vadd.f32 %v6610_v43, %v10599_v58  ;;  %8558 = vmatprep.mubr.msk.f32.mxu0 %vm691_vm5, %v6631_v33  ;;  %v6634_v0 = vmax.f32 %v6616_v29, 0.0  ;;  %v6872_v33 = vpop.permute.xlu1 %6871  ;;  %v7005_v29 = vpop.permute.xlu0 %7004 }
0x1b1a   : > { %8559 = vmatmul.mubr.msk.f32.gmra.mxu0 %vm691_vm5, %v6632_v17 }
0x1b1b   : > { %v6633_v12 = vmax.f32 %v6611_v60, 0.0  ;;  %v7010_v60 = vrot.slane %v7005_v29, %v10320_v54 }
0x1b1d   : > { %8561 = vmatprep.mubr.msk.f32.mxu0 %vm691_vm5, %v6633_v12  ;;  %v6996_v17 = vpop.permute.xlu1 %6995 }
0x1b1e   : > { %8562 = vmatmul.mubr.msk.f32.gmra.mxu0 %vm691_vm5, %v6634_v0  ;;  %v7001_v43 = vrot.slane %v6996_v17, %v10320_v54 }
0x1bc2   : > { %v10647_v4 = vpop.f32.mrf.mxu0 }
0x1bc3   : > { %v6782_v19 = vadd.f32 %v10647_v4, %v6660_v56 }
0x1bc4   : > { %v10649_v52 = vpop.f32.mrf.mxu0 }
0x1bc5   : > { %v6856_v45 = vmax.f32 %v6782_v19, 0.0  ;;  %v6777_v49 = vadd.f32 %v10649_v52, %v6660_v56 }
0x1bc6   : > { %v8545_v1 = vpop.f32.mrf.mxu0 }
0x1bc7   : > { %v6792_v7 = vadd.f32 %v8545_v1, %v6660_v56  ;;  %v6855_v42 = vmax.f32 %v6777_v49, 0.0 }
0x1bc8   : > { %v10651_v63 = vpop.f32.mrf.mxu0 }
0x1bc9   : > { %v6858_v18 = vmax.f32 %v6792_v7, 0.0  ;;  %v6787_v61 = vadd.f32 %v10651_v63, %v6660_v56 }
0x1bca   : > { %v8548_v58 = vpop.f32.mrf.mxu0 }
0x1bcb   : > { %v6802_v23 = vadd.f32 %v8548_v58, %v6660_v56  ;;  %v6857_v24 = vmax.f32 %v6787_v61, 0.0 }
0x1bcc   : > { %v6796_v20 = vpop.f32.mrf.mxu0 }
0x1bcd   : > { %v6860_v35 = vmax.f32 %v6802_v23, 0.0  ;;  %v6797_v41 = vadd.f32 %v6796_v20, %v6660_v56 }
0x1bce   : > { %v8551_v14 = vpop.f32.mrf.mxu0 }
0x1bcf   : > { %v6812_v27 = vadd.f32 %v8551_v14, %v6660_v56  ;;  %v6859_v2 = vmax.f32 %v6797_v41, 0.0 }
0x1bd0   : > { %v6806_v53 = vpop.f32.mrf.mxu0 }
0x1bd1   : > { %v6862_v57 = vmax.f32 %v6812_v27, 0.0  ;;  %v6807_v11 = vadd.f32 %v6806_v53, %v6660_v56 }
0x1bd2   : > { %v8554_v37 = vpop.f32.mrf.mxu0 }
0x1bd3   : > { %v6822_v47 = vadd.f32 %v8554_v37, %v6660_v56  ;;  %v6861_v39 = vmax.f32 %v6807_v11, 0.0 }
0x1bd4   : > { %v6816_v21 = vpop.f32.mrf.mxu0 }
0x1bd5   : > { %v6864_v15 = vmax.f32 %v6822_v47, 0.0  ;;  %v6817_v25 = vadd.f32 %v6816_v21, %v6660_v56 }
0x1bd6   : > { %v8557_v16 = vpop.f32.mrf.mxu0 }
0x1bd7   : > { %v6832_v5 = vadd.f32 %v8557_v16, %v6660_v56  ;;  %v6863_v50 = vmax.f32 %v6817_v25, 0.0 }
0x1bd8   : > { %v6826_v44 = vpop.f32.mrf.mxu0 }
0x1bd9   : > { %v6866_v9 = vmax.f32 %v6832_v5, 0.0  ;;  %v6827_v30 = vadd.f32 %v6826_v44, %v6660_v56 }
0x1bda   : > { %v8560_v6 = vpop.f32.mrf.mxu0 }
0x1bdb   : > { %v6842_v26 = vadd.f32 %v8560_v6, %v6660_v56  ;;  %v6865_v28 = vmax.f32 %v6827_v30, 0.0 }
0x1bdc   : > { %v6836_v34 = vpop.f32.mrf.mxu0 }
0x1bdd   : > { %v6868_v3 = vmax.f32 %v6842_v26, 0.0  ;;  %v6837_v55 = vadd.f32 %v6836_v34, %v6660_v56 }
0x1bde   : > { %v8563_v38 = vpop.f32.mrf.mxu0 }
0x1bdf   : > { %v6852_v13 = vadd.f32 %v8563_v38, %v6660_v56  ;;  %v6867_v40 = vmax.f32 %v6837_v55, 0.0 }
0x1be0   : > { %v6846_v8 = vpop.f32.mrf.mxu0 }
0x1be1   : > { %v6870_v10 = vmax.f32 %v6852_v13, 0.0  ;;  %v6847_v31 = vadd.f32 %v6846_v8, %v6660_v56 }
0x1be3   : > { %8565 = vmatpush3.xpose.msk.msra.mxu1 %vm691_vm5, %v6870_v10  ;;  %v6869_v46 = vmax.f32 %v6847_v31, 0.0 }
0x1be4   : > { %8566 = vmatprep.subr.mxu1 %v10771_v59 }
0x1be7   : > { %8567 = vmatpush3.xpose.msk.msra.mxu1 %vm691_vm5, %v6869_v46 }
0x1be8   : > { %8568 = vmatprep.subr.mxu1 %v10771_v59 }
0x1beb   : > { %8569 = vmatpush3.xpose.msk.msra.mxu1 %vm691_vm5, %v6868_v3 }
0x1bec   : > { %8570 = vmatprep.subr.mxu1 %v10771_v59 }
0x1bef   : > { %8571 = vmatpush3.xpose.msk.msra.mxu1 %vm691_vm5, %v6867_v40 }
0x1bf0   : > { %8572 = vmatprep.subr.mxu1 %v10771_v59 }
0x1bf3   : > { %8573 = vmatpush3.xpose.msk.msra.mxu1 %vm691_vm5, %v6866_v9 }
0x1bf4   : > { %8574 = vmatprep.subr.mxu1 %v10771_v59 }
0x1bf7   : > { %8575 = vmatpush3.xpose.msk.msra.mxu1 %vm691_vm5, %v6865_v28 }
0x1bf8   : > { %8576 = vmatprep.subr.mxu1 %v10771_v59 }
0x1bfb   : > { %8577 = vmatpush3.xpose.msk.msra.mxu1 %vm691_vm5, %v6864_v15 }
0x1bfc   : > { %8578 = vmatprep.subr.mxu1 %v10771_v59 }
0x1bff   : > { %8579 = vmatpush3.xpose.msk.msra.mxu1 %vm691_vm5, %v6863_v50 }
0x1c00   : > { %8580 = vmatprep.subr.mxu1 %v10771_v59 }
0x1c03   : > { %8581 = vmatpush3.xpose.msk.msra.mxu1 %vm691_vm5, %v6862_v57 }
0x1c04   : > { %8582 = vmatprep.subr.mxu1 %v10771_v59 }
0x1c07   : > { %8583 = vmatpush3.xpose.msk.msra.mxu1 %vm691_vm5, %v6861_v39 }
0x1c08   : > { %8584 = vmatprep.subr.mxu1 %v10771_v59 }
0x1c0b   : > { %8585 = vmatpush3.xpose.msk.msra.mxu1 %vm691_vm5, %v6860_v35 }
0x1c0c   : > { %8586 = vmatprep.subr.mxu1 %v10771_v59 }
0x1c0f   : > { %8587 = vmatpush3.xpose.msk.msra.mxu1 %vm691_vm5, %v6859_v2 }
0x1c10   : > { %8588 = vmatprep.subr.mxu1 %v10771_v59 }
0x1c13   : > { %8589 = vmatpush3.xpose.msk.msra.mxu1 %vm691_vm5, %v6858_v18 }
0x1c14   : > { %8590 = vmatprep.subr.mxu1 %v10771_v59 }
0x1c17   : > { %8591 = vmatpush3.xpose.msk.msra.mxu1 %vm691_vm5, %v6857_v24 }
0x1c18   : > { %8592 = vmatprep.subr.mxu1 %v10771_v59 }
0x1c1b   : > { %8593 = vmatpush3.xpose.msk.msra.mxu1 %vm691_vm5, %v6856_v45 }
0x1c1c   : > { %8594 = vmatprep.subr.mxu1 %v10771_v59 }
0x1c1f   : > { %8595 = vmatpush3.xpose.msk.msra.mxu1 %vm691_vm5, %v6855_v42 }
0x1c22   : > { %8597 = vmatmul.mubr.msk.f32.vlgmr.msra.gmra.mxu1 %vm691_vm5, %v6872_v33 }
0x1ce2   : > { %v6989_v12 = vpop.f32.mrf.mxu1 }
0x1ce3   : > { %v7002_v0 = vadd.f32 %v7001_v43, %v6989_v12  ;;  %v7011_v62 = vadd.f32 %v7010_v60, %v6989_v12 }
0x1ce4   : > { %v8598_v36 = vpop.f32.mrf.mxu1 }
0x1ce5   : > { %v7013_v51 = vand.u32 2147483647, %v7011_v62  ;;  %7038 = vrot.lane.b32.xlu0 %v7002_v0, %s8972_s9  ;;  %v7012_v58 = vmax.f32 %v7011_v62, 0.0 }
0x1ce7   : > { %v7014_v59 = vsub.f32 0.0, %v7013_v51 }
0x1ce9   : > { %v7015_v4 = vmul.f32 1.442695, %v7014_v59 }
0x1ceb   : > { %8901 = vpow2.f32 %v7015_v4 }
0x1cf8   : > { %v8902_v52 = vpop.eup %8901 }
0x1cf9   : > { %v7017_v1 = vadd.f32 1.0, %v8902_v52 }
0x1cfb   : > { %8903 = vlog2.f32 %v7017_v1 }
0x1d08   : > { %v8904_v63 = vpop.eup %8903 }
0x1d09   : > { %v7019_v20 = vmul.f32 0.6931472, %v8904_v63 }
0x1d0b   : > { %v7020_v14 = vadd.f32 %v7019_v20, %v7012_v58 }
0x1d0d   : > { %v7021_v54 = vmul.f32 0.9, %v7020_v14 }
0x1d0f   : > { %v7022_v53 = vadd.f32 0.1, %v7021_v54 }
0x1d11   : > { %v7024_v37 = vrot.slane %v7022_v53, 1 }
0x1d13   : > { %7025 = vrot.lane.b32.xlu1 %v7024_v37, %s8972_s9 }
0x1d57   : > { %v7039_v21 = vpop.permute.xlu0 %7038 }
0x1d58   : > { %v7042_v6 = vsel %vm450_vm2, %v7039_v21, %v7024_v37 }
0x1d59   : > { %7490 = vst.msk [vmem:[%s10379_s27 + $0x2] sm:$0x1] %vm10382_vm10, %v7042_v6 }
0x1d85   : > { %v7026_v16 = vpop.permute.xlu1 %7025 }
0x1d86   : > { %v7028_v44 = vsel %vm450_vm2, %v7002_v0, %v7026_v16 }
0x1d87   : > { %7033 = vst.msk [vmem:[%s10379_s27] sm:$0x1] %vm10382_vm10, %v7028_v44 }
0x1d88 PF: > { %s17_s21 = sadd.s32 1, %s8967_s21  }
0x1d89   : > { %p14_p1 = scmp.ge.s32.totalorder %s17_s21, 4  }
0x1d8b   :  { %16 = sbr.rel (!%p14_p1) target bundleno = 1 (0x1), region = 84 }
0x1d90   :  { %7085 = vsyncpa [#allocation3], 1 }
0x1d91   :  { %7087 = vsyncpa [#allocation3 + $0x1], 1 }

</bundles_post_ra>
